<compile_context>
chip_gen: v7x
topology: tpu7x:2x2x1
jax: 0.10.0
libtpu: 0.0.40
codegen_flags: <defaults>
</compile_context>

<pallas_src>
import functools

import jax
import jax.numpy as jnp
from jax import lax
from jax.experimental import pallas as pl
from jax.experimental.pallas import tpu as pltpu

_BN_EPS = 1e-5
_LANE = 128
_OFFS_3x3 = tuple((dy, dx) for dy in range(3) for dx in range(3))
_OFFS_2x2 = tuple((dy, dx) for dy in range(2) for dx in range(2))


def _round_up(x, m):
    return (x + m - 1) // m * m


@functools.lru_cache(maxsize=None)
def _vmem_limit_bytes():
    """Generation-aware scoped-VMEM limit (~62% of physical: 40 MiB on v7x's
    64 MiB, 80 MiB on v5e/v6e's 128 MiB); conservative fallback if unknown."""
    cap = 64 * 1024 * 1024
    try:
        cap = int(pltpu.get_tpu_info().vmem_capacity_bytes)
    except Exception:
        pass
    return max(32 * 1024 * 1024, min((cap * 5) // 8, 96 * 1024 * 1024))


# ----------------------------------------------------------------------------
# Fused Pallas kernel: in-kernel border + tap-group conv + bias + ReLU (+ stats)
# ----------------------------------------------------------------------------
def _conv_taps_kernel(*refs, offsets, oh, ow, relu, tap_group, add_border,
                      with_stats):
    """One grid step = one batch image.

    refs (in order):
      x_ref   : (1, H, W, Cb)   activation image (compute dtype), unpadded
      pad_ref : (1, 1, Cb)      [only if add_border] per-image border value
      w_ref   : (K, N)          VMEM-resident weight matrix (constant index map)
      b_ref   : (1, 1, N)       per-image f32 bias row
      y_ref   : (1, oh*ow, N)   conv(+bias)(+ReLU) output
      st_ref  : (1, 2, N)       [only if with_stats] per-image [sum, sumsq] (f32)
    """
    if add_border:
        x_ref, pad_ref, w_ref, b_ref = refs[0], refs[1], refs[2], refs[3]
        outs = refs[4:]
    else:
        x_ref, w_ref, b_ref = refs[0], refs[1], refs[2]
        pad_ref = None
        outs = refs[3:]
    y_ref = outs[0]

    xb = x_ref[0]                                          # (H, W, C)
    C = xb.shape[-1]

    if add_border:
        # Synthesize the 1-pixel border in VMEM (never materialized in HBM).
        hh, ww = xb.shape[0], xb.shape[1]
        pv = pad_ref[...].astype(xb.dtype)                 # (1, 1, C)
        lr = jnp.broadcast_to(pv, (hh, 1, C))
        xb = jnp.concatenate([lr, xb, lr], axis=1)         # (H, W+2, C)
        tb = jnp.broadcast_to(pv, (1, ww + 2, C))
        xb = jnp.concatenate([tb, xb, tb], axis=0)         # (H+2, W+2, C)

    # Tap-group accumulated matmul: acc += patches_group @ W[k0:k1]
    n_rows = oh * ow
    acc = None
    k0 = 0
    for g0 in range(0, len(offsets), tap_group):
        grp = offsets[g0:g0 + tap_group]
        wins = [xb[dy:dy + oh, dx:dx + ow, :] for dy, dx in grp]
        sub = wins[0] if len(wins) == 1 else jnp.concatenate(wins, axis=-1)
        sub = sub.reshape(n_rows, len(grp) * C)
        k1 = k0 + len(grp) * C
        part = jnp.dot(sub, w_ref[k0:k1, :], preferred_element_type=jnp.float32)
        acc = part if acc is None else acc + part
        k0 = k1

    acc = acc + b_ref[0]                                   # f32 epilogue
    if relu:
        acc = jnp.maximum(acc, 0.0)
    yv = acc.astype(y_ref.dtype)
    y_ref[...] = yv[None]

    if with_stats:
        st_ref = outs[1]
        a32 = yv.astype(jnp.float32)   # stats of the values actually consumed
        s = jnp.sum(a32, axis=0, keepdims=True)
        q = jnp.sum(a32 * a32, axis=0, keepdims=True)
        st_ref[...] = jnp.concatenate([s, q], axis=0)[None]


def _fused_conv(x_img, w_mat, bias, *, offsets, oh, ow, relu, out_dtype,
                pad_vals=None, with_stats=False, tap_group=3):
    """x_img: (B, H, W, Cb); w_mat: (len(offsets)*Cb, N); bias: (N,)/(1,N)/(B,N).
    pad_vals (None | (Cb,) | (B, Cb)): if given, a 1-pixel border with these
    per-(batch,channel) values is synthesized inside the kernel."""
    B, Hx, Wx, Cb = x_img.shape
    K, N = w_mat.shape
    assert K == len(offsets) * Cb
    tap_group = max(1, min(tap_group, len(offsets)))
    add_border = pad_vals is not None

    bias3 = jnp.broadcast_to(
        jnp.asarray(bias, jnp.float32).reshape(-1, 1, N), (B, 1, N))

    operands = [x_img]
    in_specs = [pl.BlockSpec((1, Hx, Wx, Cb), lambda b: (b, 0, 0, 0))]
    if add_border:
        pads = jnp.broadcast_to(
            jnp.asarray(pad_vals, x_img.dtype).reshape(-1, 1, Cb), (B, 1, Cb))
        operands.append(pads)
        in_specs.append(pl.BlockSpec((1, 1, Cb), lambda b: (b, 0, 0)))
    operands += [w_mat, bias3]
    in_specs += [
        # Constant index map -> the weight matrix stays VMEM-resident across steps.
        pl.BlockSpec((K, N), lambda b: (0, 0)),
        pl.BlockSpec((1, 1, N), lambda b: (b, 0, 0)),
    ]

    y_spec = pl.BlockSpec((1, oh * ow, N), lambda b: (b, 0, 0))
    y_sds = jax.ShapeDtypeStruct((B, oh * ow, N), out_dtype)
    if with_stats:
        out_specs = (y_spec, pl.BlockSpec((1, 2, N), lambda b: (b, 0, 0)))
        out_shape = (y_sds, jax.ShapeDtypeStruct((B, 2, N), jnp.float32))
    else:
        out_specs = y_spec
        out_shape = y_sds

    kernel = functools.partial(
        _conv_taps_kernel, offsets=tuple(offsets), oh=oh, ow=ow, relu=relu,
        tap_group=tap_group, add_border=add_border, with_stats=with_stats)

    # NOTE: for very large H, W one would add a second "parallel" grid axis over
    # halo'd row slabs (keeps the working set inside v7x's 64 MiB VMEM and
    # deepens the pipeline beyond B steps); at UNet-typical sizes one image per
    # step is a good pipeline tile.
    return pl.pallas_call(
        kernel,
        grid=(B,),
        in_specs=in_specs,
        out_specs=out_specs,
        out_shape=out_shape,
        compiler_params=pltpu.CompilerParams(
            dimension_semantics=("parallel",),          # megacore / 2 TCs split batch
            vmem_limit_bytes=_vmem_limit_bytes()),
    )(*operands)


# ----------------------------------------------------------------------------
# Plain-JAX glue: weight-matrix layouts, affine folding, padding, stats
# ----------------------------------------------------------------------------
def _conv_w_mat(w_oihw):
    """Conv2d weight (O, I, kh, kw) -> (kh*kw*I, O); rows ordered (dy, dx, cin)."""
    _, _, kh, kw = w_oihw.shape
    rows = [w_oihw[:, :, dy, dx].T for dy in range(kh) for dx in range(kw)]
    return jnp.concatenate(rows, axis=0)


def _conv4x4s2_w_mat_s2d(w_oihw):
    """4x4/stride-2 Conv2d weight -> (16*I, O) matching the space-to-depth patch
    layout: taps (qy, qx) outer, channels (py, px, cin) inner, dy = 2*qy + py."""
    rows = []
    for qy in range(2):
        for qx in range(2):
            for py in range(2):
                for px in range(2):
                    rows.append(w_oihw[:, :, 2 * qy + py, 2 * qx + px].T)
    return jnp.concatenate(rows, axis=0)


def _convT_fused_w_mat(w_iokk):
    """ConvTranspose2d(4, 2, 1) weight (I, O, 4, 4) -> (9*I, 4*O).

    All 4 output phases in one matmul: rows = 3x3 taps (dy,dx) x cin on the
    zero-padded input, columns = phases (ay,ax) x cout.  Phase (ay,ax) output
    pixel (2i+ay, 2j+ax) uses taps (ay+d, ax+e), d,e in {0,1}, with kernel
    element (3-ay-2d, 3-ax-2e); all other (tap, phase) blocks are zero."""
    I, O = w_iokk.shape[0], w_iokk.shape[1]
    mat = jnp.zeros((9 * I, 4 * O), w_iokk.dtype)
    for ay in range(2):
        for ax in range(2):
            col0 = (2 * ay + ax) * O
            for dy in range(2):
                for dx in range(2):
                    ty, tx = ay + dy, ax + dx
                    row0 = (3 * ty + tx) * I
                    blk = w_iokk[:, :, (3 - ay) - 2 * dy, (3 - ax) - 2 * dx]
                    mat = mat.at[row0:row0 + I, col0:col0 + O].set(blk)
    return mat


def _fold_input_affine(w_mat, bias, scale_k, shift_k):
    """Fold a per-K-row input transform  col -> col*scale + shift  (applied at
    every tap, pad positions included) into the matmul:
        (x*s + z) @ W + b  ==  x @ (W * s[:, None]) + (b + z @ W)."""
    return w_mat * scale_k[:, None], jnp.atleast_2d(bias) + shift_k @ w_mat


def _pad_hw1(x, pad_bc):
    """Pad H and W by 1 on each side with per-(batch, channel) constants."""
    B, H, W, C = x.shape
    full = jnp.broadcast_to(
        jnp.asarray(pad_bc, x.dtype).reshape(-1, 1, 1, C), (B, H + 2, W + 2, C))
    return full.at[:, 1:-1, 1:-1, :].set(x)


def _space_to_depth2(x):
    """(B, H, W, C), even H, W -> (B, H//2, W//2, 4C); channel order (py, px, c)."""
    parts = [x[:, py::2, px::2, :] for py in range(2) for px in range(2)]
    return jnp.concatenate(parts, axis=-1)


def _bn_stats(stats, count):
    """Per-image [sum, sumsq] -> (mean, rsqrt(var + eps)) per channel (biased)."""
    tot = jnp.sum(stats.astype(jnp.float32), axis=0)
    mean = tot[0] / count
    var = jnp.maximum(tot[1] / count - mean * mean, 0.0)
    return mean, lax.rsqrt(var + _BN_EPS)
    # TODO(synk): BatchNorm running_mean/running_var buffer updates are a
    # training-mode side effect (no tensor output) and are not produced here.


# ----------------------------------------------------------------------------
# Block
# ----------------------------------------------------------------------------
class PallasBlock:
    def __init__(self, in_ch, out_ch, time_emb_dim, up=False, *, key,
                 compute_dtype=jnp.bfloat16):
        self.up = up
        self.out_ch = out_ch
        self.conv1_in = 2 * in_ch if up else in_ch
        self.compute_dtype = compute_dtype

        ks = jax.random.split(key, 8)
        s = 0.1
        self.w_time = jax.random.normal(ks[0], (out_ch, time_emb_dim), jnp.float32) * s
        self.b_time = jax.random.normal(ks[1], (out_ch,), jnp.float32) * s
        self.w_conv1 = jax.random.normal(ks[2], (out_ch, self.conv1_in, 3, 3), jnp.float32) * s
        self.b_conv1 = jax.random.normal(ks[3], (out_ch,), jnp.float32) * s
        self.w_conv2 = jax.random.normal(ks[4], (out_ch, out_ch, 3, 3), jnp.float32) * s
        self.b_conv2 = jax.random.normal(ks[5], (out_ch,), jnp.float32) * s
        # down: Conv2d(out,out,4,2,1) weight (O,I,4,4); up: ConvTranspose2d (I,O,4,4)
        self.w_tr = jax.random.normal(ks[6], (out_ch, out_ch, 4, 4), jnp.float32) * s
        self.b_tr = jax.random.normal(ks[7], (out_ch,), jnp.float32) * s
        # BatchNorm affine parameters (PyTorch init: gamma=1, beta=0); folded below.
        self.g_bn1 = jnp.ones((out_ch,), jnp.float32)
        self.be_bn1 = jnp.zeros((out_ch,), jnp.float32)
        self.g_bn2 = jnp.ones((out_ch,), jnp.float32)
        self.be_bn2 = jnp.zeros((out_ch,), jnp.float32)

        # ---- hoisted, data-independent weight layouts (built once) ------------
        C, Cin = out_ch, self.conv1_in
        Cp = _round_up(C, _LANE)          # lane-dense matmul N dim
        Ci = _round_up(Cin, _LANE)
        self.Cp, self.Ci = Cp, Ci
        # NOTE: for very small channel counts (early UNet stages) padding to 128
        # lanes wastes MXU flops / bandwidth; packing several taps per lane group
        # or leaving those layers to XLA would help there.
        w1 = jnp.pad(self.w_conv1, ((0, Cp - C), (0, Ci - Cin), (0, 0), (0, 0)))
        w2 = jnp.pad(self.w_conv2, ((0, Cp - C), (0, Cp - C), (0, 0), (0, 0)))
        wt = jnp.pad(self.w_tr, ((0, Cp - C), (0, Cp - C), (0, 0), (0, 0)))
        self.w1_mat_c = _conv_w_mat(w1).astype(compute_dtype)   # no input affine
        self.w2_mat = _conv_w_mat(w2)                           # f32; folded per call
        if up:
            self.wt_mat = _convT_fused_w_mat(wt)                # (9*Cp, 4*Cp)
            self.bt_row = jnp.tile(jnp.pad(self.b_tr, (0, Cp - C)), 4)
        else:
            self.wt_mat = _conv4x4s2_w_mat_s2d(wt)              # (16*Cp, Cp)
            self.bt_row = jnp.pad(self.b_tr, (0, Cp - C))
        self.b1_p = jnp.pad(self.b_conv1, (0, Cp - C))
        self.b2_p = jnp.pad(self.b_conv2, (0, Cp - C))
        self.g1_p = jnp.pad(self.g_bn1, (0, Cp - C), constant_values=1.0)
        self.g2_p = jnp.pad(self.g_bn2, (0, Cp - C), constant_values=1.0)
        self.be1_p = jnp.pad(self.be_bn1, (0, Cp - C))
        self.be2_p = jnp.pad(self.be_bn2, (0, Cp - C))

        self._jit_forward = jax.jit(self._forward)

    def __call__(self, x_nchw, t_emb):
        return self._jit_forward(x_nchw, t_emb)

    def _forward(self, x_nchw, t_emb):
        cdt = self.compute_dtype
        B, Cin, H, W = x_nchw.shape
        assert Cin == self.conv1_in and H % 2 == 0 and W % 2 == 0
        C, Cp, Ci = self.out_ch, self.Cp, self.Ci

        x = jnp.transpose(x_nchw, (0, 2, 3, 1)).astype(cdt)          # NCHW -> NHWC
        x = jnp.pad(x, ((0, 0), (0, 0), (0, 0), (0, Ci - Cin)))

        # Time MLP: a few KFLOPs -> plain JAX; folded into conv2's per-batch bias.
        t_relu = jax.nn.relu(t_emb @ self.w_time.T + self.b_time)    # (B, C) f32
        t_relu = jnp.pad(t_relu, ((0, 0), (0, Cp - C)))

        # --- conv1(3x3) + bias + ReLU, per-channel stats for BN1 ----------------
        h1, st1 = _fused_conv(
            x, self.w1_mat_c, self.b1_p, offsets=_OFFS_3x3, oh=H, ow=W,
            relu=True, out_dtype=cdt, pad_vals=jnp.zeros((Ci,), jnp.float32),
            with_stats=True, tap_group=3)
        mean1, r1 = _bn_stats(st1, B * H * W)

        # --- conv2(3x3) + bias + ReLU over  BN1(h1) + time_emb  ------------------
        # BN1 + the broadcast time add are a per-(batch, channel) affine of conv2's
        # input: fold scale into weights, shift into a per-batch bias, and pick the
        # raw border value so it maps to exactly 0 after the affine.
        scale1 = r1 * self.g1_p
        shift1 = self.be1_p - mean1 * scale1 + t_relu                 # (B, Cp)
        w2f, b2f = _fold_input_affine(self.w2_mat, self.b2_p,
                                      jnp.tile(scale1, 9), jnp.tile(shift1, (1, 9)))
        pad1 = -shift1 / scale1
        h2, st2 = _fused_conv(
            h1.reshape(B, H, W, Cp), w2f.astype(cdt), b2f, offsets=_OFFS_3x3,
            oh=H, ow=W, relu=True, out_dtype=cdt, pad_vals=pad1,
            with_stats=True, tap_group=3)
        mean2, r2 = _bn_stats(st2, B * H * W)

        # --- transform over BN2(h2) (BN2 folded the same way) --------------------
        scale2 = r2 * self.g2_p
        shift2 = self.be2_p - mean2 * scale2                          # (Cp,)
        pad2 = -shift2 / scale2
        h2_img = h2.reshape(B, H, W, Cp)

        if self.up:
            # ConvTranspose2d(4,2,1): all 4 output phases in ONE kernel (union of
            # taps = 3x3, matmul N = 4*Cp), then depth-to-space (no strided scatters).
            wtf, btf = _fold_input_affine(self.wt_mat, self.bt_row,
                                          jnp.tile(scale2, 9), jnp.tile(shift2, 9))
            y = _fused_conv(h2_img, wtf.astype(cdt), btf, offsets=_OFFS_3x3,
                            oh=H, ow=W, relu=False, out_dtype=jnp.float32,
                            pad_vals=pad2, with_stats=False, tap_group=3)
            y = y.reshape(B, H, W, 2, 2, Cp)                          # (.., ay, ax, c)
            out = jnp.transpose(y, (0, 1, 3, 2, 4, 5)).reshape(B, 2 * H, 2 * W, Cp)
        else:
            # Conv2d(4, stride 2, pad 1): space-to-depth makes it a dense 2x2 conv.
            # (pad + s2d kept in JAX here; fusing them via in-kernel strided
            # windows would drop one more HBM round trip.)
            h2p = _pad_hw1(h2_img, jnp.broadcast_to(pad2, (B, Cp)))
            s2d = _space_to_depth2(h2p)                               # (B,(H+2)/2,(W+2)/2,4Cp)
            wtf, btf = _fold_input_affine(self.wt_mat, self.bt_row,
                                          jnp.tile(scale2, 16), jnp.tile(shift2, 16))
            Ho, Wo = H // 2, W // 2
            y = _fused_conv(s2d, wtf.astype(cdt), btf, offsets=_OFFS_2x2,
                            oh=Ho, ow=Wo, relu=False, out_dtype=jnp.float32,
                            with_stats=False, tap_group=1)
            out = y.reshape(B, Ho, Wo, Cp)

        out = out[..., :C]                                            # drop lane padding
        return jnp.transpose(out, (0, 3, 1, 2))                       # NHWC -> NCHW


# ----------------------------------------------------------------------------
# Pure-JAX (XLA conv) reference, used only for correctness checking
# ----------------------------------------------------------------------------
def reference_block(blk, x, t_emb):
    def conv(x, w, b, stride=1, pad=1):
        y = lax.conv_general_dilated(
            x, w, (stride, stride), ((pad, pad), (pad, pad)),
            dimension_numbers=("NCHW", "OIHW", "NCHW"),
            precision=lax.Precision.HIGHEST)
        return y + b[None, :, None, None]

    def bn(x):  # gamma=1, beta=0 at init (matches nn.BatchNorm2d defaults)
        mean = jnp.mean(x, axis=(0, 2, 3), keepdims=True)
        var = jnp.mean(jnp.square(x - mean), axis=(0, 2, 3), keepdims=True)
        return (x - mean) * lax.rsqrt(var + _BN_EPS)

    h = bn(jax.nn.relu(conv(x, blk.w_conv1, blk.b_conv1)))
    tp = jax.nn.relu(t_emb @ blk.w_time.T + blk.b_time)[:, :, None, None]
    h = h + tp
    h = bn(jax.nn.relu(conv(h, blk.w_conv2, blk.b_conv2)))
    if blk.up:
        y = lax.conv_general_dilated(
            h, jnp.transpose(blk.w_tr[:, :, ::-1, ::-1], (1, 0, 2, 3)),
            (1, 1), ((2, 2), (2, 2)), lhs_dilation=(2, 2),
            dimension_numbers=("NCHW", "OIHW", "NCHW"),
            precision=lax.Precision.HIGHEST)
        return y + blk.b_tr[None, :, None, None]
    return conv(h, blk.w_tr, blk.b_tr, stride=2, pad=1)


if __name__ == "__main__":
    key = jax.random.PRNGKey(0)
    k_params, k_params_up, k_x, k_t, k_xu = jax.random.split(key, 5)

    B, in_ch, out_ch, time_dim, H, W = 2, 4, 8, 32, 16, 16
    x = jax.random.normal(k_x, (B, in_ch, H, W), jnp.float32)
    t_emb = jax.random.normal(k_t, (B, time_dim), jnp.float32)

    # ---- down block, f32 compute: structural / indexing correctness ----
    blk_f32 = PallasBlock(in_ch, out_ch, time_dim, up=False, key=k_params,
                          compute_dtype=jnp.float32)
    out_f32 = jax.block_until_ready(blk_f32(x, t_emb))
    assert out_f32.shape == (B, out_ch, H // 2, W // 2), out_f32.shape
    ref = jax.block_until_ready(reference_block(blk_f32, x, t_emb))
    err = float(jnp.max(jnp.abs(out_f32 - ref)))
    assert err < 4e-2, err          # tolerance covers MXU f32 pass rounding

    # ---- down block, bf16 fast path (same parameters, looser tolerance) ----
    blk_bf16 = PallasBlock(in_ch, out_ch, time_dim, up=False, key=k_params,
                           compute_dtype=jnp.bfloat16)
    out_bf16 = jax.block_until_ready(blk_bf16(x, t_emb))
    assert out_bf16.shape == (B, out_ch, H // 2, W // 2), out_bf16.shape
    err = float(jnp.max(jnp.abs(out_bf16.astype(jnp.float32) - ref)))
    assert err < 2.5e-1, err

    # ---- up block (fused ConvTranspose path), f32 check ----
    blk_up = PallasBlock(in_ch, out_ch, time_dim, up=True, key=k_params_up,
                         compute_dtype=jnp.float32)
    x_up = jax.random.normal(k_xu, (B, 2 * in_ch, H, W), jnp.float32)
    out_up = jax.block_until_ready(blk_up(x_up, t_emb))
    assert out_up.shape == (B, out_ch, 2 * H, 2 * W), out_up.shape
    ref_up = jax.block_until_ready(reference_block(blk_up, x_up, t_emb))
    err = float(jnp.max(jnp.abs(out_up - ref_up)))
    assert err < 4e-2, err

    print("KERNEL_OK")
</pallas_src>

<mosaic_0001>
module attributes {stable_mosaic.version = 11 : i64} {
  func.func @_conv_taps_kernel(%arg0: i32, %arg1: memref<1x16x16x128xf32, #tpu.memory_space<vmem>>, %arg2: memref<1x1x128xf32, #tpu.memory_space<vmem>>, %arg3: memref<1152x128xf32, #tpu.memory_space<vmem>>, %arg4: memref<1x1x128xf32, #tpu.memory_space<vmem>>, %arg5: memref<1x256x128xf32, #tpu.memory_space<vmem>>, %arg6: memref<1x2x128xf32, #tpu.memory_space<vmem>>) attributes {dimension_semantics = [#tpu.dimension_semantics<parallel>], iteration_bounds = array<i64: 2>, scalar_prefetch = 0 : i64, scratch_operands = 0 : i64, tpu.core_type = #tpu.core_type<tc>, window_params = [{transform_indices = @transform_0, window_bounds = array<i64: 1, 16, 16, 128>}, {transform_indices = @transform_1, window_bounds = array<i64: 1, 1, 128>}, {pipeline_mode = #tpu.pipeline_mode<synchronous>, transform_indices = @transform_2, window_bounds = array<i64: 1152, 128>}, {transform_indices = @transform_3, window_bounds = array<i64: 1, 1, 128>}, {transform_indices = @transform_4, window_bounds = array<i64: 1, 256, 128>}, {transform_indices = @transform_5, window_bounds = array<i64: 1, 2, 128>}]} {
    %c0 = arith.constant 0 : index
    %c0_0 = arith.constant 0 : index
    %c0_1 = arith.constant 0 : index
    %c0_2 = arith.constant 0 : index
    %0 = vector.load %arg1[%c0, %c0_0, %c0_1, %c0_2] : memref<1x16x16x128xf32, #tpu.memory_space<vmem>>, vector<1x16x16x128xf32>
    %1 = vector.shape_cast %0 : vector<1x16x16x128xf32> to vector<16x16x128xf32>
    %c0_3 = arith.constant 0 : index
    %c0_4 = arith.constant 0 : index
    %c0_5 = arith.constant 0 : index
    %2 = vector.load %arg2[%c0_3, %c0_4, %c0_5] : memref<1x1x128xf32, #tpu.memory_space<vmem>>, vector<1x1x128xf32>
    %3 = vector.shape_cast %2 : vector<1x1x128xf32> to vector<1x1x128xf32>
    %4 = vector.broadcast %3 : vector<1x1x128xf32> to vector<16x1x128xf32>
    %5 = tpu.concatenate %4, %1, %4 in 1 : vector<16x1x128xf32>, vector<16x16x128xf32>, vector<16x1x128xf32> -> vector<16x18x128xf32>
    %6 = vector.shape_cast %2 : vector<1x1x128xf32> to vector<1x1x128xf32>
    %7 = vector.broadcast %6 : vector<1x1x128xf32> to vector<1x18x128xf32>
    %8 = tpu.concatenate %7, %5, %7 in 0 : vector<1x18x128xf32>, vector<16x18x128xf32>, vector<1x18x128xf32> -> vector<18x18x128xf32>
    %9 = vector.extract_strided_slice %8 {offsets = [0, 0, 0], sizes = [16, 16, 128], strides = [1, 1, 1]} : vector<18x18x128xf32> to vector<16x16x128xf32>
    %10 = vector.extract_strided_slice %8 {offsets = [0, 1, 0], sizes = [16, 16, 128], strides = [1, 1, 1]} : vector<18x18x128xf32> to vector<16x16x128xf32>
    %11 = vector.extract_strided_slice %8 {offsets = [0, 2, 0], sizes = [16, 16, 128], strides = [1, 1, 1]} : vector<18x18x128xf32> to vector<16x16x128xf32>
    %12 = tpu.concatenate %9, %10, %11 in 2 : vector<16x16x128xf32>, vector<16x16x128xf32>, vector<16x16x128xf32> -> vector<16x16x384xf32>
    %13 = vector.shape_cast %12 : vector<16x16x384xf32> to vector<256x384xf32>
    %c0_6 = arith.constant 0 : index
    %c0_7 = arith.constant 0 : index
    %14 = vector.load %arg3[%c0_6, %c0_7] : memref<1152x128xf32, #tpu.memory_space<vmem>>, vector<384x128xf32>
    %cst = arith.constant dense<0.000000e+00> : vector<256x128xf32>
    %15 = tpu.matmul %13, %14, %cst {dimension_numbers = #tpu.dot_dimension_numbers<[1], [0], [0], [1], [0, 0, 1, 1], [], []>} : vector<256x384xf32>, vector<384x128xf32>, vector<256x128xf32> -> vector<256x128xf32>
    %16 = vector.extract_strided_slice %8 {offsets = [1, 0, 0], sizes = [16, 16, 128], strides = [1, 1, 1]} : vector<18x18x128xf32> to vector<16x16x128xf32>
    %17 = vector.extract_strided_slice %8 {offsets = [1, 1, 0], sizes = [16, 16, 128], strides = [1, 1, 1]} : vector<18x18x128xf32> to vector<16x16x128xf32>
    %18 = vector.extract_strided_slice %8 {offsets = [1, 2, 0], sizes = [16, 16, 128], strides = [1, 1, 1]} : vector<18x18x128xf32> to vector<16x16x128xf32>
    %19 = tpu.concatenate %16, %17, %18 in 2 : vector<16x16x128xf32>, vector<16x16x128xf32>, vector<16x16x128xf32> -> vector<16x16x384xf32>
    %20 = vector.shape_cast %19 : vector<16x16x384xf32> to vector<256x384xf32>
    %c384 = arith.constant 384 : index
    %c0_8 = arith.constant 0 : index
    %21 = vector.load %arg3[%c384, %c0_8] : memref<1152x128xf32, #tpu.memory_space<vmem>>, vector<384x128xf32>
    %cst_9 = arith.constant dense<0.000000e+00> : vector<256x128xf32>
    %22 = tpu.matmul %20, %21, %cst_9 {dimension_numbers = #tpu.dot_dimension_numbers<[1], [0], [0], [1], [0, 0, 1, 1], [], []>} : vector<256x384xf32>, vector<384x128xf32>, vector<256x128xf32> -> vector<256x128xf32>
    %23 = arith.addf %15, %22 : vector<256x128xf32>
    %24 = vector.extract_strided_slice %8 {offsets = [2, 0, 0], sizes = [16, 16, 128], strides = [1, 1, 1]} : vector<18x18x128xf32> to vector<16x16x128xf32>
    %25 = vector.extract_strided_slice %8 {offsets = [2, 1, 0], sizes = [16, 16, 128], strides = [1, 1, 1]} : vector<18x18x128xf32> to vector<16x16x128xf32>
    %26 = vector.extract_strided_slice %8 {offsets = [2, 2, 0], sizes = [16, 16, 128], strides = [1, 1, 1]} : vector<18x18x128xf32> to vector<16x16x128xf32>
    %27 = tpu.concatenate %24, %25, %26 in 2 : vector<16x16x128xf32>, vector<16x16x128xf32>, vector<16x16x128xf32> -> vector<16x16x384xf32>
    %28 = vector.shape_cast %27 : vector<16x16x384xf32> to vector<256x384xf32>
    %c768 = arith.constant 768 : index
    %c0_10 = arith.constant 0 : index
    %29 = vector.load %arg3[%c768, %c0_10] : memref<1152x128xf32, #tpu.memory_space<vmem>>, vector<384x128xf32>
    %cst_11 = arith.constant dense<0.000000e+00> : vector<256x128xf32>
    %30 = tpu.matmul %28, %29, %cst_11 {dimension_numbers = #tpu.dot_dimension_numbers<[1], [0], [0], [1], [0, 0, 1, 1], [], []>} : vector<256x384xf32>, vector<384x128xf32>, vector<256x128xf32> -> vector<256x128xf32>
    %31 = arith.addf %23, %30 : vector<256x128xf32>
    %c0_12 = arith.constant 0 : index
    %c0_13 = arith.constant 0 : index
    %c0_14 = arith.constant 0 : index
    %32 = vector.load %arg4[%c0_12, %c0_13, %c0_14] : memref<1x1x128xf32, #tpu.memory_space<vmem>>, vector<1x1x128xf32>
    %33 = vector.shape_cast %32 : vector<1x1x128xf32> to vector<1x128xf32>
    %34 = vector.broadcast %33 : vector<1x128xf32> to vector<256x128xf32>
    %35 = arith.addf %31, %34 : vector<256x128xf32>
    %cst_15 = arith.constant 0.000000e+00 : f32
    %36 = vector.broadcast %cst_15 : f32 to vector<256x128xf32>
    %37 = arith.maximumf %35, %36 : vector<256x128xf32>
    %38 = vector.shape_cast %37 : vector<256x128xf32> to vector<1x256x128xf32>
    %c0_16 = arith.constant 0 : index
    %c0_17 = arith.constant 0 : index
    %c0_18 = arith.constant 0 : index
    %39 = vector.load %arg5[%c0_16, %c0_17, %c0_18] : memref<1x256x128xf32, #tpu.memory_space<vmem>>, vector<1x256x128xf32>
    tpu.vector_store %arg5[%c0_16, %c0_17, %c0_18], %38 {strides = array<i32>} : memref<1x256x128xf32, #tpu.memory_space<vmem>>, vector<1x256x128xf32>,
    %cst_19 = arith.constant dense<0.000000e+00> : vector<128xf32>
    %40 = vector.multi_reduction <add>, %37, %cst_19 [0] : vector<256x128xf32> to vector<128xf32>
    %41 = vector.shape_cast %40 : vector<128xf32> to vector<1x128xf32>
    %42 = arith.mulf %37, %37 : vector<256x128xf32>
    %cst_20 = arith.constant dense<0.000000e+00> : vector<128xf32>
    %43 = vector.multi_reduction <add>, %42, %cst_20 [0] : vector<256x128xf32> to vector<128xf32>
    %44 = vector.shape_cast %43 : vector<128xf32> to vector<1x128xf32>
    %45 = tpu.concatenate %41, %44 in 0 : vector<1x128xf32>, vector<1x128xf32> -> vector<2x128xf32>
    %46 = vector.shape_cast %45 : vector<2x128xf32> to vector<1x2x128xf32>
    %c0_21 = arith.constant 0 : index
    %c0_22 = arith.constant 0 : index
    %c0_23 = arith.constant 0 : index
    %47 = vector.load %arg6[%c0_21, %c0_22, %c0_23] : memref<1x2x128xf32, #tpu.memory_space<vmem>>, vector<1x2x128xf32>
    tpu.vector_store %arg6[%c0_21, %c0_22, %c0_23], %46 {strides = array<i32>} : memref<1x2x128xf32, #tpu.memory_space<vmem>>, vector<1x2x128xf32>,
    return
  }
  func.func @transform_0(%arg0: i32) -> (i32, i32, i32, i32) {
    %c0_i32 = arith.constant 0 : i32
    %c0_i32_0 = arith.constant 0 : i32
    %c0_i32_1 = arith.constant 0 : i32
    %c0_i32_2 = arith.constant 0 : i32
    return %arg0, %c0_i32, %c0_i32_0, %c0_i32_1 : i32, i32, i32, i32
  }
  func.func @transform_1(%arg0: i32) -> (i32, i32, i32) {
    %c0_i32 = arith.constant 0 : i32
    %c0_i32_0 = arith.constant 0 : i32
    %c0_i32_1 = arith.constant 0 : i32
    return %arg0, %c0_i32, %c0_i32_0 : i32, i32, i32
  }
  func.func @transform_2(%arg0: i32) -> (i32, i32) {
    %c0_i32 = arith.constant 0 : i32
    %c0_i32_0 = arith.constant 0 : i32
    %c0_i32_1 = arith.constant 0 : i32
    return %c0_i32, %c0_i32_0 : i32, i32
  }
  func.func @transform_3(%arg0: i32) -> (i32, i32, i32) {
    %c0_i32 = arith.constant 0 : i32
    %c0_i32_0 = arith.constant 0 : i32
    %c0_i32_1 = arith.constant 0 : i32
    return %arg0, %c0_i32, %c0_i32_0 : i32, i32, i32
  }
  func.func @transform_4(%arg0: i32) -> (i32, i32, i32) {
    %c0_i32 = arith.constant 0 : i32
    %c0_i32_0 = arith.constant 0 : i32
    %c0_i32_1 = arith.constant 0 : i32
    return %arg0, %c0_i32, %c0_i32_0 : i32, i32, i32
  }
  func.func @transform_5(%arg0: i32) -> (i32, i32, i32) {
    %c0_i32 = arith.constant 0 : i32
    %c0_i32_0 = arith.constant 0 : i32
    %c0_i32_1 = arith.constant 0 : i32
    return %arg0, %c0_i32, %c0_i32_0 : i32, i32, i32
  }
}

module attributes {stable_mosaic.version = 11 : i64} {
  func.func @_conv_taps_kernel(%arg0: i32, %arg1: memref<1x9x9x512xf32, #tpu.memory_space<vmem>>, %arg2: memref<2048x128xf32, #tpu.memory_space<vmem>>, %arg3: memref<1x1x128xf32, #tpu.memory_space<vmem>>, %arg4: memref<1x64x128xf32, #tpu.memory_space<vmem>>) attributes {dimension_semantics = [#tpu.dimension_semantics<parallel>], iteration_bounds = array<i64: 2>, scalar_prefetch = 0 : i64, scratch_operands = 0 : i64, tpu.core_type = #tpu.core_type<tc>, window_params = [{transform_indices = @transform_0, window_bounds = array<i64: 1, 9, 9, 512>}, {pipeline_mode = #tpu.pipeline_mode<synchronous>, transform_indices = @transform_1, window_bounds = array<i64: 2048, 128>}, {transform_indices = @transform_2, window_bounds = array<i64: 1, 1, 128>}, {transform_indices = @transform_3, window_bounds = array<i64: 1, 64, 128>}]} {
    %c0 = arith.constant 0 : index
    %c0_0 = arith.constant 0 : index
    %c0_1 = arith.constant 0 : index
    %c0_2 = arith.constant 0 : index
    %0 = vector.load %arg1[%c0, %c0_0, %c0_1, %c0_2] : memref<1x9x9x512xf32, #tpu.memory_space<vmem>>, vector<1x9x9x512xf32>
    %1 = vector.shape_cast %0 : vector<1x9x9x512xf32> to vector<9x9x512xf32>
    %2 = vector.extract_strided_slice %1 {offsets = [0, 0, 0], sizes = [8, 8, 512], strides = [1, 1, 1]} : vector<9x9x512xf32> to vector<8x8x512xf32>
    %3 = vector.shape_cast %2 : vector<8x8x512xf32> to vector<64x512xf32>
    %c0_3 = arith.constant 0 : index
    %c0_4 = arith.constant 0 : index
    %4 = vector.load %arg2[%c0_3, %c0_4] : memref<2048x128xf32, #tpu.memory_space<vmem>>, vector<512x128xf32>
    %cst = arith.constant dense<0.000000e+00> : vector<64x128xf32>
    %5 = tpu.matmul %3, %4, %cst {dimension_numbers = #tpu.dot_dimension_numbers<[1], [0], [0], [1], [0, 0, 1, 1], [], []>} : vector<64x512xf32>, vector<512x128xf32>, vector<64x128xf32> -> vector<64x128xf32>
    %6 = vector.extract_strided_slice %1 {offsets = [0, 1, 0], sizes = [8, 8, 512], strides = [1, 1, 1]} : vector<9x9x512xf32> to vector<8x8x512xf32>
    %7 = vector.shape_cast %6 : vector<8x8x512xf32> to vector<64x512xf32>
    %c512 = arith.constant 512 : index
    %c0_5 = arith.constant 0 : index
    %8 = vector.load %arg2[%c512, %c0_5] : memref<2048x128xf32, #tpu.memory_space<vmem>>, vector<512x128xf32>
    %cst_6 = arith.constant dense<0.000000e+00> : vector<64x128xf32>
    %9 = tpu.matmul %7, %8, %cst_6 {dimension_numbers = #tpu.dot_dimension_numbers<[1], [0], [0], [1], [0, 0, 1, 1], [], []>} : vector<64x512xf32>, vector<512x128xf32>, vector<64x128xf32> -> vector<64x128xf32>
    %10 = arith.addf %5, %9 : vector<64x128xf32>
    %11 = vector.extract_strided_slice %1 {offsets = [1, 0, 0], sizes = [8, 8, 512], strides = [1, 1, 1]} : vector<9x9x512xf32> to vector<8x8x512xf32>
    %12 = vector.shape_cast %11 : vector<8x8x512xf32> to vector<64x512xf32>
    %c1024 = arith.constant 1024 : index
    %c0_7 = arith.constant 0 : index
    %13 = vector.load %arg2[%c1024, %c0_7] : memref<2048x128xf32, #tpu.memory_space<vmem>>, vector<512x128xf32>
    %cst_8 = arith.constant dense<0.000000e+00> : vector<64x128xf32>
    %14 = tpu.matmul %12, %13, %cst_8 {dimension_numbers = #tpu.dot_dimension_numbers<[1], [0], [0], [1], [0, 0, 1, 1], [], []>} : vector<64x512xf32>, vector<512x128xf32>, vector<64x128xf32> -> vector<64x128xf32>
    %15 = arith.addf %10, %14 : vector<64x128xf32>
    %16 = vector.extract_strided_slice %1 {offsets = [1, 1, 0], sizes = [8, 8, 512], strides = [1, 1, 1]} : vector<9x9x512xf32> to vector<8x8x512xf32>
    %17 = vector.shape_cast %16 : vector<8x8x512xf32> to vector<64x512xf32>
    %c1536 = arith.constant 1536 : index
    %c0_9 = arith.constant 0 : index
    %18 = vector.load %arg2[%c1536, %c0_9] : memref<2048x128xf32, #tpu.memory_space<vmem>>, vector<512x128xf32>
    %cst_10 = arith.constant dense<0.000000e+00> : vector<64x128xf32>
    %19 = tpu.matmul %17, %18, %cst_10 {dimension_numbers = #tpu.dot_dimension_numbers<[1], [0], [0], [1], [0, 0, 1, 1], [], []>} : vector<64x512xf32>, vector<512x128xf32>, vector<64x128xf32> -> vector<64x128xf32>
    %20 = arith.addf %15, %19 : vector<64x128xf32>
    %c0_11 = arith.constant 0 : index
    %c0_12 = arith.constant 0 : index
    %c0_13 = arith.constant 0 : index
    %21 = vector.load %arg3[%c0_11, %c0_12, %c0_13] : memref<1x1x128xf32, #tpu.memory_space<vmem>>, vector<1x1x128xf32>
    %22 = vector.shape_cast %21 : vector<1x1x128xf32> to vector<1x128xf32>
    %23 = vector.broadcast %22 : vector<1x128xf32> to vector<64x128xf32>
    %24 = arith.addf %20, %23 : vector<64x128xf32>
    %25 = vector.shape_cast %24 : vector<64x128xf32> to vector<1x64x128xf32>
    %c0_14 = arith.constant 0 : index
    %c0_15 = arith.constant 0 : index
    %c0_16 = arith.constant 0 : index
    %26 = vector.load %arg4[%c0_14, %c0_15, %c0_16] : memref<1x64x128xf32, #tpu.memory_space<vmem>>, vector<1x64x128xf32>
    tpu.vector_store %arg4[%c0_14, %c0_15, %c0_16], %25 {strides = array<i32>} : memref<1x64x128xf32, #tpu.memory_space<vmem>>, vector<1x64x128xf32>,
    return
  }
  func.func @transform_0(%arg0: i32) -> (i32, i32, i32, i32) {
    %c0_i32 = arith.constant 0 : i32
    %c0_i32_0 = arith.constant 0 : i32
    %c0_i32_1 = arith.constant 0 : i32
    %c0_i32_2 = arith.constant 0 : i32
    return %arg0, %c0_i32, %c0_i32_0, %c0_i32_1 : i32, i32, i32, i32
  }
  func.func @transform_1(%arg0: i32) -> (i32, i32) {
    %c0_i32 = arith.constant 0 : i32
    %c0_i32_0 = arith.constant 0 : i32
    %c0_i32_1 = arith.constant 0 : i32
    return %c0_i32, %c0_i32_0 : i32, i32
  }
  func.func @transform_2(%arg0: i32) -> (i32, i32, i32) {
    %c0_i32 = arith.constant 0 : i32
    %c0_i32_0 = arith.constant 0 : i32
    %c0_i32_1 = arith.constant 0 : i32
    return %arg0, %c0_i32, %c0_i32_0 : i32, i32, i32
  }
  func.func @transform_3(%arg0: i32) -> (i32, i32, i32) {
    %c0_i32 = arith.constant 0 : i32
    %c0_i32_0 = arith.constant 0 : i32
    %c0_i32_1 = arith.constant 0 : i32
    return %arg0, %c0_i32, %c0_i32_0 : i32, i32, i32
  }
}

</mosaic_0001>

<bundles_post_ra>
// kernel: _forward.5
= control target key start
LH: loop header
LB: loop body
LE: loop exit
PB: predicated region body
PF: predicated region fallthrough
CT: control target
= control target key end

     0   :  { %s2426_s12 = smov 0   ;;  %s3711_s0 = inlined_call_operand.vmem [shape: f32[2,9,9,512], index: 0, kind: input, shape index: {}]   ;;  %s3712_s1 = inlined_call_operand.vmem [shape: f32[2048,128], index: 1, kind: input, shape index: {}]   ;;  %s3713_s2 = inlined_call_operand.vmem [shape: f32[2,1,128], index: 2, kind: input, shape index: {}]   ;;  %s3714_s3 = inlined_call_operand.vmem [shape: f32[2,64,128], index: 3, kind: output, shape index: {}]  }
   0x1 LB: > { %s1673_s13 = sadd.s32 4294967295, %s2404_s12   ;;  %p1677_p0 = scmp.ge.s32.totalorder %s2404_s12, 1  ;;  %s2404_s12 = sphi %s2426_s12, %s13_s12  }
   0x2   : > { %p145_p1 = scmp.lt.s32.totalorder %s2404_s12, 3 }
   0x4   : > { %p146_p2 = pnand %p1677_p0, %p145_p1 }
   0x6   : > { %149 = sbr.rel (%p146_p2) target bundleno = 401 (0x191), region = 32 }
   0xd   : > { %v530_v0 = vld [vmem:[%s3712_s1 + $0x280] sm:$0xff]  ;;  %v531_v1 = vld [vmem:[%s3712_s1 + $0x288] sm:$0xff]  ;;  %v532_v11 = vld [vmem:[%s3712_s1 + $0x290] sm:$0xff]  ;;  %p2499_p3 = scmp.lt.s32.totalorder %s1673_s13, 1  ;;  %vm385_vm0 = vcmask 1046528  }
   0xe   : > { %v562_v2 = vld [vmem:[%s3712_s1 + $0x380] sm:$0xff]  ;;  %v2133_v3 = vpack.c.bf16 %v531_v1, %v530_v0  ;;  %v563_v4 = vld [vmem:[%s3712_s1 + $0x388] sm:$0xff]  ;;  %v533_v13 = vld [vmem:[%s3712_s1 + $0x298] sm:$0xff] }
   0xf   : > { %v514_v5 = vld [vmem:[%s3712_s1 + $0x200] sm:$0xff]  ;;  %v515_v6 = vld [vmem:[%s3712_s1 + $0x208] sm:$0xff]  ;;  %v2165_v7 = vpack.c.bf16 %v563_v4, %v562_v2  ;;  %v564_v14 = vld [vmem:[%s3712_s1 + $0x390] sm:$0xff]  ;;  %v2137_v16 = vpack.c.bf16 %v533_v13, %v532_v11  ;;  %s3747_s13 = smov (!%p2499_p3, %s1673_s13), 1 }
  0x10   : > { %v2135_v8 = vpack.c.bf16 %v515_v6, %v514_v5  ;;  %v546_v9 = vld [vmem:[%s3712_s1 + $0x300] sm:$0xff]  ;;  %v547_v10 = vld [vmem:[%s3712_s1 + $0x308] sm:$0xff]  ;;  %2134 = vmatprep.subr.bf16.mxu0 %v2133_v3  ;;  %v565_v15 = vld [vmem:[%s3712_s1 + $0x398] sm:$0xff]  ;;  %s2389_s24 = smul.u32 576, %s3747_s13  ;;  %s179_s25 = scalar_lea.vmem %s3713_s2, %s3747_s13 }
  0x11   : > { %v2167_v12 = vpack.c.bf16 %v547_v10, %v546_v9  ;;  %2166 = vmatprep.subr.bf16.mxu1 %v2165_v7  ;;  %v2169_v17 = vpack.c.bf16 %v565_v15, %v564_v14  ;;  %v516_v18 = vld [vmem:[%s3712_s1 + $0x210] sm:$0xff]  ;;  %v517_v19 = vld [vmem:[%s3712_s1 + $0x218] sm:$0xff]  ;;  %v534_v23 = vld [vmem:[%s3712_s1 + $0x2a0] sm:$0xff]  ;;  %s1684_s26 = sshll.u32 %s3747_s13, 6 }
  0x12   : > { %2136 = vmatpush3.bf16.msra.mxu0 %v2135_v8  ;;  %v548_v20 = vld [vmem:[%s3712_s1 + $0x310] sm:$0xff]  ;;  %v2139_v21 = vpack.c.bf16 %v517_v19, %v516_v18  ;;  %v549_v22 = vld [vmem:[%s3712_s1 + $0x318] sm:$0xff]  ;;  %v535_v24 = vld [vmem:[%s3712_s1 + $0x2a8] sm:$0xff]  ;;  %s2603_s20 = scalar_lea.vmem %s3711_s0, %s2389_s24  ;;  %s3683_s29 = scalar_lea.vmem %s3714_s3, %s1684_s26 }
  0x13   : > { %2168 = vmatpush3.bf16.msra.mxu1 %v2167_v12  ;;  %2138 = vmatprep.subr.bf16.mxu0 %v2137_v16  ;;  %v2171_v25 = vpack.c.bf16 %v549_v22, %v548_v20  ;;  %v2141_v26 = vpack.c.bf16 %v535_v24, %v534_v23  ;;  %v566_v27 = vld [vmem:[%s3712_s1 + $0x3a0] sm:$0xff]  ;;  %v567_v28 = vld [vmem:[%s3712_s1 + $0x3a8] sm:$0xff]  ;;  %v536_v35 = vld [vmem:[%s3712_s1 + $0x2b0] sm:$0xff] }
  0x14   : > { %2170 = vmatprep.subr.bf16.mxu1 %v2169_v17  ;;  %v518_v29 = vld [vmem:[%s3712_s1 + $0x220] sm:$0xff]  ;;  %v2173_v30 = vpack.c.bf16 %v567_v28, %v566_v27  ;;  %v519_v31 = vld [vmem:[%s3712_s1 + $0x228] sm:$0xff]  ;;  %v537_v36 = vld [vmem:[%s3712_s1 + $0x2b8] sm:$0xff] }
  0x15   : > { %v550_v32 = vld [vmem:[%s3712_s1 + $0x320] sm:$0xff]  ;;  %v551_v33 = vld [vmem:[%s3712_s1 + $0x328] sm:$0xff]  ;;  %v2143_v34 = vpack.c.bf16 %v519_v31, %v518_v29  ;;  %v568_v37 = vld [vmem:[%s3712_s1 + $0x3b0] sm:$0xff]  ;;  %v2145_v39 = vpack.c.bf16 %v537_v36, %v536_v35 }
  0x16   : > { %2140 = vmatpush3.bf16.msra.mxu0 %v2139_v21  ;;  %v2175_v38 = vpack.c.bf16 %v551_v33, %v550_v32  ;;  %v569_v40 = vld [vmem:[%s3712_s1 + $0x3b8] sm:$0xff]  ;;  %v520_v41 = vld [vmem:[%s3712_s1 + $0x230] sm:$0xff]  ;;  %v538_v46 = vld [vmem:[%s3712_s1 + $0x2c0] sm:$0xff] }
  0x17   : > { %2172 = vmatpush3.bf16.msra.mxu1 %v2171_v25  ;;  %2142 = vmatprep.subr.bf16.mxu0 %v2141_v26  ;;  %v521_v42 = vld [vmem:[%s3712_s1 + $0x238] sm:$0xff]  ;;  %v2177_v43 = vpack.c.bf16 %v569_v40, %v568_v37  ;;  %v552_v44 = vld [vmem:[%s3712_s1 + $0x330] sm:$0xff]  ;;  %v539_v47 = vld [vmem:[%s3712_s1 + $0x2c8] sm:$0xff] }
  0x18   : > { %2174 = vmatprep.subr.bf16.mxu1 %v2173_v30  ;;  %v553_v45 = vld [vmem:[%s3712_s1 + $0x338] sm:$0xff]  ;;  %v570_v48 = vld [vmem:[%s3712_s1 + $0x3c0] sm:$0xff]  ;;  %v571_v49 = vld [vmem:[%s3712_s1 + $0x3c8] sm:$0xff]  ;;  %v2147_v50 = vpack.c.bf16 %v521_v42, %v520_v41  ;;  %v2149_v52 = vpack.c.bf16 %v539_v47, %v538_v46 }
  0x19   : > { %v2179_v51 = vpack.c.bf16 %v553_v45, %v552_v44  ;;  %v522_v53 = vld [vmem:[%s3712_s1 + $0x240] sm:$0xff]  ;;  %v523_v54 = vld [vmem:[%s3712_s1 + $0x248] sm:$0xff]  ;;  %v2181_v56 = vpack.c.bf16 %v571_v49, %v570_v48  ;;  %v540_v58 = vld [vmem:[%s3712_s1 + $0x2d0] sm:$0xff] }
  0x1a   : > { %2144 = vmatpush3.bf16.msra.mxu0 %v2143_v34  ;;  %v554_v55 = vld [vmem:[%s3712_s1 + $0x340] sm:$0xff]  ;;  %v555_v57 = vld [vmem:[%s3712_s1 + $0x348] sm:$0xff]  ;;  %v541_v59 = vld [vmem:[%s3712_s1 + $0x2d8] sm:$0xff]  ;;  %v2151_v62 = vpack.c.bf16 %v523_v54, %v522_v53 }
  0x1b   : > { %2176 = vmatpush3.bf16.msra.mxu1 %v2175_v38  ;;  %2146 = vmatprep.subr.bf16.mxu0 %v2145_v39  ;;  %v572_v60 = vld [vmem:[%s3712_s1 + $0x3d0] sm:$0xff]  ;;  %v573_v61 = vld [vmem:[%s3712_s1 + $0x3d8] sm:$0xff]  ;;  %v2183_v0 = vpack.c.bf16 %v555_v57, %v554_v55  ;;  %v2153_v1 = vpack.c.bf16 %v541_v59, %v540_v58  ;;  %v542_v6 = vld [vmem:[%s3712_s1 + $0x2e0] sm:$0xff] }
  0x1c   : > { %2178 = vmatprep.subr.bf16.mxu1 %v2177_v43  ;;  %v524_v63 = vld [vmem:[%s3712_s1 + $0x250] sm:$0xff]  ;;  %v525_v2 = vld [vmem:[%s3712_s1 + $0x258] sm:$0xff]  ;;  %v2185_v5 = vpack.c.bf16 %v573_v61, %v572_v60  ;;  %v543_v7 = vld [vmem:[%s3712_s1 + $0x2e8] sm:$0xff] }
  0x1d   : > { %v556_v3 = vld [vmem:[%s3712_s1 + $0x350] sm:$0xff]  ;;  %v557_v4 = vld [vmem:[%s3712_s1 + $0x358] sm:$0xff]  ;;  %v574_v8 = vld [vmem:[%s3712_s1 + $0x3e0] sm:$0xff]  ;;  %v2155_v12 = vpack.c.bf16 %v525_v2, %v524_v63  ;;  %v2157_v17 = vpack.c.bf16 %v543_v7, %v542_v6 }
  0x1e   : > { %2148 = vmatpush3.bf16.msra.mxu0 %v2147_v50  ;;  %v575_v9 = vld [vmem:[%s3712_s1 + $0x3e8] sm:$0xff]  ;;  %v526_v10 = vld [vmem:[%s3712_s1 + $0x260] sm:$0xff]  ;;  %v544_v15 = vld [vmem:[%s3712_s1 + $0x2f0] sm:$0xff]  ;;  %v2187_v16 = vpack.c.bf16 %v557_v4, %v556_v3 }
  0x1f   : > { %2180 = vmatpush3.bf16.msra.mxu1 %v2179_v51  ;;  %2150 = vmatprep.subr.bf16.mxu0 %v2149_v52  ;;  %v527_v11 = vld [vmem:[%s3712_s1 + $0x268] sm:$0xff]  ;;  %v558_v13 = vld [vmem:[%s3712_s1 + $0x360] sm:$0xff]  ;;  %v545_v18 = vld [vmem:[%s3712_s1 + $0x2f8] sm:$0xff]  ;;  %v2189_v21 = vpack.c.bf16 %v575_v9, %v574_v8 }
  0x20   : > { %2182 = vmatprep.subr.bf16.mxu1 %v2181_v56  ;;  %v559_v14 = vld [vmem:[%s3712_s1 + $0x368] sm:$0xff]  ;;  %v576_v22 = vld [vmem:[%s3712_s1 + $0x3f0] sm:$0xff]  ;;  %v2635_v25 = vld [vmem:[%s2603_s20 + $0x18] sm:$0xff]  ;;  %v2159_v32 = vpack.c.bf16 %v527_v11, %v526_v10  ;;  %v2161_v39 = vpack.c.bf16 %v545_v18, %v544_v15 }
  0x21   : > { %v2627_v19 = vld [vmem:[%s2603_s20 + $0x8] sm:$0xff]  ;;  %v192_v26 = vld [vmem:[%s2603_s20 + $0x38] sm:$0x1]  ;;  %v528_v28 = vld [vmem:[%s3712_s1 + $0x270] sm:$0xff]  ;;  %v395_v30 = vrot.slane %v2635_v25, 1  ;;  %v2191_v38 = vpack.c.bf16 %v559_v14, %v558_v13 }
  0x22   : > { %2152 = vmatpush3.bf16.msra.mxu0 %v2151_v62  ;;  %v190_v20 = vld [vmem:[%s2603_s20 + $0x28] sm:$0x1]  ;;  %v389_v23 = vrot.slane %v2627_v19, 1  ;;  %v577_v27 = vld [vmem:[%s3712_s1 + $0x3f8] sm:$0xff]  ;;  %v396_v31 = vrot.slane %v192_v26, 1  ;;  %v2651_v33 = vld [vmem:[%s3712_s1 + $0x370] sm:$0xff] }
  0x23   : > { %2184 = vmatpush3.bf16.msra.mxu1 %v2183_v0  ;;  %2154 = vmatprep.subr.bf16.mxu0 %v2153_v1  ;;  %v390_v24 = vrot.slane %v190_v20, 1  ;;  %v529_v29 = vld [vmem:[%s3712_s1 + $0x278] sm:$0xff]  ;;  %v2660_v36 = vld [vmem:[%s2603_s20] sm:$0xff]  ;;  %v2665_v41 = vld [vmem:[%s2603_s20 + $0x10] sm:$0xff]  ;;  %v2193_v44 = vpack.c.bf16 %v577_v27, %v576_v22 }
  0x24   : > { %2186 = vmatprep.subr.bf16.mxu1 %v2185_v5  ;;  %v2656_v34 = vld [vmem:[%s3712_s1 + $0x378] sm:$0xff]  ;;  %v189_v37 = vld [vmem:[%s2603_s20 + $0x20] sm:$0x1]  ;;  %v397_v40 = vsel %vm385_vm0, %v395_v30, %v396_v31  ;;  %v191_v42 = vld [vmem:[%s2603_s20 + $0x30] sm:$0x1]  ;;  %v386_v48 = vrot.slane %v2660_v36, 1  ;;  %v2163_v54 = vpack.c.bf16 %v529_v29, %v528_v28 }
  0x25   : > { %v391_v35 = vsel %vm385_vm0, %v389_v23, %v390_v24  ;;  %v273_v43 = vld [vmem:[%s3712_s1 + $0x80] sm:$0xff]  ;;  %v274_v45 = vld [vmem:[%s3712_s1 + $0x88] sm:$0xff]  ;;  %747 = vmatprep.mubr.f32.mxu1 %v397_v40  ;;  %v387_v49 = vrot.slane %v189_v37, 1  ;;  %v392_v55 = vrot.slane %v2665_v41, 1  ;;  %v393_v56 = vrot.slane %v191_v42, 1  ;;  %v2707_v59 = vld [vmem:[%s2603_s20 + $0x58] sm:$0xff] }
  0x26   : > { %2156 = vmatpush3.bf16.msra.mxu0 %v2155_v12  ;;  %642 = vmatprep.mubr.f32.mxu0 %v391_v35  ;;  %v305_v46 = vld [vmem:[%s3712_s1 + $0x180] sm:$0xff]  ;;  %v306_v47 = vld [vmem:[%s3712_s1 + $0x188] sm:$0xff]  ;;  %v200_v60 = vld [vmem:[%s2603_s20 + $0x78] sm:$0x1]  ;;  %v2195_v62 = vpack.c.bf16 %v2656_v34, %v2651_v33  ;;  %v2197_v63 = vpack.c.bf16 %v274_v45, %v273_v43  ;;  %v407_v10 = vrot.slane %v2707_v59, 1 }
  0x27   : > { %2188 = vmatpush3.bf16.msra.mxu1 %v2187_v16  ;;  %2158 = vmatprep.subr.bf16.mxu0 %v2157_v17  ;;  %v2684_v50 = vld [vmem:[%s3712_s1] sm:$0xff]  ;;  %v2689_v51 = vld [vmem:[%s3712_s1 + $0x8] sm:$0xff]  ;;  %v2718_v3 = vld [vmem:[%s2603_s20 + $0x50] sm:$0xff]  ;;  %v2229_v5 = vpack.c.bf16 %v306_v47, %v305_v46  ;;  %v388_v9 = vsel %vm385_vm0, %v386_v48, %v387_v49  ;;  %v408_v11 = vrot.slane %v200_v60, 1  ;;  %v394_v24 = vsel %vm385_vm0, %v392_v55, %v393_v56 }
  0x28   : > { %2190 = vmatprep.subr.bf16.mxu1 %v2189_v21  ;;  %v2692_v52 = vld [vmem:[%s2603_s20 + $0x48] sm:$0xff]  ;;  %v2699_v57 = vld [vmem:[%s3712_s1 + $0x100] sm:$0xff]  ;;  %v275_v4 = vld [vmem:[%s3712_s1 + $0x90] sm:$0xff]  ;;  %v2199_v16 = vpack.c.bf16 %v2689_v51, %v2684_v50  ;;  %v404_v18 = vrot.slane %v2718_v3, 1 }
  0x29   : > { %v198_v53 = vld [vmem:[%s2603_s20 + $0x68] sm:$0x1]  ;;  %v2711_v61 = vld [vmem:[%s2603_s20 + $0x40] sm:$0xff]  ;;  %v401_v0 = vrot.slane %v2692_v52, 1  ;;  %v199_v6 = vld [vmem:[%s2603_s20 + $0x70] sm:$0x1] }
  0x2a   : > { %2160 = vmatpush3.bf16.msra.mxu0 %v2159_v32  ;;  %v2704_v58 = vld [vmem:[%s3712_s1 + $0x108] sm:$0xff]  ;;  %v402_v1 = vrot.slane %v198_v53, 1  ;;  %v197_v2 = vld [vmem:[%s2603_s20 + $0x60] sm:$0x1]  ;;  %v276_v7 = vld [vmem:[%s3712_s1 + $0x98] sm:$0xff]  ;;  %v398_v12 = vrot.slane %v2711_v61, 1 }
  0x2b   : > { %2192 = vmatpush3.bf16.msra.mxu1 %v2191_v38  ;;  %2162 = vmatprep.subr.bf16.mxu0 %v2161_v39  ;;  %v2730_v8 = vld [vmem:[%s3712_s1 + $0x190] sm:$0xff]  ;;  %v308_v13 = vld [vmem:[%s3712_s1 + $0x198] sm:$0xff]  ;;  %v399_v17 = vrot.slane %v197_v2, 1  ;;  %v405_v20 = vrot.slane %v199_v6, 1  ;;  %v2762_v23 = vld [vmem:[%s2603_s20 + $0x88] sm:$0xff]  ;;  %v2231_v26 = vpack.c.bf16 %v2704_v58, %v2699_v57  ;;  %v2201_v32 = vpack.c.bf16 %v276_v7, %v275_v4 }
  0x2c   : > { %2194 = vmatprep.subr.bf16.mxu1 %v2193_v44  ;;  %v2741_v14 = vld [vmem:[%s3712_s1 + $0x10] sm:$0xff]  ;;  %v2746_v15 = vld [vmem:[%s3712_s1 + $0x18] sm:$0xff]  ;;  %v2768_v27 = vsel %vm385_vm0, %v401_v0, %v402_v1  ;;  %v206_v28 = vld [vmem:[%s2603_s20 + $0xa8] sm:$0x1]  ;;  %v413_v29 = vrot.slane %v2762_v23, 1  ;;  %v2782_v39 = vsel %vm385_vm0, %v407_v10, %v408_v11  ;;  %v2233_v40 = vpack.c.bf16 %v308_v13, %v2730_v8 }
  0x2d   : > { %v2754_v21 = vld [vmem:[%s3712_s1 + $0x110] sm:$0xff]  ;;  %v2759_v22 = vld [vmem:[%s3712_s1 + $0x118] sm:$0xff]  ;;  %v414_v33 = vrot.slane %v206_v28, 1  ;;  %v2778_v37 = vld [vmem:[%s2603_s20 + $0x80] sm:$0xff]  ;;  %v2794_v47 = vsel %vm385_vm0, %v398_v12, %v399_v17  ;;  %v2203_v48 = vpack.c.bf16 %v2746_v15, %v2741_v14  ;;  %v2809_v53 = vsel %vm385_vm0, %v404_v18, %v405_v20 }
  0x2e   : > { %2164 = vmatpush3.bf16.msra.mxu0 %v2163_v54  ;;  %v2773_v30 = vld [vmem:[%s2603_s20 + $0x98] sm:$0xff]  ;;  %v205_v38 = vld [vmem:[%s2603_s20 + $0xa0] sm:$0x1]  ;;  %v410_v42 = vrot.slane %v2778_v37, 1  ;;  %v2787_v44 = vld [vmem:[%s2603_s20 + $0x90] sm:$0xff]  ;;  %v2235_v54 = vpack.c.bf16 %v2759_v22, %v2754_v21 }
  0x2f   : > { %2196 = vmatpush3.bf16.msra.mxu1 %v2195_v62  ;;  %2198 = vmatprep.subr.bf16.mxu0 %v2197_v63  ;;  %v208_v31 = vld [vmem:[%s2603_s20 + $0xb8] sm:$0x1]  ;;  %v419_v34 = vrot.slane %v2773_v30, 1  ;;  %v411_v43 = vrot.slane %v205_v38, 1  ;;  %v207_v45 = vld [vmem:[%s2603_s20 + $0xb0] sm:$0x1]  ;;  %v2825_v62 = vsel %vm385_vm0, %v413_v29, %v414_v33 }
  0x30   : > { %2230 = vmatprep.subr.bf16.mxu1 %v2229_v5  ;;  %v420_v35 = vrot.slane %v208_v31, 1  ;;  %v277_v46 = vld [vmem:[%s3712_s1 + $0xa0] sm:$0xff]  ;;  %v278_v49 = vld [vmem:[%s3712_s1 + $0xa8] sm:$0xff]  ;;  %v416_v55 = vrot.slane %v2787_v44, 1  ;;  %v417_v56 = vrot.slane %v207_v45, 1  ;;  %v2854_v17 = vld [vmem:[%s2603_s20 + $0xd0] sm:$0xff] }
  0x31   : > { %643 = vmatmul.mubr.f32.vlgmr.msra.gmra.mrb[0].mxu0 %v388_v9  ;;  %v309_v50 = vld [vmem:[%s3712_s1 + $0x1a0] sm:$0xff]  ;;  %v310_v51 = vld [vmem:[%s3712_s1 + $0x1a8] sm:$0xff]  ;;  %v2205_v0 = vpack.c.bf16 %v278_v49, %v277_v46  ;;  %v2839_v5 = vsel %vm385_vm0, %v410_v42, %v411_v43  ;;  %v2843_v9 = vld [vmem:[%s2603_s20 + $0xd8] sm:$0xff] }
  0x32   : > { %748 = vmatmul.mubr.f32.vlgmr.msra.gmra.mrb[0].mxu1 %v394_v24  ;;  %2200 = vmatpush3.bf16.msra.mxu0 %v2199_v16  ;;  %v261_v57 = vld [vmem:[%s3712_s1 + $0x20] sm:$0xff]  ;;  %v262_v58 = vld [vmem:[%s3712_s1 + $0x28] sm:$0xff]  ;;  %v2828_v63 = vsel %vm385_vm0, %v419_v34, %v420_v35  ;;  %v2237_v6 = vpack.c.bf16 %v310_v51, %v309_v50  ;;  %v216_v10 = vld [vmem:[%s2603_s20 + $0xf8] sm:$0x1]  ;;  %v431_v13 = vrot.slane %v2843_v9, 1  ;;  %v2858_v18 = vsel %vm385_vm0, %v416_v55, %v417_v56 }
  0x33   : > { %2232 = vmatpush3.bf16.msra.mxu1 %v2231_v26  ;;  %647 = vmatprep.mubr.f32.mxu0 %v2768_v27  ;;  %v293_v60 = vld [vmem:[%s3712_s1 + $0x120] sm:$0xff]  ;;  %v294_v1 = vld [vmem:[%s3712_s1 + $0x128] sm:$0xff]  ;;  %v2207_v12 = vpack.c.bf16 %v262_v58, %v261_v57  ;;  %v432_v14 = vrot.slane %v216_v10, 1  ;;  %v215_v22 = vld [vmem:[%s2603_s20 + $0xf0] sm:$0x1]  ;;  %v428_v24 = vrot.slane %v2854_v17, 1 }
  0x34   : > { %752 = vmatprep.mubr.f32.mxu1 %v2782_v39  ;;  %2202 = vmatprep.subr.bf16.mxu0 %v2201_v32  ;;  %v2834_v2 = vld [vmem:[%s2603_s20 + $0xc8] sm:$0xff]  ;;  %v2847_v11 = vld [vmem:[%s2603_s20 + $0xc0] sm:$0xff]  ;;  %v2239_v20 = vpack.c.bf16 %v294_v1, %v293_v60  ;;  %v279_v26 = vld [vmem:[%s3712_s1 + $0xb0] sm:$0xff]  ;;  %v429_v31 = vrot.slane %v215_v22, 1 }
  0x35   : > { %v214_v4 = vld [vmem:[%s2603_s20 + $0xe8] sm:$0x1]  ;;  %648 = vmatmul.mubr.f32.gmra.mrb[2].mxu0 %v2794_v47  ;;  %2234 = vmatprep.subr.bf16.mxu1 %v2233_v40  ;;  %v425_v7 = vrot.slane %v2834_v2, 1  ;;  %v213_v15 = vld [vmem:[%s2603_s20 + $0xe0] sm:$0x1]  ;;  %v422_v16 = vrot.slane %v2847_v11, 1  ;;  %v2883_v38 = vsel %vm385_vm0, %v431_v13, %v432_v14 }
  0x36   : > { %v426_v8 = vrot.slane %v214_v4, 1  ;;  %753 = vmatmul.mubr.f32.gmra.mrb[2].mxu1 %v2809_v53  ;;  %2204 = vmatpush3.bf16.msra.mxu0 %v2203_v48  ;;  %v423_v21 = vrot.slane %v213_v15, 1  ;;  %v280_v28 = vld [vmem:[%s3712_s1 + $0xb8] sm:$0xff]  ;;  %v311_v33 = vld [vmem:[%s3712_s1 + $0x1b0] sm:$0xff]  ;;  %v2899_v48 = vsel %vm385_vm0, %v428_v24, %v429_v31  ;;  %v2902_v50 = vld [vmem:[%s2603_s20 + $0x108] sm:$0xff] }
  0x37   : > { %2236 = vmatpush3.bf16.msra.mxu1 %v2235_v54  ;;  %652 = vmatprep.mubr.f32.mxu0 %v2825_v62  ;;  %v2209_v32 = vpack.c.bf16 %v280_v28, %v279_v26  ;;  %v312_v34 = vld [vmem:[%s3712_s1 + $0x1b8] sm:$0xff]  ;;  %v263_v35 = vld [vmem:[%s3712_s1 + $0x30] sm:$0xff]  ;;  %v222_v51 = vld [vmem:[%s2603_s20 + $0x128] sm:$0x1]  ;;  %v437_v56 = vrot.slane %v2902_v50, 1 }
  0x38   : > { %757 = vmatprep.mubr.f32.mxu1 %v2828_v63  ;;  %2206 = vmatprep.subr.bf16.mxu0 %v2205_v0  ;;  %v2870_v29 = vsel %vm385_vm0, %v425_v7, %v426_v8  ;;  %v2241_v40 = vpack.c.bf16 %v312_v34, %v311_v33  ;;  %v264_v42 = vld [vmem:[%s3712_s1 + $0x38] sm:$0xff]  ;;  %v295_v43 = vld [vmem:[%s3712_s1 + $0x130] sm:$0xff]  ;;  %v2896_v46 = vsel %vm385_vm0, %v422_v16, %v423_v21  ;;  %v438_v57 = vrot.slane %v222_v51, 1  ;;  %v2913_v0 = vld [vmem:[%s2603_s20 + $0x100] sm:$0xff] }
  0x39   : > { %653 = vmatmul.mubr.f32.gmra.mrb[4].mxu0 %v2839_v5  ;;  %2238 = vmatprep.subr.bf16.mxu1 %v2237_v6  ;;  %v296_v45 = vld [vmem:[%s3712_s1 + $0x138] sm:$0xff]  ;;  %v2211_v49 = vpack.c.bf16 %v264_v42, %v263_v35  ;;  %v221_v4 = vld [vmem:[%s2603_s20 + $0x120] sm:$0x1]  ;;  %v434_v6 = vrot.slane %v2913_v0, 1  ;;  %v2919_v7 = vld [vmem:[%s2603_s20 + $0x110] sm:$0xff] }
  0x3a   : > { %758 = vmatmul.mubr.f32.gmra.mrb[4].mxu1 %v2858_v18  ;;  %2208 = vmatpush3.bf16.msra.mxu0 %v2207_v12  ;;  %v2906_v54 = vld [vmem:[%s2603_s20 + $0x118] sm:$0xff]  ;;  %v2243_v55 = vpack.c.bf16 %v296_v45, %v295_v43  ;;  %v281_v8 = vld [vmem:[%s3712_s1 + $0xc0] sm:$0xff]  ;;  %v2926_v10 = vsel %vm385_vm0, %v437_v56, %v438_v57  ;;  %v435_v12 = vrot.slane %v221_v4, 1  ;;  %v223_v13 = vld [vmem:[%s2603_s20 + $0x130] sm:$0x1]  ;;  %v440_v14 = vrot.slane %v2919_v7, 1 }
  0x3b   : > { %2240 = vmatpush3.bf16.msra.mxu1 %v2239_v20  ;;  %657 = vmatprep.mubr.f32.mxu0 %v2870_v29  ;;  %v224_v58 = vld [vmem:[%s2603_s20 + $0x138] sm:$0x1]  ;;  %v443_v60 = vrot.slane %v2906_v54, 1  ;;  %v282_v15 = vld [vmem:[%s3712_s1 + $0xc8] sm:$0xff]  ;;  %v313_v16 = vld [vmem:[%s3712_s1 + $0x1c0] sm:$0xff]  ;;  %v441_v21 = vrot.slane %v223_v13, 1 }
  0x3c   : > { %762 = vmatprep.mubr.f32.mxu1 %v2883_v38  ;;  %2210 = vmatprep.subr.bf16.mxu0 %v2209_v32  ;;  %v444_v1 = vrot.slane %v224_v58, 1  ;;  %v2213_v22 = vpack.c.bf16 %v282_v15, %v281_v8  ;;  %v314_v24 = vld [vmem:[%s3712_s1 + $0x1c8] sm:$0xff]  ;;  %v265_v26 = vld [vmem:[%s3712_s1 + $0x40] sm:$0xff]  ;;  %v2951_v31 = vsel %vm385_vm0, %v434_v6, %v435_v12  ;;  %v2969_v51 = vld [vmem:[%s2603_s20 + $0x158] sm:$0xff] }
  0x3d   : > { %658 = vmatmul.mubr.f32.gmra.mrb[6].mxu0 %v2896_v46  ;;  %2242 = vmatprep.subr.bf16.mxu1 %v2241_v40  ;;  %v266_v28 = vld [vmem:[%s3712_s1 + $0x48] sm:$0xff]  ;;  %v2245_v32 = vpack.c.bf16 %v314_v24, %v313_v16  ;;  %v297_v34 = vld [vmem:[%s3712_s1 + $0x140] sm:$0xff]  ;;  %v2964_v42 = vsel %vm385_vm0, %v440_v14, %v441_v21  ;;  %v455_v57 = vrot.slane %v2969_v51, 1  ;;  %v2981_v8 = vld [vmem:[%s2603_s20 + $0x150] sm:$0xff] }
  0x3e   : > { %763 = vmatmul.mubr.f32.gmra.mrb[6].mxu1 %v2899_v48  ;;  %2212 = vmatpush3.bf16.msra.mxu0 %v2211_v49  ;;  %v2938_v20 = vsel %vm385_vm0, %v443_v60, %v444_v1  ;;  %v2215_v33 = vpack.c.bf16 %v266_v28, %v265_v26  ;;  %v298_v35 = vld [vmem:[%s3712_s1 + $0x148] sm:$0xff]  ;;  %v2975_v60 = vld [vmem:[%s2603_s20 + $0x140] sm:$0xff]  ;;  %v231_v12 = vld [vmem:[%s2603_s20 + $0x170] sm:$0x1]  ;;  %v452_v16 = vrot.slane %v2981_v8, 1 }
  0x3f   : > { %2244 = vmatpush3.bf16.msra.mxu1 %v2243_v55  ;;  %662 = vmatprep.mubr.f32.mxu0 %v2926_v10  ;;  %v2960_v40 = vld [vmem:[%s2603_s20 + $0x148] sm:$0xff]  ;;  %v2247_v43 = vpack.c.bf16 %v298_v35, %v297_v34  ;;  %v232_v55 = vld [vmem:[%s2603_s20 + $0x178] sm:$0x1]  ;;  %v229_v1 = vld [vmem:[%s2603_s20 + $0x160] sm:$0x1]  ;;  %v446_v4 = vrot.slane %v2975_v60, 1 }
  0x40   : > { %767 = vmatprep.mubr.f32.mxu1 %v2938_v20  ;;  %2214 = vmatprep.subr.bf16.mxu0 %v2213_v22  ;;  %v230_v45 = vld [vmem:[%s2603_s20 + $0x168] sm:$0x1]  ;;  %v449_v49 = vrot.slane %v2960_v40, 1  ;;  %v456_v58 = vrot.slane %v232_v55, 1  ;;  %v447_v6 = vrot.slane %v229_v1, 1  ;;  %v283_v13 = vld [vmem:[%s3712_s1 + $0xd0] sm:$0xff] }
  0x41   : > { %663 = vmatmul.mubr.f32.gmra.mrb[8].mxu0 %v2951_v31  ;;  %2246 = vmatprep.subr.bf16.mxu1 %v2245_v32  ;;  %v450_v56 = vrot.slane %v230_v45, 1  ;;  %v453_v21 = vrot.slane %v231_v12, 1  ;;  %v284_v22 = vld [vmem:[%s3712_s1 + $0xd8] sm:$0xff]  ;;  %v315_v24 = vld [vmem:[%s3712_s1 + $0x1d0] sm:$0xff] }
  0x42   : > { %768 = vmatmul.mubr.f32.gmra.mrb[8].mxu1 %v2964_v42  ;;  %2216 = vmatpush3.bf16.msra.mxu0 %v2215_v33  ;;  %v2991_v15 = vsel %vm385_vm0, %v455_v57, %v456_v58  ;;  %v316_v26 = vld [vmem:[%s3712_s1 + $0x1d8] sm:$0xff]  ;;  %v3006_v28 = vsel %vm385_vm0, %v446_v4, %v447_v6  ;;  %v2217_v32 = vpack.c.bf16 %v284_v22, %v283_v13  ;;  %v267_v34 = vld [vmem:[%s3712_s1 + $0x50] sm:$0xff]  ;;  %v238_v57 = vld [vmem:[%s2603_s20 + $0x1a8] sm:$0x1] }
  0x43   : > { %2248 = vmatpush3.bf16.msra.mxu1 %v2247_v43  ;;  %v2988_v14 = vsel %vm385_vm0, %v449_v49, %v450_v56  ;;  %3727 = vst [vmem:[#allocation3_spill] sm:$0xff] %v2991_v15  ;;  %772 = vmatprep.mubr.f32.mxu1 %v2991_v15  ;;  %3728 = vst [vmem:[#allocation4_spill] sm:$0xff] %v3006_v28  ;;  %v2249_v33 = vpack.c.bf16 %v316_v26, %v315_v24  ;;  %v268_v35 = vld [vmem:[%s3712_s1 + $0x58] sm:$0xff]  ;;  %v299_v43 = vld [vmem:[%s3712_s1 + $0x150] sm:$0xff]  ;;  %v462_v4 = vrot.slane %v238_v57, 1 }
  0x44   : > { %3726 = vst [vmem:[#allocation2_spill] sm:$0xff] %v2988_v14  ;;  %667 = vmatprep.mubr.f32.mxu0 %v2988_v14  ;;  %v3019_v45 = vsel %vm385_vm0, %v452_v16, %v453_v21  ;;  %v2219_v49 = vpack.c.bf16 %v268_v35, %v267_v34  ;;  %v300_v55 = vld [vmem:[%s3712_s1 + $0x158] sm:$0xff]  ;;  %v3025_v56 = vld [vmem:[%s2603_s20 + $0x188] sm:$0xff]  ;;  %2218 = vmatprep.subr.bf16.mxu0 %v2217_v32  ;;  %v3035_v13 = vld [vmem:[%s2603_s20 + $0x180] sm:$0xff] }
  0x45   : > { %668 = vmatmul.mubr.f32.gmra.mrb[10].mxu0 %v3006_v28  ;;  %3729 = vst [vmem:[#allocation5_spill] sm:$0xff] %v3019_v45  ;;  %v2251_v58 = vpack.c.bf16 %v300_v55, %v299_v43  ;;  %v461_v1 = vrot.slane %v3025_v56, 1  ;;  %v3031_v6 = vld [vmem:[%s2603_s20 + $0x198] sm:$0xff]  ;;  %2250 = vmatprep.subr.bf16.mxu1 %v2249_v33  ;;  %v237_v22 = vld [vmem:[%s2603_s20 + $0x1a0] sm:$0x1]  ;;  %v458_v24 = vrot.slane %v3035_v13, 1 }
  0x46   : > { %773 = vmatmul.mubr.f32.gmra.mrb[10].mxu1 %v3019_v45  ;;  %v240_v12 = vld [vmem:[%s2603_s20 + $0x1b8] sm:$0x1]  ;;  %2220 = vmatpush3.bf16.msra.mxu0 %v2219_v49  ;;  %v467_v16 = vrot.slane %v3031_v6, 1  ;;  %v3041_v26 = vld [vmem:[%s2603_s20 + $0x190] sm:$0xff]  ;;  %v459_v34 = vrot.slane %v237_v22, 1  ;;  %v285_v33 = vld [vmem:[%s3712_s1 + $0xe0] sm:$0xff] }
  0x47   : > { %v468_v21 = vrot.slane %v240_v12, 1  ;;  %2252 = vmatpush3.bf16.msra.mxu1 %v2251_v58  ;;  %v3044_v32 = vsel %vm385_vm0, %v461_v1, %v462_v4  ;;  %v239_v35 = vld [vmem:[%s2603_s20 + $0x1b0] sm:$0x1]  ;;  %v464_v43 = vrot.slane %v3041_v26, 1  ;;  %v286_v49 = vld [vmem:[%s3712_s1 + $0xe8] sm:$0xff]  ;;  %v317_v1 = vld [vmem:[%s3712_s1 + $0x1e0] sm:$0xff] }
  0x48   : > { %3730 = vst [vmem:[#allocation6_spill] sm:$0xff] %v3044_v32  ;;  %672 = vmatprep.mubr.f32.mxu0 %v3044_v32  ;;  %v465_v57 = vrot.slane %v239_v35, 1  ;;  %v2221_v58 = vpack.c.bf16 %v286_v49, %v285_v33  ;;  %v318_v4 = vld [vmem:[%s3712_s1 + $0x1e8] sm:$0xff]  ;;  %v269_v12 = vld [vmem:[%s3712_s1 + $0x60] sm:$0xff]  ;;  %v248_v45 = vld [vmem:[%s2603_s20 + $0x1f8] sm:$0x1] }
  0x49   : > { %v3056_v55 = vsel %vm385_vm0, %v467_v16, %v468_v21  ;;  %v3069_v16 = vsel %vm385_vm0, %v458_v24, %v459_v34  ;;  %v2253_v21 = vpack.c.bf16 %v318_v4, %v317_v1  ;;  %v270_v22 = vld [vmem:[%s3712_s1 + $0x68] sm:$0xff]  ;;  %v301_v35 = vld [vmem:[%s3712_s1 + $0x160] sm:$0xff]  ;;  %v272_v14 = vld [vmem:[%s3712_s1 + $0x78] sm:$0xff] }
  0x4a   : > { %3731 = vst [vmem:[#allocation7_spill] sm:$0xff] %v3056_v55  ;;  %777 = vmatprep.mubr.f32.mxu1 %v3056_v55  ;;  %3732 = vst [vmem:[#allocation8_spill] sm:$0xff] %v3069_v16  ;;  %v302_v33 = vld [vmem:[%s3712_s1 + $0x168] sm:$0xff]  ;;  %673 = vmatmul.mubr.f32.gmra.mrb[12].mxu0 %v3069_v16  ;;  %v3082_v24 = vsel %vm385_vm0, %v464_v43, %v465_v57  ;;  %v2223_v34 = vpack.c.bf16 %v270_v22, %v269_v12  ;;  %v3089_v55 = vld [vmem:[%s2603_s20 + $0x1d8] sm:$0xff] }
  0x4b   : > { %3733 = vst [vmem:[#allocation9_spill] sm:$0xff] %v3082_v24  ;;  %2222 = vmatprep.subr.bf16.mxu0 %v2221_v58  ;;  %v2255_v49 = vpack.c.bf16 %v302_v33, %v301_v35  ;;  %v3085_v1 = vld [vmem:[%s2603_s20 + $0x1c8] sm:$0xff]  ;;  %778 = vmatmul.mubr.f32.gmra.mrb[12].mxu1 %v3082_v24  ;;  %v479_v43 = vrot.slane %v3089_v55, 1  ;;  %v3096_v57 = vld [vmem:[%s2603_s20 + $0x1c0] sm:$0xff]  ;;  %v480_v58 = vrot.slane %v248_v45, 1  ;;  %v3101_v35 = vld [vmem:[%s2603_s20 + $0x1d0] sm:$0xff] }
  0x4c   : > { %v246_v4 = vld [vmem:[%s2603_s20 + $0x1e8] sm:$0x1]  ;;  %2254 = vmatprep.subr.bf16.mxu1 %v2253_v21  ;;  %v473_v32 = vrot.slane %v3085_v1, 1  ;;  %2224 = vmatpush3.bf16.msra.mxu0 %v2223_v34  ;;  %v245_v12 = vld [vmem:[%s2603_s20 + $0x1e0] sm:$0x1]  ;;  %v470_v22 = vrot.slane %v3096_v57, 1 }
  0x4d   : > { %v474_v16 = vrot.slane %v246_v4, 1  ;;  %2256 = vmatpush3.bf16.msra.mxu1 %v2255_v49  ;;  %v287_v21 = vld [vmem:[%s3712_s1 + $0xf0] sm:$0xff]  ;;  %v471_v4 = vrot.slane %v245_v12, 1  ;;  %v476_v28 = vrot.slane %v3101_v35, 1  ;;  %v288_v45 = vld [vmem:[%s3712_s1 + $0xf8] sm:$0xff]  ;;  %v3119_v49 = vsel %vm385_vm0, %v479_v43, %v480_v58 }
  0x4e   : > { %v247_v24 = vld [vmem:[%s2603_s20 + $0x1f0] sm:$0x1]  ;;  %3735 = vst [vmem:[#allocation11_spill] sm:$0xff] %v3119_v49  ;;  %782 = vmatprep.mubr.f32.mxu1 %v3119_v49 }
  0x4f   : > { %v3107_v33 = vsel %vm385_vm0, %v473_v32, %v474_v16  ;;  %v319_v34 = vld [vmem:[%s3712_s1 + $0x1f0] sm:$0xff]  ;;  %v477_v15 = vrot.slane %v247_v24, 1  ;;  %v2225_v32 = vpack.c.bf16 %v288_v45, %v287_v21  ;;  %v320_v16 = vld [vmem:[%s3712_s1 + $0x1f8] sm:$0xff]  ;;  %v1014_v45 = vld [vmem:[%s3712_s1 + $0x480] sm:$0xff] }
  0x50   : > { %3734 = vst [vmem:[#allocation10_spill] sm:$0xff] %v3107_v33  ;;  %677 = vmatprep.mubr.f32.mxu0 %v3107_v33  ;;  %v271_v12 = vld [vmem:[%s3712_s1 + $0x70] sm:$0xff]  ;;  %v3132_v33 = vsel %vm385_vm0, %v470_v22, %v471_v4  ;;  %v2257_v43 = vpack.c.bf16 %v320_v16, %v319_v34  ;;  %v304_v21 = vld [vmem:[%s3712_s1 + $0x178] sm:$0xff]  ;;  %v1046_v4 = vld [vmem:[%s3712_s1 + $0x580] sm:$0xff] }
  0x51   : > { %v2227_v24 = vpack.c.bf16 %v272_v14, %v271_v12  ;;  %v303_v58 = vld [vmem:[%s3712_s1 + $0x170] sm:$0xff]  ;;  %678 = vmatmul.mubr.f32.gmra.mrb[14].mxu0 %v3132_v33  ;;  %v3145_v49 = vsel %vm385_vm0, %v476_v28, %v477_v15  ;;  %2226 = vmatprep.subr.bf16.mxu0 %v2225_v32  ;;  %v1015_v14 = vld [vmem:[%s3712_s1 + $0x488] sm:$0xff]  ;;  %v998_v28 = vld [vmem:[%s3712_s1 + $0x400] sm:$0xff] }
  0x52   : > { %v2259_v22 = vpack.c.bf16 %v304_v21, %v303_v58  ;;  %v1047_v34 = vld [vmem:[%s3712_s1 + $0x588] sm:$0xff]  ;;  %783 = vmatmul.mubr.f32.gmra.mrb[14].mxu1 %v3145_v49  ;;  %2258 = vmatprep.subr.bf16.mxu1 %v2257_v43  ;;  %v2261_v16 = vpack.c.bf16 %v1015_v14, %v1014_v45  ;;  %v1030_v12 = vld [vmem:[%s3712_s1 + $0x500] sm:$0xff]  ;;  %v1016_v21 = vld [vmem:[%s3712_s1 + $0x490] sm:$0xff] }
  0x53   : > { %v2293_v15 = vpack.c.bf16 %v1047_v34, %v1046_v4  ;;  %v999_v32 = vld [vmem:[%s3712_s1 + $0x408] sm:$0xff]  ;;  %2228 = vmatpush3.bf16.msra.mxu0 %v2227_v24  ;;  %v1017_v45 = vld [vmem:[%s3712_s1 + $0x498] sm:$0xff]  ;;  %852 = vmatprep.mubr.f32.mxu0 %v2627_v19  ;;  %v1048_v24 = vld [vmem:[%s3712_s1 + $0x590] sm:$0xff] }
  0x54   : > { %2260 = vmatpush3.bf16.msra.mxu1 %v2259_v22  ;;  %v2263_v58 = vpack.c.bf16 %v999_v32, %v998_v28  ;;  %v1031_v43 = vld [vmem:[%s3712_s1 + $0x508] sm:$0xff]  ;;  %957 = vmatprep.mubr.f32.mxu1 %v2635_v25  ;;  %v1049_v22 = vld [vmem:[%s3712_s1 + $0x598] sm:$0xff]  ;;  %v1000_v4 = vld [vmem:[%s3712_s1 + $0x410] sm:$0xff]  ;;  %v2265_v34 = vpack.c.bf16 %v1017_v45, %v1016_v21 }
  0x55   : > { %v2295_v14 = vpack.c.bf16 %v1031_v43, %v1030_v12  ;;  %2262 = vmatprep.subr.bf16.mxu0 %v2261_v16  ;;  %2294 = vmatprep.subr.bf16.mxu1 %v2293_v15  ;;  %v2297_v28 = vpack.c.bf16 %v1049_v22, %v1048_v24  ;;  %v1001_v19 = vld [vmem:[%s3712_s1 + $0x418] sm:$0xff]  ;;  %v1032_v25 = vld [vmem:[%s3712_s1 + $0x510] sm:$0xff]  ;;  %v1018_v16 = vld [vmem:[%s3712_s1 + $0x4a0] sm:$0xff] }
  0x56   : > { %v1033_v32 = vld [vmem:[%s3712_s1 + $0x518] sm:$0xff]  ;;  %853 = vmatmul.mubr.f32.vlgmr.msra.gmra.mrb[16].mxu0 %v2660_v36  ;;  %v1019_v15 = vld [vmem:[%s3712_s1 + $0x4a8] sm:$0xff]  ;;  %v1050_v12 = vld [vmem:[%s3712_s1 + $0x5a0] sm:$0xff]  ;;  %v2267_v43 = vpack.c.bf16 %v1001_v19, %v1000_v4 }
  0x57   : > { %958 = vmatmul.mubr.f32.vlgmr.msra.gmra.mrb[16].mxu1 %v2665_v41  ;;  %2264 = vmatpush3.bf16.msra.mxu0 %v2263_v58  ;;  %v2299_v21 = vpack.c.bf16 %v1033_v32, %v1032_v25  ;;  %v1051_v36 = vld [vmem:[%s3712_s1 + $0x5a8] sm:$0xff]  ;;  %v1002_v41 = vld [vmem:[%s3712_s1 + $0x420] sm:$0xff]  ;;  %v2269_v24 = vpack.c.bf16 %v1019_v15, %v1018_v16  ;;  %v1020_v4 = vld [vmem:[%s3712_s1 + $0x4b0] sm:$0xff] }
  0x58   : > { %2296 = vmatpush3.bf16.msra.mxu1 %v2295_v14  ;;  %857 = vmatprep.mubr.f32.mxu0 %v2692_v52  ;;  %v1003_v45 = vld [vmem:[%s3712_s1 + $0x428] sm:$0xff]  ;;  %v1034_v58 = vld [vmem:[%s3712_s1 + $0x520] sm:$0xff]  ;;  %v2301_v22 = vpack.c.bf16 %v1051_v36, %v1050_v12  ;;  %v1021_v19 = vld [vmem:[%s3712_s1 + $0x4b8] sm:$0xff] }
  0x59   : > { %962 = vmatprep.mubr.f32.mxu1 %v2707_v59  ;;  %v1035_v14 = vld [vmem:[%s3712_s1 + $0x528] sm:$0xff]  ;;  %2266 = vmatprep.subr.bf16.mxu0 %v2265_v34  ;;  %v1052_v25 = vld [vmem:[%s3712_s1 + $0x5b0] sm:$0xff]  ;;  %v1053_v34 = vld [vmem:[%s3712_s1 + $0x5b8] sm:$0xff] }
  0x5a   : > { %2298 = vmatprep.subr.bf16.mxu1 %v2297_v28  ;;  %858 = vmatmul.mubr.f32.gmra.mrb[18].mxu0 %v2711_v61  ;;  %v2271_v28 = vpack.c.bf16 %v1003_v45, %v1002_v41  ;;  %v2303_v32 = vpack.c.bf16 %v1035_v14, %v1034_v58  ;;  %v1004_v16 = vld [vmem:[%s3712_s1 + $0x430] sm:$0xff]  ;;  %v1005_v15 = vld [vmem:[%s3712_s1 + $0x438] sm:$0xff]  ;;  %v2305_v36 = vpack.c.bf16 %v1053_v34, %v1052_v25  ;;  %v1022_v41 = vld [vmem:[%s3712_s1 + $0x4c0] sm:$0xff] }
  0x5b   : > { %963 = vmatmul.mubr.f32.gmra.mrb[18].mxu1 %v2718_v3  ;;  %2268 = vmatpush3.bf16.msra.mxu0 %v2267_v43  ;;  %v1036_v12 = vld [vmem:[%s3712_s1 + $0x530] sm:$0xff]  ;;  %v1037_v43 = vld [vmem:[%s3712_s1 + $0x538] sm:$0xff]  ;;  %v1023_v45 = vld [vmem:[%s3712_s1 + $0x4c8] sm:$0xff] }
  0x5c   : > { %2300 = vmatpush3.bf16.msra.mxu1 %v2299_v21  ;;  %862 = vmatprep.mubr.f32.mxu0 %v2762_v23  ;;  %v2273_v21 = vpack.c.bf16 %v1021_v19, %v1020_v4  ;;  %v1054_v58 = vld [vmem:[%s3712_s1 + $0x5c0] sm:$0xff]  ;;  %v1055_v14 = vld [vmem:[%s3712_s1 + $0x5c8] sm:$0xff] }
  0x5d   : > { %967 = vmatprep.mubr.f32.mxu1 %v2773_v30  ;;  %2270 = vmatprep.subr.bf16.mxu0 %v2269_v24  ;;  %v2275_v24 = vpack.c.bf16 %v1005_v15, %v1004_v16  ;;  %v1006_v4 = vld [vmem:[%s3712_s1 + $0x440] sm:$0xff]  ;;  %v1007_v19 = vld [vmem:[%s3712_s1 + $0x448] sm:$0xff]  ;;  %v1024_v16 = vld [vmem:[%s3712_s1 + $0x4d0] sm:$0xff] }
  0x5e   : > { %2302 = vmatprep.subr.bf16.mxu1 %v2301_v22  ;;  %863 = vmatmul.mubr.f32.gmra.mrb[20].mxu0 %v2778_v37  ;;  %v2307_v22 = vpack.c.bf16 %v1037_v43, %v1036_v12  ;;  %v1038_v25 = vld [vmem:[%s3712_s1 + $0x540] sm:$0xff]  ;;  %v1039_v34 = vld [vmem:[%s3712_s1 + $0x548] sm:$0xff]  ;;  %v1025_v15 = vld [vmem:[%s3712_s1 + $0x4d8] sm:$0xff] }
  0x5f   : > { %968 = vmatmul.mubr.f32.gmra.mrb[20].mxu1 %v2787_v44  ;;  %2272 = vmatpush3.bf16.msra.mxu0 %v2271_v28  ;;  %v2277_v28 = vpack.c.bf16 %v1023_v45, %v1022_v41  ;;  %v1056_v12 = vld [vmem:[%s3712_s1 + $0x5d0] sm:$0xff]  ;;  %v1057_v43 = vld [vmem:[%s3712_s1 + $0x5d8] sm:$0xff] }
  0x60   : > { %2304 = vmatpush3.bf16.msra.mxu1 %v2303_v32  ;;  %867 = vmatprep.mubr.f32.mxu0 %v2834_v2  ;;  %v2309_v32 = vpack.c.bf16 %v1055_v14, %v1054_v58  ;;  %v1008_v41 = vld [vmem:[%s3712_s1 + $0x450] sm:$0xff]  ;;  %v1009_v45 = vld [vmem:[%s3712_s1 + $0x458] sm:$0xff] }
  0x61   : > { %972 = vmatprep.mubr.f32.mxu1 %v2843_v9  ;;  %2274 = vmatprep.subr.bf16.mxu0 %v2273_v21  ;;  %v2279_v21 = vpack.c.bf16 %v1007_v19, %v1006_v4  ;;  %v1040_v58 = vld [vmem:[%s3712_s1 + $0x550] sm:$0xff]  ;;  %v1041_v14 = vld [vmem:[%s3712_s1 + $0x558] sm:$0xff]  ;;  %v1026_v4 = vld [vmem:[%s3712_s1 + $0x4e0] sm:$0xff] }
  0x62   : > { %2306 = vmatprep.subr.bf16.mxu1 %v2305_v36  ;;  %868 = vmatmul.mubr.f32.gmra.mrb[22].mxu0 %v2847_v11  ;;  %v2311_v36 = vpack.c.bf16 %v1039_v34, %v1038_v25  ;;  %v1027_v19 = vld [vmem:[%s3712_s1 + $0x4e8] sm:$0xff]  ;;  %v1058_v25 = vld [vmem:[%s3712_s1 + $0x5e0] sm:$0xff] }
  0x63   : > { %973 = vmatmul.mubr.f32.gmra.mrb[22].mxu1 %v2854_v17  ;;  %2276 = vmatpush3.bf16.msra.mxu0 %v2275_v24  ;;  %v2281_v24 = vpack.c.bf16 %v1025_v15, %v1024_v16  ;;  %v1059_v34 = vld [vmem:[%s3712_s1 + $0x5e8] sm:$0xff]  ;;  %v1010_v16 = vld [vmem:[%s3712_s1 + $0x460] sm:$0xff] }
  0x64   : > { %2308 = vmatpush3.bf16.msra.mxu1 %v2307_v22  ;;  %872 = vmatprep.mubr.f32.mxu0 %v2902_v50  ;;  %v2313_v22 = vpack.c.bf16 %v1057_v43, %v1056_v12  ;;  %v1011_v15 = vld [vmem:[%s3712_s1 + $0x468] sm:$0xff]  ;;  %v1042_v12 = vld [vmem:[%s3712_s1 + $0x560] sm:$0xff] }
  0x65   : > { %977 = vmatprep.mubr.f32.mxu1 %v2906_v54  ;;  %2278 = vmatprep.subr.bf16.mxu0 %v2277_v28  ;;  %v2283_v28 = vpack.c.bf16 %v1009_v45, %v1008_v41  ;;  %v1043_v43 = vld [vmem:[%s3712_s1 + $0x568] sm:$0xff]  ;;  %v1028_v41 = vld [vmem:[%s3712_s1 + $0x4f0] sm:$0xff]  ;;  %v1029_v45 = vld [vmem:[%s3712_s1 + $0x4f8] sm:$0xff] }
  0x66   : > { %2310 = vmatprep.subr.bf16.mxu1 %v2309_v32  ;;  %873 = vmatmul.mubr.f32.gmra.mrb[24].mxu0 %v2913_v0  ;;  %v2315_v32 = vpack.c.bf16 %v1041_v14, %v1040_v58  ;;  %v1060_v58 = vld [vmem:[%s3712_s1 + $0x5f0] sm:$0xff]  ;;  %v1061_v14 = vld [vmem:[%s3712_s1 + $0x5f8] sm:$0xff] }
  0x67   : > { %978 = vmatmul.mubr.f32.gmra.mrb[24].mxu1 %v2919_v7  ;;  %2280 = vmatpush3.bf16.msra.mxu0 %v2279_v21  ;;  %v2285_v21 = vpack.c.bf16 %v1027_v19, %v1026_v4  ;;  %v1012_v4 = vld [vmem:[%s3712_s1 + $0x470] sm:$0xff]  ;;  %v1013_v19 = vld [vmem:[%s3712_s1 + $0x478] sm:$0xff] }
  0x68   : > { %2312 = vmatpush3.bf16.msra.mxu1 %v2311_v36  ;;  %877 = vmatprep.mubr.f32.mxu0 %v2960_v40  ;;  %v2317_v36 = vpack.c.bf16 %v1059_v34, %v1058_v25  ;;  %v1044_v25 = vld [vmem:[%s3712_s1 + $0x570] sm:$0xff]  ;;  %v1045_v34 = vld [vmem:[%s3712_s1 + $0x578] sm:$0xff] }
  0x69   : > { %982 = vmatprep.mubr.f32.mxu1 %v2969_v51  ;;  %2282 = vmatprep.subr.bf16.mxu0 %v2281_v24  ;;  %v2287_v24 = vpack.c.bf16 %v1011_v15, %v1010_v16  ;;  %v1320_v16 = vld [vmem:[%s3712_s1 + $0x680] sm:$0xff]  ;;  %v1321_v15 = vld [vmem:[%s3712_s1 + $0x688] sm:$0xff] }
  0x6a   : > { %2314 = vmatprep.subr.bf16.mxu1 %v2313_v22  ;;  %878 = vmatmul.mubr.f32.gmra.mrb[26].mxu0 %v2975_v60  ;;  %v2319_v22 = vpack.c.bf16 %v1043_v43, %v1042_v12  ;;  %v1352_v12 = vld [vmem:[%s3712_s1 + $0x780] sm:$0xff]  ;;  %v1353_v43 = vld [vmem:[%s3712_s1 + $0x788] sm:$0xff] }
  0x6b   : > { %983 = vmatmul.mubr.f32.gmra.mrb[26].mxu1 %v2981_v8  ;;  %2284 = vmatpush3.bf16.msra.mxu0 %v2283_v28  ;;  %v2289_v28 = vpack.c.bf16 %v1029_v45, %v1028_v41  ;;  %v1304_v41 = vld [vmem:[%s3712_s1 + $0x600] sm:$0xff]  ;;  %v1305_v45 = vld [vmem:[%s3712_s1 + $0x608] sm:$0xff] }
  0x6c   : > { %2316 = vmatpush3.bf16.msra.mxu1 %v2315_v32  ;;  %882 = vmatprep.mubr.f32.mxu0 %v3025_v56  ;;  %v2321_v32 = vpack.c.bf16 %v1061_v14, %v1060_v58  ;;  %v1336_v58 = vld [vmem:[%s3712_s1 + $0x700] sm:$0xff]  ;;  %v1337_v14 = vld [vmem:[%s3712_s1 + $0x708] sm:$0xff] }
  0x6d   : > { %987 = vmatprep.mubr.f32.mxu1 %v3031_v6  ;;  %2286 = vmatprep.subr.bf16.mxu0 %v2285_v21  ;;  %v2291_v21 = vpack.c.bf16 %v1013_v19, %v1012_v4  ;;  %v1322_v4 = vld [vmem:[%s3712_s1 + $0x690] sm:$0xff]  ;;  %v1323_v19 = vld [vmem:[%s3712_s1 + $0x698] sm:$0xff] }
  0x6e   : > { %2318 = vmatprep.subr.bf16.mxu1 %v2317_v36  ;;  %883 = vmatmul.mubr.f32.gmra.mrb[28].mxu0 %v3035_v13  ;;  %v2323_v36 = vpack.c.bf16 %v1045_v34, %v1044_v25  ;;  %v1354_v25 = vld [vmem:[%s3712_s1 + $0x790] sm:$0xff]  ;;  %v1355_v34 = vld [vmem:[%s3712_s1 + $0x798] sm:$0xff] }
  0x6f   : > { %988 = vmatmul.mubr.f32.gmra.mrb[28].mxu1 %v3041_v26  ;;  %2288 = vmatpush3.bf16.msra.mxu0 %v2287_v24  ;;  %v2325_v24 = vpack.c.bf16 %v1321_v15, %v1320_v16  ;;  %v1306_v16 = vld [vmem:[%s3712_s1 + $0x610] sm:$0xff]  ;;  %v1307_v15 = vld [vmem:[%s3712_s1 + $0x618] sm:$0xff] }
  0x70   : > { %2320 = vmatpush3.bf16.msra.mxu1 %v2319_v22  ;;  %887 = vmatprep.mubr.f32.mxu0 %v3085_v1  ;;  %v2357_v22 = vpack.c.bf16 %v1353_v43, %v1352_v12  ;;  %v1338_v12 = vld [vmem:[%s3712_s1 + $0x710] sm:$0xff]  ;;  %v1339_v43 = vld [vmem:[%s3712_s1 + $0x718] sm:$0xff] }
  0x71   : > { %992 = vmatprep.mubr.f32.mxu1 %v3089_v55  ;;  %2290 = vmatprep.subr.bf16.mxu0 %v2289_v28  ;;  %v2327_v28 = vpack.c.bf16 %v1305_v45, %v1304_v41  ;;  %v1356_v41 = vld [vmem:[%s3712_s1 + $0x7a0] sm:$0xff]  ;;  %v1357_v45 = vld [vmem:[%s3712_s1 + $0x7a8] sm:$0xff] }
  0x72   : > { %2322 = vmatprep.subr.bf16.mxu1 %v2321_v32  ;;  %888 = vmatmul.mubr.f32.gmra.mrb[30].mxu0 %v3096_v57  ;;  %v2359_v32 = vpack.c.bf16 %v1337_v14, %v1336_v58  ;;  %v2331_v58 = vpack.c.bf16 %v1307_v15, %v1306_v16  ;;  %v2363_v14 = vpack.c.bf16 %v1339_v43, %v1338_v12  ;;  %v1342_v16 = vld [vmem:[%s3712_s1 + $0x730] sm:$0xff]  ;;  %v1343_v15 = vld [vmem:[%s3712_s1 + $0x738] sm:$0xff] }
  0x73   : > { %993 = vmatmul.mubr.f32.gmra.mrb[30].mxu1 %v3101_v35  ;;  %2292 = vmatpush3.bf16.msra.mxu0 %v2291_v21  ;;  %v2329_v21 = vpack.c.bf16 %v1323_v19, %v1322_v4  ;;  %v2365_v19 = vpack.c.bf16 %v1357_v45, %v1356_v41  ;;  %v1344_v41 = vld [vmem:[%s3712_s1 + $0x740] sm:$0xff]  ;;  %v1345_v45 = vld [vmem:[%s3712_s1 + $0x748] sm:$0xff] }
  0x74   : > { %2324 = vmatpush3.bf16.msra.mxu1 %v2323_v36  ;;  %1126 = vmatprep.mubr.f32.mxu0 %v2692_v52  ;;  %v2361_v36 = vpack.c.bf16 %v1355_v34, %v1354_v25  ;;  %v1324_v52 = vld [vmem:[%s3712_s1 + $0x6a0] sm:$0xff]  ;;  %v1358_v25 = vld [vmem:[%s3712_s1 + $0x7b0] sm:$0xff]  ;;  %v1359_v34 = vld [vmem:[%s3712_s1 + $0x7b8] sm:$0xff] }
  0x75   : > { %1231 = vmatprep.mubr.f32.mxu1 %v2707_v59  ;;  %2326 = vmatprep.subr.bf16.mxu0 %v2325_v24  ;;  %v1325_v59 = vld [vmem:[%s3712_s1 + $0x6a8] sm:$0xff]  ;;  %v1340_v24 = vld [vmem:[%s3712_s1 + $0x720] sm:$0xff]  ;;  %v2369_v43 = vpack.c.bf16 %v1359_v34, %v1358_v25 }
  0x76   : > { %2358 = vmatprep.subr.bf16.mxu1 %v2357_v22  ;;  %1127 = vmatmul.mubr.f32.vlgmr.msra.gmra.mrb[32].mxu0 %v2711_v61  ;;  %v1308_v61 = vld [vmem:[%s3712_s1 + $0x620] sm:$0xff]  ;;  %v1341_v22 = vld [vmem:[%s3712_s1 + $0x728] sm:$0xff]  ;;  %v2333_v4 = vpack.c.bf16 %v1325_v59, %v1324_v52  ;;  %v2371_v59 = vpack.c.bf16 %v1343_v15, %v1342_v16 }
  0x77   : > { %1232 = vmatmul.mubr.f32.vlgmr.msra.gmra.mrb[32].mxu1 %v2718_v3  ;;  %2328 = vmatpush3.bf16.msra.mxu0 %v2327_v28  ;;  %v1309_v3 = vld [vmem:[%s3712_s1 + $0x628] sm:$0xff]  ;;  %v1364_v25 = vld [vmem:[%s3712_s1 + $0x7e0] sm:$0xff] }
  0x78   : > { %2360 = vmatpush3.bf16.msra.mxu1 %v2359_v32  ;;  %1131 = vmatprep.mubr.f32.mxu0 %v2762_v23  ;;  %v1326_v23 = vld [vmem:[%s3712_s1 + $0x6b0] sm:$0xff]  ;;  %v2335_v28 = vpack.c.bf16 %v1309_v3, %v1308_v61  ;;  %v2367_v32 = vpack.c.bf16 %v1341_v22, %v1340_v24  ;;  %v1363_v3 = vld [vmem:[%s3712_s1 + $0x7d8] sm:$0xff]  ;;  %v2375_v22 = vpack.c.bf16 %v1345_v45, %v1344_v41  ;;  %v1365_v34 = vld [vmem:[%s3712_s1 + $0x7e8] sm:$0xff] }
  0x79   : > { %1236 = vmatprep.mubr.f32.mxu1 %v2773_v30  ;;  %2330 = vmatprep.subr.bf16.mxu0 %v2329_v21  ;;  %v1327_v30 = vld [vmem:[%s3712_s1 + $0x6b8] sm:$0xff]  ;;  %v1360_v21 = vld [vmem:[%s3712_s1 + $0x7c0] sm:$0xff]  ;;  %v1362_v61 = vld [vmem:[%s3712_s1 + $0x7d0] sm:$0xff]  ;;  %v2381_v15 = vpack.c.bf16 %v1365_v34, %v1364_v25 }
  0x7a   : > { %2362 = vmatprep.subr.bf16.mxu1 %v2361_v36  ;;  %1132 = vmatmul.mubr.f32.gmra.mrb[34].mxu0 %v2778_v37  ;;  %v1310_v37 = vld [vmem:[%s3712_s1 + $0x630] sm:$0xff]  ;;  %v2337_v12 = vpack.c.bf16 %v1327_v30, %v1326_v23  ;;  %v1361_v36 = vld [vmem:[%s3712_s1 + $0x7c8] sm:$0xff]  ;;  %v2377_v30 = vpack.c.bf16 %v1363_v3, %v1362_v61 }
  0x7b   : > { %1237 = vmatmul.mubr.f32.gmra.mrb[34].mxu1 %v2787_v44  ;;  %2332 = vmatpush3.bf16.msra.mxu0 %v2331_v58  ;;  %v1311_v44 = vld [vmem:[%s3712_s1 + $0x638] sm:$0xff] }
  0x7c   : > { %2364 = vmatpush3.bf16.msra.mxu1 %v2363_v14  ;;  %1136 = vmatprep.mubr.f32.mxu0 %v2834_v2  ;;  %v1328_v2 = vld [vmem:[%s3712_s1 + $0x6c0] sm:$0xff]  ;;  %v2339_v52 = vpack.c.bf16 %v1311_v44, %v1310_v37  ;;  %v2373_v14 = vpack.c.bf16 %v1361_v36, %v1360_v21  ;;  %v1349_v44 = vld [vmem:[%s3712_s1 + $0x768] sm:$0xff]  ;;  %v1350_v21 = vld [vmem:[%s3712_s1 + $0x770] sm:$0xff] }
  0x7d   : > { %1241 = vmatprep.mubr.f32.mxu1 %v2843_v9  ;;  %2334 = vmatprep.subr.bf16.mxu0 %v2333_v4  ;;  %v1329_v9 = vld [vmem:[%s3712_s1 + $0x6c8] sm:$0xff]  ;;  %v1346_v4 = vld [vmem:[%s3712_s1 + $0x750] sm:$0xff]  ;;  %v1348_v37 = vld [vmem:[%s3712_s1 + $0x760] sm:$0xff] }
  0x7e   : > { %2366 = vmatprep.subr.bf16.mxu1 %v2365_v19  ;;  %1137 = vmatmul.mubr.f32.gmra.mrb[36].mxu0 %v2847_v11  ;;  %v1312_v11 = vld [vmem:[%s3712_s1 + $0x640] sm:$0xff]  ;;  %v2341_v58 = vpack.c.bf16 %v1329_v9, %v1328_v2  ;;  %v1347_v19 = vld [vmem:[%s3712_s1 + $0x758] sm:$0xff] }
  0x7f   : > { %1242 = vmatmul.mubr.f32.gmra.mrb[36].mxu1 %v2854_v17  ;;  %2336 = vmatpush3.bf16.msra.mxu0 %v2335_v28  ;;  %v1313_v17 = vld [vmem:[%s3712_s1 + $0x648] sm:$0xff]  ;;  %v1319_v9 = vld [vmem:[%s3712_s1 + $0x678] sm:$0xff] }
  0x80   : > { %2368 = vmatpush3.bf16.msra.mxu1 %v2367_v32  ;;  %1141 = vmatprep.mubr.f32.mxu0 %v2902_v50  ;;  %v1330_v50 = vld [vmem:[%s3712_s1 + $0x6d0] sm:$0xff]  ;;  %v2343_v24 = vpack.c.bf16 %v1313_v17, %v1312_v11  ;;  %v2379_v32 = vpack.c.bf16 %v1347_v19, %v1346_v4  ;;  %v1351_v36 = vld [vmem:[%s3712_s1 + $0x778] sm:$0xff] }
  0x81   : > { %1246 = vmatprep.mubr.f32.mxu1 %v2906_v54  ;;  %2338 = vmatprep.subr.bf16.mxu0 %v2337_v12  ;;  %v1331_v54 = vld [vmem:[%s3712_s1 + $0x6d8] sm:$0xff]  ;;  %v1366_v12 = vld [vmem:[%s3712_s1 + $0x7f0] sm:$0xff]  ;;  %v2387_v45 = vpack.c.bf16 %v1351_v36, %v1350_v21 }
  0x82   : > { %2370 = vmatprep.subr.bf16.mxu1 %v2369_v43  ;;  %1142 = vmatmul.mubr.f32.gmra.mrb[38].mxu0 %v2913_v0  ;;  %v1314_v0 = vld [vmem:[%s3712_s1 + $0x650] sm:$0xff]  ;;  %v2345_v23 = vpack.c.bf16 %v1331_v54, %v1330_v50  ;;  %v1367_v43 = vld [vmem:[%s3712_s1 + $0x7f8] sm:$0xff] }
  0x83   : > { %1247 = vmatmul.mubr.f32.gmra.mrb[38].mxu1 %v2919_v7  ;;  %2340 = vmatpush3.bf16.msra.mxu0 %v2339_v52  ;;  %v1315_v7 = vld [vmem:[%s3712_s1 + $0x658] sm:$0xff]  ;;  %v250_v52 = vld [vmem:[%s2603_s20 + $0x208] sm:$0xff]  ;;  %v2385_v11 = vpack.c.bf16 %v1367_v43, %v1366_v12  ;;  %v251_v17 = vld [vmem:[%s2603_s20 + $0x210] sm:$0xff] }
  0x84   : > { %2372 = vmatpush3.bf16.msra.mxu1 %v2371_v59  ;;  %1146 = vmatprep.mubr.f32.mxu0 %v2960_v40  ;;  %v1332_v40 = vld [vmem:[%s3712_s1 + $0x6e0] sm:$0xff]  ;;  %v2347_v28 = vpack.c.bf16 %v1315_v7, %v1314_v0  ;;  %v252_v59 = vld [vmem:[%s2603_s20 + $0x218] sm:$0xff] }
  0x85   : > { %1251 = vmatprep.mubr.f32.mxu1 %v2969_v51  ;;  %2342 = vmatprep.subr.bf16.mxu0 %v2341_v58  ;;  %v1333_v51 = vld [vmem:[%s3712_s1 + $0x6e8] sm:$0xff]  ;;  %v3744_v58 = vld [vmem:[#allocation10_spill] sm:$0xff] }
  0x86   : > { %2374 = vmatprep.subr.bf16.mxu1 %v2373_v14  ;;  %1147 = vmatmul.mubr.f32.gmra.mrb[40].mxu0 %v2975_v60  ;;  %v1316_v60 = vld [vmem:[%s3712_s1 + $0x660] sm:$0xff]  ;;  %v2349_v16 = vpack.c.bf16 %v1333_v51, %v1332_v40  ;;  %v3745_v14 = vld [vmem:[#allocation11_spill] sm:$0xff] }
  0x87   : > { %1252 = vmatmul.mubr.f32.gmra.mrb[40].mxu1 %v2981_v8  ;;  %2344 = vmatpush3.bf16.msra.mxu0 %v2343_v24  ;;  %v1317_v8 = vld [vmem:[%s3712_s1 + $0x668] sm:$0xff] }
  0x88   : > { %2376 = vmatpush3.bf16.msra.mxu1 %v2375_v22  ;;  %1151 = vmatprep.mubr.f32.mxu0 %v3025_v56  ;;  %v1334_v56 = vld [vmem:[%s3712_s1 + $0x6f0] sm:$0xff]  ;;  %v2351_v2 = vpack.c.bf16 %v1317_v8, %v1316_v60 }
  0x89   : > { %1256 = vmatprep.mubr.f32.mxu1 %v3031_v6  ;;  %2346 = vmatprep.subr.bf16.mxu0 %v2345_v23  ;;  %v1335_v6 = vld [vmem:[%s3712_s1 + $0x6f8] sm:$0xff] }
  0x8a   : > { %2378 = vmatprep.subr.bf16.mxu1 %v2377_v30  ;;  %1152 = vmatmul.mubr.f32.gmra.mrb[42].mxu0 %v3035_v13  ;;  %v2383_v13 = vpack.c.bf16 %v1349_v44, %v1348_v37 }
  0x8b   : > { %1257 = vmatmul.mubr.f32.gmra.mrb[42].mxu1 %v3041_v26  ;;  %2348 = vmatpush3.bf16.msra.mxu0 %v2347_v28  ;;  %v1318_v26 = vld [vmem:[%s3712_s1 + $0x670] sm:$0xff] }
  0x8c   : > { %2380 = vmatpush3.bf16.msra.mxu1 %v2379_v32  ;;  %1156 = vmatprep.mubr.f32.mxu0 %v3085_v1  ;;  %v2353_v1 = vpack.c.bf16 %v1335_v6, %v1334_v56  ;;  %v2355_v41 = vpack.c.bf16 %v1319_v9, %v1318_v26 }
  0x8d   : > { %1261 = vmatprep.mubr.f32.mxu1 %v3089_v55  ;;  %2350 = vmatprep.subr.bf16.mxu0 %v2349_v16  ;;  %v249_v55 = vld [vmem:[%s2603_s20 + $0x200] sm:$0xff] }
  0x8e   : > { %2382 = vmatprep.subr.bf16.mxu1 %v2381_v15  ;;  %1157 = vmatmul.mubr.f32.gmra.mrb[44].mxu0 %v3096_v57  ;;  %v1288_v57 = vrot.slane %v249_v55, 1 }
  0x8f   : > { %1262 = vmatmul.mubr.f32.gmra.mrb[44].mxu1 %v3101_v35  ;;  %2352 = vmatpush3.bf16.msra.mxu0 %v2351_v2  ;;  %v1294_v35 = vrot.slane %v251_v17, 1 }
  0x90   : > { %2384 = vmatpush3.bf16.msra.mxu1 %v2383_v13  ;;  %1161 = vmatprep.mubr.f32.mxu0 %v250_v52 }
  0x91   : > { %1266 = vmatprep.mubr.f32.mxu1 %v252_v59  ;;  %2354 = vmatprep.subr.bf16.mxu0 %v2353_v1 }
  0x92   : > { %2386 = vmatprep.subr.bf16.mxu1 %v2385_v11  ;;  %1162 = vmatmul.mubr.f32.gmra.mrb[46].mxu0 %v249_v55 }
  0x93   : > { %1267 = vmatmul.mubr.f32.gmra.mrb[46].mxu1 %v251_v17  ;;  %2356 = vmatpush3.bf16.msra.mxu0 %v2355_v41 }
  0x94   : > { %2388 = vmatpush3.bf16.msra.mxu1 %v2387_v45  ;;  %1432 = vmatprep.mubr.f32.mxu0 %v2768_v27  ;;  %v3736_v27 = vld [vmem:[#allocation2_spill] sm:$0xff] }
  0x95   : > { %1537 = vmatprep.mubr.f32.mxu1 %v2782_v39  ;;  %v3737_v39 = vld [vmem:[#allocation3_spill] sm:$0xff] }
  0x96   : > { %1433 = vmatmul.mubr.f32.vlgmr.msra.gmra.mrb[48].mxu0 %v2794_v47  ;;  %v254_v47 = vld [vmem:[%s2603_s20 + $0x228] sm:$0x1] }
  0x97   : > { %1538 = vmatmul.mubr.f32.vlgmr.msra.gmra.mrb[48].mxu1 %v2809_v53  ;;  %1437 = vmatprep.mubr.f32.mxu0 %v2825_v62  ;;  %v256_v53 = vld [vmem:[%s2603_s20 + $0x238] sm:$0x1]  ;;  %v3738_v62 = vld [vmem:[#allocation4_spill] sm:$0xff] }
  0x98   : > { %1542 = vmatprep.mubr.f32.mxu1 %v2828_v63  ;;  %v3739_v63 = vld [vmem:[#allocation5_spill] sm:$0xff] }
  0x9a   : > { %1438 = vmatmul.mubr.f32.gmra.mrb[50].mxu0 %v2839_v5  ;;  %v1291_v5 = vrot.slane %v250_v52, 1 }
  0x9b   : > { %1543 = vmatmul.mubr.f32.gmra.mrb[50].mxu1 %v2858_v18  ;;  %1442 = vmatprep.mubr.f32.mxu0 %v2870_v29  ;;  %v1297_v18 = vrot.slane %v252_v59, 1  ;;  %v3740_v29 = vld [vmem:[#allocation6_spill] sm:$0xff] }
  0x9c   : > { %1547 = vmatprep.mubr.f32.mxu1 %v2883_v38  ;;  %v3741_v38 = vld [vmem:[#allocation7_spill] sm:$0xff] }
  0x9e   : > { %1443 = vmatmul.mubr.f32.gmra.mrb[52].mxu0 %v2896_v46  ;;  %v1292_v46 = vrot.slane %v254_v47, 1 }
  0x9f   : > { %1548 = vmatmul.mubr.f32.gmra.mrb[52].mxu1 %v2899_v48  ;;  %1447 = vmatprep.mubr.f32.mxu0 %v2926_v10  ;;  %v1298_v48 = vrot.slane %v256_v53, 1  ;;  %v253_v10 = vld [vmem:[%s2603_s20 + $0x220] sm:$0x1] }
  0xa0   : > { %1552 = vmatprep.mubr.f32.mxu1 %v2938_v20  ;;  %v255_v20 = vld [vmem:[%s2603_s20 + $0x230] sm:$0x1]  ;;  %v1289_v50 = vrot.slane %v253_v10, 1  ;;  %v1293_v61 = vsel %vm385_vm0, %v1291_v5, %v1292_v46 }
  0xa1   : > { %v1295_v54 = vrot.slane %v255_v20, 1  ;;  %v1299_v3 = vsel %vm385_vm0, %v1297_v18, %v1298_v48 }
  0xa2   : > { %1448 = vmatmul.mubr.f32.gmra.mrb[54].mxu0 %v2951_v31  ;;  %v3742_v31 = vld [vmem:[#allocation8_spill] sm:$0xff]  ;;  %v1290_v24 = vsel %vm385_vm0, %v1288_v57, %v1289_v50 }
  0xa3   : > { %1553 = vmatmul.mubr.f32.gmra.mrb[54].mxu1 %v2964_v42  ;;  %1452 = vmatprep.mubr.f32.mxu0 %v3736_v27  ;;  %v3743_v42 = vld [vmem:[#allocation9_spill] sm:$0xff]  ;;  %v1296_v22 = vsel %vm385_vm0, %v1294_v35, %v1295_v54 }
  0xa4   : > { %1557 = vmatprep.mubr.f32.mxu1 %v3737_v39 }
  0xa6   : > { %1453 = vmatmul.mubr.f32.gmra.mrb[56].mxu0 %v3738_v62 }
  0xa7   : > { %1558 = vmatmul.mubr.f32.gmra.mrb[56].mxu1 %v3739_v63  ;;  %1457 = vmatprep.mubr.f32.mxu0 %v3740_v29 }
  0xa8   : > { %1562 = vmatprep.mubr.f32.mxu1 %v3741_v38 }
  0xaa   : > { %1458 = vmatmul.mubr.f32.gmra.mrb[58].mxu0 %v3742_v31 }
  0xab   : > { %1563 = vmatmul.mubr.f32.gmra.mrb[58].mxu1 %v3743_v42  ;;  %1462 = vmatprep.mubr.f32.mxu0 %v3744_v58 }
  0xac   : > { %1567 = vmatprep.mubr.f32.mxu1 %v3745_v14 }
  0xae   : > { %1463 = vmatmul.mubr.f32.gmra.mrb[60].mxu0 %v3132_v33 }
  0xaf   : > { %1568 = vmatmul.mubr.f32.gmra.mrb[60].mxu1 %v3145_v49  ;;  %1467 = vmatprep.mubr.f32.mxu0 %v1293_v61 }
  0xb0   : > { %1572 = vmatprep.mubr.f32.mxu1 %v1299_v3 }
  0xb2   : > { %1468 = vmatmul.mubr.f32.gmra.mrb[62].mxu0 %v1290_v24 }
  0xb3   : > { %1573 = vmatmul.mubr.f32.gmra.mrb[62].mxu1 %v1296_v22 }
 0x104   : > { %v1717_v0 = vpop.f32.mrb[0].mxu0 }
 0x105   : > { %v1773_v7 = vpop.f32.mrb[0].mxu1  ;;  %v1718_v4 = vpop.f32.mrb[1].mxu0 }
 0x106   : > { %v1719_v19 = vadd.f32 %v1718_v4, %v1717_v0  ;;  %v1774_v23 = vpop.f32.mrb[1].mxu1 }
 0x107   : > { %v1775_v30 = vadd.f32 %v1774_v23, %v1773_v7 }
 0x108   : > { %v1720_v40 = vpop.f32.mrb[2].mxu0 }
 0x109   : > { %v750_v51 = vadd.f32 %v1775_v30, %v1719_v19  ;;  %v1776_v25 = vpop.f32.mrb[2].mxu1  ;;  %v1721_v33 = vpop.f32.mrb[3].mxu0 }
 0x10a   : > { %v1722_v34 = vadd.f32 %v1721_v33, %v1720_v40  ;;  %v1777_v49 = vpop.f32.mrb[3].mxu1 }
 0x10b   : > { %v1778_v28 = vadd.f32 %v1777_v49, %v1776_v25 }
 0x10c   : > { %v1723_v32 = vpop.f32.mrb[4].mxu0 }
 0x10d   : > { %v755_v60 = vadd.f32 %v1778_v28, %v1722_v34  ;;  %v1779_v8 = vpop.f32.mrb[4].mxu1  ;;  %v1724_v37 = vpop.f32.mrb[5].mxu0 }
 0x10e   : > { %v1725_v44 = vadd.f32 %v1724_v37, %v1723_v32  ;;  %v1780_v16 = vpop.f32.mrb[5].mxu1 }
 0x10f   : > { %v1781_v15 = vadd.f32 %v1780_v16, %v1779_v8 }
 0x110   : > { %v1726_v56 = vpop.f32.mrb[6].mxu0 }
 0x111   : > { %v760_v6 = vadd.f32 %v1781_v15, %v1725_v44  ;;  %v1782_v12 = vpop.f32.mrb[6].mxu1  ;;  %v1727_v43 = vpop.f32.mrb[7].mxu0 }
 0x112   : > { %v1728_v2 = vadd.f32 %v1727_v43, %v1726_v56  ;;  %v1783_v13 = vpop.f32.mrb[7].mxu1 }
 0x113   : > { %v1784_v26 = vadd.f32 %v1783_v13, %v1782_v12 }
 0x114   : > { %v1729_v9 = vpop.f32.mrb[8].mxu0 }
 0x115   : > { %v765_v21 = vadd.f32 %v1784_v26, %v1728_v2  ;;  %v1785_v36 = vpop.f32.mrb[8].mxu1  ;;  %v1730_v52 = vpop.f32.mrb[9].mxu0 }
 0x116   : > { %v1731_v59 = vadd.f32 %v1730_v52, %v1729_v9  ;;  %v1786_v1 = vpop.f32.mrb[9].mxu1 }
 0x117   : > { %v1787_v11 = vadd.f32 %v1786_v1, %v1785_v36 }
 0x118   : > { %v1732_v55 = vpop.f32.mrb[10].mxu0 }
 0x119   : > { %v770_v17 = vadd.f32 %v1787_v11, %v1731_v59  ;;  %v1788_v41 = vpop.f32.mrb[10].mxu1  ;;  %v1733_v45 = vpop.f32.mrb[11].mxu0 }
 0x11a   : > { %v1734_v27 = vadd.f32 %v1733_v45, %v1732_v55  ;;  %v1789_v39 = vpop.f32.mrb[11].mxu1 }
 0x11b   : > { %v1790_v47 = vadd.f32 %v1789_v39, %v1788_v41 }
 0x11d   : > { %v775_v53 = vadd.f32 %v1790_v47, %v1734_v27  ;;  %v1735_v62 = vpop.f32.mrb[12].mxu0 }
 0x11e   : > { %v1791_v63 = vpop.f32.mrb[12].mxu1  ;;  %v1736_v5 = vpop.f32.mrb[13].mxu0 }
 0x11f   : > { %v1737_v18 = vadd.f32 %v1736_v5, %v1735_v62  ;;  %v1792_v29 = vpop.f32.mrb[13].mxu1 }
 0x120   : > { %v1793_v38 = vadd.f32 %v1792_v29, %v1791_v63 }
 0x122   : > { %v780_v46 = vadd.f32 %v1793_v38, %v1737_v18 }
 0x124   : > { %v1738_v48 = vpop.f32.mrb[14].mxu0 }
 0x125   : > { %v1794_v10 = vpop.f32.mrb[14].mxu1  ;;  %v1739_v20 = vpop.f32.mrb[15].mxu0 }
 0x126   : > { %v1740_v31 = vadd.f32 %v1739_v20, %v1738_v48  ;;  %v1795_v42 = vpop.f32.mrb[15].mxu1 }
 0x127   : > { %v1796_v57 = vadd.f32 %v1795_v42, %v1794_v10 }
 0x129   : > { %v3629_v35 = vadd.f32 %v1796_v57, %v1740_v31  ;;  %v1829_v58 = vpop.f32.mrb[16].mxu0 }
 0x12a   : > { %v1885_v14 = vpop.f32.mrb[16].mxu1  ;;  %v1830_v50 = vpop.f32.mrb[17].mxu0 }
 0x12b   : > { %v1886_v54 = vpop.f32.mrb[17].mxu1  ;;  %v1831_v61 = vadd.f32 %v1830_v50, %v1829_v58 }
 0x12c   : > { %v1887_v3 = vadd.f32 %v1886_v54, %v1885_v14 }
 0x12d   : > { %v855_v24 = vadd.f32 %v1831_v61, %v750_v51  ;;  %v1832_v22 = vpop.f32.mrb[18].mxu0 }
 0x12e   : > { %v1888_v0 = vpop.f32.mrb[18].mxu1  ;;  %v1833_v7 = vpop.f32.mrb[19].mxu0 }
 0x12f   : > { %v1889_v4 = vpop.f32.mrb[19].mxu1  ;;  %v3631_v19 = vadd.f32 %v1887_v3, %v855_v24  ;;  %v1834_v23 = vadd.f32 %v1833_v7, %v1832_v22 }
 0x130   : > { %v1890_v30 = vadd.f32 %v1889_v4, %v1888_v0 }
 0x131   : > { %v860_v40 = vadd.f32 %v1834_v23, %v755_v60  ;;  %v1835_v25 = vpop.f32.mrb[20].mxu0 }
 0x132   : > { %v1891_v33 = vpop.f32.mrb[20].mxu1  ;;  %v1836_v34 = vpop.f32.mrb[21].mxu0 }
 0x133   : > { %v1892_v49 = vpop.f32.mrb[21].mxu1  ;;  %v3633_v28 = vadd.f32 %v1890_v30, %v860_v40  ;;  %v1837_v32 = vadd.f32 %v1836_v34, %v1835_v25 }
 0x134   : > { %v1893_v8 = vadd.f32 %v1892_v49, %v1891_v33 }
 0x135   : > { %v865_v37 = vadd.f32 %v1837_v32, %v760_v6  ;;  %v1838_v44 = vpop.f32.mrb[22].mxu0 }
 0x136   : > { %v1894_v51 = vpop.f32.mrb[22].mxu1  ;;  %v1839_v16 = vpop.f32.mrb[23].mxu0 }
 0x137   : > { %v1895_v15 = vpop.f32.mrb[23].mxu1  ;;  %v3635_v56 = vadd.f32 %v1893_v8, %v865_v37  ;;  %v1840_v12 = vadd.f32 %v1839_v16, %v1838_v44 }
 0x138   : > { %v1896_v43 = vadd.f32 %v1895_v15, %v1894_v51 }
 0x139   : > { %v870_v2 = vadd.f32 %v1840_v12, %v765_v21  ;;  %v1841_v13 = vpop.f32.mrb[24].mxu0 }
 0x13a   : > { %v1897_v60 = vpop.f32.mrb[24].mxu1  ;;  %v1842_v26 = vpop.f32.mrb[25].mxu0 }
 0x13b   : > { %v1898_v9 = vpop.f32.mrb[25].mxu1  ;;  %v3637_v36 = vadd.f32 %v1896_v43, %v870_v2  ;;  %v1843_v52 = vadd.f32 %v1842_v26, %v1841_v13 }
 0x13c   : > { %v1899_v59 = vadd.f32 %v1898_v9, %v1897_v60 }
 0x13d   : > { %v875_v1 = vadd.f32 %v1843_v52, %v770_v17  ;;  %v1844_v11 = vpop.f32.mrb[26].mxu0 }
 0x13e   : > { %v1900_v6 = vpop.f32.mrb[26].mxu1  ;;  %v1845_v55 = vpop.f32.mrb[27].mxu0 }
 0x13f   : > { %v1901_v41 = vpop.f32.mrb[27].mxu1  ;;  %v3639_v45 = vadd.f32 %v1899_v59, %v875_v1  ;;  %v1846_v27 = vadd.f32 %v1845_v55, %v1844_v11 }
 0x140   : > { %v1902_v39 = vadd.f32 %v1901_v41, %v1900_v6 }
 0x141   : > { %v880_v47 = vadd.f32 %v1846_v27, %v775_v53  ;;  %v1847_v62 = vpop.f32.mrb[28].mxu0 }
 0x142   : > { %v1903_v21 = vpop.f32.mrb[28].mxu1  ;;  %v1848_v63 = vpop.f32.mrb[29].mxu0 }
 0x143   : > { %v1904_v5 = vpop.f32.mrb[29].mxu1  ;;  %v3641_v18 = vadd.f32 %v1902_v39, %v880_v47  ;;  %v1849_v29 = vadd.f32 %v1848_v63, %v1847_v62 }
 0x144   : > { %v1905_v38 = vadd.f32 %v1904_v5, %v1903_v21 }
 0x145   : > { %v885_v48 = vadd.f32 %v1849_v29, %v780_v46  ;;  %v1850_v10 = vpop.f32.mrb[30].mxu0 }
 0x146   : > { %v1906_v17 = vpop.f32.mrb[30].mxu1  ;;  %v1851_v20 = vpop.f32.mrb[31].mxu0 }
 0x147   : > { %v1907_v31 = vpop.f32.mrb[31].mxu1  ;;  %v3643_v42 = vadd.f32 %v1905_v38, %v885_v48  ;;  %v1852_v57 = vadd.f32 %v1851_v20, %v1850_v10 }
 0x148   : > { %v1908_v58 = vadd.f32 %v1907_v31, %v1906_v17 }
 0x149   : > { %v890_v14 = vadd.f32 %v1852_v57, %v3629_v35  ;;  %v1941_v53 = vpop.f32.mrb[32].mxu0 }
 0x14a   : > { %v1997_v50 = vpop.f32.mrb[32].mxu1  ;;  %v1942_v54 = vpop.f32.mrb[33].mxu0 }
 0x14b   : > { %v1998_v61 = vpop.f32.mrb[33].mxu1  ;;  %v3646_v3 = vadd.f32 %v1908_v58, %v890_v14  ;;  %v1943_v24 = vadd.f32 %v1942_v54, %v1941_v53 }
 0x14c   : > { %v1999_v22 = vadd.f32 %v1998_v61, %v1997_v50 }
 0x14d   : > { %v1944_v46 = vpop.f32.mrb[34].mxu0 }
 0x14e   : > { %v1234_v0 = vadd.f32 %v1999_v22, %v1943_v24  ;;  %v2000_v7 = vpop.f32.mrb[34].mxu1  ;;  %v1945_v4 = vpop.f32.mrb[35].mxu0 }
 0x14f   : > { %v2001_v23 = vpop.f32.mrb[35].mxu1  ;;  %v1946_v40 = vadd.f32 %v1945_v4, %v1944_v46 }
 0x150   : > { %v3649_v30 = vadd.f32 %v1234_v0, %v3631_v19  ;;  %v2002_v25 = vadd.f32 %v2001_v23, %v2000_v7  ;;  %v3677_v23 = vld [vmem:[%s179_s25] ss:$0 sm:$0xff] }
 0x151   : > { %v1947_v35 = vpop.f32.mrb[36].mxu0 }
 0x152   : > { %v1239_v33 = vadd.f32 %v2002_v25, %v1946_v40  ;;  %v2003_v34 = vpop.f32.mrb[36].mxu1  ;;  %v1948_v49 = vpop.f32.mrb[37].mxu0 }
 0x153   : > { %v2004_v32 = vpop.f32.mrb[37].mxu1  ;;  %v1949_v37 = vadd.f32 %v1948_v49, %v1947_v35 }
 0x154   : > { %v3652_v8 = vadd.f32 %v1239_v33, %v3633_v28  ;;  %v2005_v44 = vadd.f32 %v2004_v32, %v2003_v34 }
 0x155   : > { %v1950_v16 = vpop.f32.mrb[38].mxu0 }
 0x156   : > { %v1244_v51 = vadd.f32 %v2005_v44, %v1949_v37  ;;  %v2006_v15 = vpop.f32.mrb[38].mxu1  ;;  %v1951_v12 = vpop.f32.mrb[39].mxu0 }
 0x157   : > { %v2007_v43 = vpop.f32.mrb[39].mxu1  ;;  %v1952_v2 = vadd.f32 %v1951_v12, %v1950_v16 }
 0x158   : > { %v3655_v19 = vadd.f32 %v1244_v51, %v3635_v56  ;;  %v2008_v13 = vadd.f32 %v2007_v43, %v2006_v15 }
 0x159   : > { %v1953_v26 = vpop.f32.mrb[40].mxu0 }
 0x15a   : > { %v1249_v60 = vadd.f32 %v2008_v13, %v1952_v2  ;;  %v2009_v9 = vpop.f32.mrb[40].mxu1  ;;  %v1954_v52 = vpop.f32.mrb[41].mxu0 }
 0x15b   : > { %v2010_v59 = vpop.f32.mrb[41].mxu1  ;;  %v1955_v1 = vadd.f32 %v1954_v52, %v1953_v26 }
 0x15c   : > { %v3658_v28 = vadd.f32 %v1249_v60, %v3637_v36  ;;  %v2011_v11 = vadd.f32 %v2010_v59, %v2009_v9 }
 0x15d   : > { %v1956_v55 = vpop.f32.mrb[42].mxu0 }
 0x15e   : > { %v1254_v6 = vadd.f32 %v2011_v11, %v1955_v1  ;;  %v2012_v41 = vpop.f32.mrb[42].mxu1  ;;  %v1957_v27 = vpop.f32.mrb[43].mxu0 }
 0x15f   : > { %v2013_v39 = vpop.f32.mrb[43].mxu1  ;;  %v1958_v47 = vadd.f32 %v1957_v27, %v1956_v55 }
 0x160   : > { %v3661_v56 = vadd.f32 %v1254_v6, %v3639_v45  ;;  %v2014_v62 = vadd.f32 %v2013_v39, %v2012_v41 }
 0x161   : > { %v1959_v63 = vpop.f32.mrb[44].mxu0 }
 0x162   : > { %v1259_v21 = vadd.f32 %v2014_v62, %v1958_v47  ;;  %v2015_v5 = vpop.f32.mrb[44].mxu1  ;;  %v1960_v29 = vpop.f32.mrb[45].mxu0 }
 0x163   : > { %v2016_v38 = vpop.f32.mrb[45].mxu1  ;;  %v1961_v48 = vadd.f32 %v1960_v29, %v1959_v63 }
 0x164   : > { %v3664_v36 = vadd.f32 %v1259_v21, %v3641_v18  ;;  %v2017_v10 = vadd.f32 %v2016_v38, %v2015_v5 }
 0x165   : > { %v1962_v20 = vpop.f32.mrb[46].mxu0 }
 0x166   : > { %v1264_v17 = vadd.f32 %v2017_v10, %v1961_v48  ;;  %v2018_v31 = vpop.f32.mrb[46].mxu1  ;;  %v1963_v57 = vpop.f32.mrb[47].mxu0 }
 0x167   : > { %v2019_v45 = vpop.f32.mrb[47].mxu1  ;;  %v1964_v14 = vadd.f32 %v1963_v57, %v1962_v20 }
 0x168   : > { %v3667_v58 = vadd.f32 %v1264_v17, %v3643_v42  ;;  %v2020_v53 = vadd.f32 %v2019_v45, %v2018_v31 }
 0x169   : > { %v2053_v54 = vpop.f32.mrb[48].mxu0 }
 0x16a   : > { %v1269_v50 = vadd.f32 %v2020_v53, %v1964_v14  ;;  %v2109_v61 = vpop.f32.mrb[48].mxu1  ;;  %v2054_v24 = vpop.f32.mrb[49].mxu0 }
 0x16b   : > { %v2110_v18 = vpop.f32.mrb[49].mxu1  ;;  %v2055_v0 = vadd.f32 %v2054_v24, %v2053_v54 }
 0x16c   : > { %v3670_v22 = vadd.f32 %v1269_v50, %v3646_v3  ;;  %v2111_v46 = vadd.f32 %v2110_v18, %v2109_v61 }
 0x16d   : > { %v2056_v42 = vpop.f32.mrb[50].mxu0 }
 0x16e   : > { %v1540_v7 = vadd.f32 %v2111_v46, %v2055_v0  ;;  %v2112_v4 = vpop.f32.mrb[50].mxu1  ;;  %v2057_v40 = vpop.f32.mrb[51].mxu0 }
 0x16f   : > { %v2113_v25 = vpop.f32.mrb[51].mxu1  ;;  %v2058_v35 = vadd.f32 %v2057_v40, %v2056_v42 }
 0x170   : > { %v1578_v33 = vadd.f32 %v1540_v7, %v3649_v30  ;;  %v2114_v34 = vadd.f32 %v2113_v25, %v2112_v4 }
 0x171   : > { %v2059_v32 = vpop.f32.mrb[52].mxu0 }
 0x172   : > { %v1593_v3 = vadd.f32 %v3677_v23, %v1578_v33  ;;  %v1545_v49 = vadd.f32 %v2114_v34, %v2058_v35  ;;  %v2115_v37 = vpop.f32.mrb[52].mxu1  ;;  %v2060_v44 = vpop.f32.mrb[53].mxu0 }
 0x173   : > { %v2116_v51 = vpop.f32.mrb[53].mxu1  ;;  %v2061_v30 = vadd.f32 %v2060_v44, %v2059_v32 }
 0x174   : > { %1601 = vst [vmem:[%s3683_s29] sm:$0xff] %v1593_v3  ;;  %v1579_v16 = vadd.f32 %v1545_v49, %v3652_v8  ;;  %v2117_v15 = vadd.f32 %v2116_v51, %v2115_v37 }
 0x175   : > { %v2062_v2 = vpop.f32.mrb[54].mxu0 }
 0x176   : > { %v1594_v12 = vadd.f32 %v3677_v23, %v1579_v16  ;;  %v1550_v43 = vadd.f32 %v2117_v15, %v2061_v30  ;;  %v2118_v13 = vpop.f32.mrb[54].mxu1  ;;  %v2063_v60 = vpop.f32.mrb[55].mxu0 }
 0x177   : > { %v2119_v26 = vpop.f32.mrb[55].mxu1  ;;  %v2064_v52 = vadd.f32 %v2063_v60, %v2062_v2 }
 0x178   : > { %1602 = vst [vmem:[%s3683_s29 + $0x8] sm:$0xff] %v1594_v12  ;;  %v1580_v9 = vadd.f32 %v1550_v43, %v3655_v19  ;;  %v2120_v59 = vadd.f32 %v2119_v26, %v2118_v13 }
 0x179   : > { %v2065_v8 = vpop.f32.mrb[56].mxu0 }
 0x17a   : > { %v1595_v1 = vadd.f32 %v3677_v23, %v1580_v9  ;;  %v1555_v11 = vadd.f32 %v2120_v59, %v2064_v52  ;;  %v2121_v6 = vpop.f32.mrb[56].mxu1  ;;  %v2066_v55 = vpop.f32.mrb[57].mxu0 }
 0x17b   : > { %v2122_v41 = vpop.f32.mrb[57].mxu1  ;;  %v2067_v39 = vadd.f32 %v2066_v55, %v2065_v8 }
 0x17c   : > { %1603 = vst [vmem:[%s3683_s29 + $0x10] sm:$0xff] %v1595_v1  ;;  %v1581_v27 = vadd.f32 %v1555_v11, %v3658_v28  ;;  %v2123_v47 = vadd.f32 %v2122_v41, %v2121_v6 }
 0x17d   : > { %v2068_v19 = vpop.f32.mrb[58].mxu0 }
 0x17e   : > { %v1596_v62 = vadd.f32 %v3677_v23, %v1581_v27  ;;  %v1560_v21 = vadd.f32 %v2123_v47, %v2067_v39  ;;  %v2124_v63 = vpop.f32.mrb[58].mxu1  ;;  %v2069_v5 = vpop.f32.mrb[59].mxu0 }
 0x17f   : > { %v2125_v29 = vpop.f32.mrb[59].mxu1  ;;  %v2070_v48 = vadd.f32 %v2069_v5, %v2068_v19 }
 0x180   : > { %1604 = vst [vmem:[%s3683_s29 + $0x18] sm:$0xff] %v1596_v62  ;;  %v1582_v38 = vadd.f32 %v1560_v21, %v3661_v56  ;;  %v2126_v10 = vadd.f32 %v2125_v29, %v2124_v63 }
 0x181   : > { %v2071_v28 = vpop.f32.mrb[60].mxu0 }
 0x182   : > { %v1597_v17 = vadd.f32 %v3677_v23, %v1582_v38  ;;  %v1565_v20 = vadd.f32 %v2126_v10, %v2070_v48  ;;  %v2127_v31 = vpop.f32.mrb[60].mxu1  ;;  %v2072_v57 = vpop.f32.mrb[61].mxu0 }
 0x183   : > { %v2128_v45 = vpop.f32.mrb[61].mxu1  ;;  %v2073_v53 = vadd.f32 %v2072_v57, %v2071_v28 }
 0x184   : > { %1605 = vst [vmem:[%s3683_s29 + $0x20] sm:$0xff] %v1597_v17  ;;  %v1583_v14 = vadd.f32 %v1565_v20, %v3664_v36  ;;  %v2129_v50 = vadd.f32 %v2128_v45, %v2127_v31 }
 0x185   : > { %v2074_v61 = vpop.f32.mrb[62].mxu0 }
 0x186   : > { %v1598_v54 = vadd.f32 %v3677_v23, %v1583_v14  ;;  %v1570_v56 = vadd.f32 %v2129_v50, %v2073_v53  ;;  %v2130_v24 = vpop.f32.mrb[62].mxu1  ;;  %v2075_v18 = vpop.f32.mrb[63].mxu0 }
 0x187   : > { %v2131_v0 = vpop.f32.mrb[63].mxu1  ;;  %v2076_v7 = vadd.f32 %v2075_v18, %v2074_v61 }
 0x188   : > { %1606 = vst [vmem:[%s3683_s29 + $0x28] sm:$0xff] %v1598_v54  ;;  %v1584_v46 = vadd.f32 %v1570_v56, %v3667_v58  ;;  %v2132_v42 = vadd.f32 %v2131_v0, %v2130_v24 }
 0x18a   : > { %v1599_v4 = vadd.f32 %v3677_v23, %v1584_v46  ;;  %v1575_v40 = vadd.f32 %v2132_v42, %v2076_v7 }
 0x18c   : > { %1607 = vst [vmem:[%s3683_s29 + $0x30] sm:$0xff] %v1599_v4  ;;  %v1585_v36 = vadd.f32 %v1575_v40, %v3670_v22 }
 0x18e   : > { %v1600_v25 = vadd.f32 %v3677_v23, %v1585_v36 }
 0x190   : > { %1608 = vst [vmem:[%s3683_s29 + $0x38] sm:$0xff] %v1600_v25 }
 0x191 PF: > { %s13_s12 = sadd.s32 1, %s2404_s12  }
 0x192   : > { %p10_p4 = scmp.ge.s32.totalorder %s13_s12, 4  }
 0x194   :  { %12 = sbr.rel (!%p10_p4) target bundleno = 1 (0x1), region = 65 }

// kernel: _forward.3
= control target key start
LH: loop header
LB: loop body
LE: loop exit
PB: predicated region body
PF: predicated region fallthrough
CT: control target
= control target key end

     0   :  { %s3256_s18 = smov 0   ;;  %s5126_s0 = inlined_call_operand.vmem [shape: f32[2,16,16,128], index: 0, kind: input, shape index: {}]   ;;  %s5127_s1 = inlined_call_operand.vmem [shape: f32[2,1,128], index: 1, kind: input, shape index: {}]   ;;  %s5128_s2 = inlined_call_operand.vmem [shape: f32[1152,128], index: 2, kind: input, shape index: {}]   ;;  %s5129_s3 = inlined_call_operand.vmem [shape: f32[2,1,128], index: 3, kind: input, shape index: {}]   ;;  %s5130_s4 = inlined_call_operand.vmem [shape: f32[2,256,128], index: 4, kind: output, shape index: {0}]   ;;  %s5131_s5 = inlined_call_operand.vmem [shape: f32[2,2,128], index: 5, kind: output, shape index: {1}]  }
   0x1 LB: > { %s2569_s19 = sadd.s32 4294967295, %s3223_s18   ;;  %p2573_p0 = scmp.ge.s32.totalorder %s3223_s18, 1  ;;  %s3223_s18 = sphi %s3256_s18, %s16_s18  }
   0x2   : > { %p206_p1 = scmp.lt.s32.totalorder %s3223_s18, 3 }
   0x4   : > { %p207_p2 = pnand %p2573_p0, %p206_p1 }
   0x6   : > { %210 = sbr.rel (%p207_p2) target bundleno = 604 (0x25c), region = 36 }
   0xd   : > { %v776_v0 = vld [vmem:[%s5128_s2 + $0x180] sm:$0xff]  ;;  %v777_v1 = vld [vmem:[%s5128_s2 + $0x188] sm:$0xff]  ;;  %p244_p3 = scmp.lt.s32.totalorder %s2569_s19, 1  ;;  %v5133_v3 = vmov 0.0|0.0   ;;  %v778_v6 = vld [vmem:[%s5128_s2 + $0x190] sm:$0xff]  ;;  %vm329_vm0 = vcmask 1040384   ;;  %v427_v26 = vlaneseq }
   0xe   : > { %v808_v2 = vld [vmem:[%s5128_s2 + $0x280] sm:$0xff]  ;;  %2968 = vmatprep.subr.bf16.mxu0 %v5133_v3  ;;  %v2969_v4 = vpack.c.bf16 %v777_v1, %v776_v0  ;;  %v809_v5 = vld [vmem:[%s5128_s2 + $0x288] sm:$0xff]  ;;  %v779_v7 = vld [vmem:[%s5128_s2 + $0x198] sm:$0xff]  ;;  %vm603_vm1 = vcmask 1045504   ;;  %vm494_vm2 = vcmask 1046528  }
   0xf   : > { %v3016_v8 = vpack.c.bf16 %v809_v5, %v808_v2  ;;  %v810_v9 = vld [vmem:[%s5128_s2 + $0x290] sm:$0xff]  ;;  %v811_v10 = vld [vmem:[%s5128_s2 + $0x298] sm:$0xff]  ;;  %s5407_s19 = smov (!%p244_p3, %s2569_s19), 1  ;;  %v2972_v11 = vpack.c.bf16 %v779_v7, %v778_v6  ;;  %v812_v13 = vld [vmem:[%s5128_s2 + $0x2a0] sm:$0xff]  ;;  %v428_v38 = vshrl.u32 %v427_v26, 7 }
  0x10   : > { %2970 = vmatpush1.bf16.msra.mxu0 %v2969_v4  ;;  %v3020_v12 = vpack.c.bf16 %v811_v10, %v810_v9  ;;  %v813_v14 = vld [vmem:[%s5128_s2 + $0x2a8] sm:$0xff]  ;;  %v780_v15 = vld [vmem:[%s5128_s2 + $0x1a0] sm:$0xff]  ;;  %s2582_s21 = sshll.u32 %s5407_s19, 8  ;;  %v814_v19 = vld [vmem:[%s5128_s2 + $0x2b0] sm:$0xff]  ;;  %s251_s10 = scalar_lea.vmem %s5127_s1, %s5407_s19 }
  0x11   : > { %3017 = vmatprep.subr.bf16.mxu1 %v3016_v8  ;;  %2971 = vmatprep.subr.bf16.mxu0 %v5133_v3  ;;  %v781_v16 = vld [vmem:[%s5128_s2 + $0x1a8] sm:$0xff]  ;;  %v3024_v17 = vpack.c.bf16 %v813_v14, %v812_v13  ;;  %v815_v20 = vld [vmem:[%s5128_s2 + $0x2b8] sm:$0xff]  ;;  %s3316_s28 = scalar_lea.vmem %s5126_s0, %s2582_s21  ;;  %v782_v21 = vld [vmem:[%s5128_s2 + $0x1b0] sm:$0xff]  ;;  %v429_v48 = vsub.s32 0, %v428_v38  ;;  %s5004_s12 = scalar_lea.vmem %s5130_s4, %s2582_s21 }
  0x12   : > { %3019 = vmatpush3.bf16.msra.mxu1 %v3016_v8  ;;  %v2975_v18 = vpack.c.bf16 %v781_v16, %v780_v15  ;;  %v783_v22 = vld [vmem:[%s5128_s2 + $0x1b8] sm:$0xff]  ;;  %v3028_v23 = vpack.c.bf16 %v815_v20, %v814_v19  ;;  %v816_v24 = vld [vmem:[%s5128_s2 + $0x2c0] sm:$0xff]  ;;  %v817_v28 = vld [vmem:[%s5128_s2 + $0x2c8] sm:$0xff]  ;;  %s2578_s21 = sshll.u32 %s5407_s19, 1 }
  0x13   : > { %3021 = vmatprep.subr.bf16.mxu1 %v3020_v12  ;;  %v264_v25 = vld [vmem:[%s3316_s28] sm:$0xff]  ;;  %v2978_v27 = vpack.c.bf16 %v783_v22, %v782_v21  ;;  %v265_v29 = vld [vmem:[%s3316_s28 + $0x8] sm:$0xff]  ;;  %v3032_v36 = vpack.c.bf16 %v817_v28, %v816_v24  ;;  %v818_v41 = vld [vmem:[%s5128_s2 + $0x2d0] sm:$0xff]  ;;  %s263_s15 = scalar_lea.vmem %s5131_s5, %s2578_s21 }
  0x14   : > { %2973 = vmatpush1.bf16.msra.mxu0 %v2972_v11  ;;  %v3337_v30 = vld [vmem:[%s251_s10] sm:$0x1]  ;;  %v330_v31 = vrot.slane %v264_v25, 7  ;;  %v785_v33 = vld [vmem:[%s5128_s2 + $0x1c8] sm:$0xff]  ;;  %v331_v34 = vrot.slane %v265_v29, 7  ;;  %v819_v42 = vld [vmem:[%s5128_s2 + $0x2d8] sm:$0xff] }
  0x15   : > { %2974 = vmatprep.subr.bf16.mxu0 %v5133_v3  ;;  %v784_v32 = vld [vmem:[%s5128_s2 + $0x1c0] sm:$0xff]  ;;  %v786_v44 = vld [vmem:[%s5128_s2 + $0x1d0] sm:$0xff]  ;;  %v787_v45 = vld [vmem:[%s5128_s2 + $0x1d8] sm:$0xff]  ;;  %v3036_v47 = vpack.c.bf16 %v819_v42, %v818_v41  ;;  %v3396_v59 = vrot.slane %v3337_v30, %v429_v48 }
  0x16   : > { %3023 = vmatpush3.bf16.msra.mxu1 %v3020_v12  ;;  %v3348_v35 = vsel %vm329_vm0, %v3337_v30, %v330_v31  ;;  %v3351_v37 = vsel %vm329_vm0, %v330_v31, %v331_v34  ;;  %v2981_v40 = vpack.c.bf16 %v785_v33, %v784_v32  ;;  %v2984_v49 = vpack.c.bf16 %v787_v45, %v786_v44  ;;  %v820_v50 = vld [vmem:[%s5128_s2 + $0x2e0] sm:$0xff]  ;;  %v821_v51 = vld [vmem:[%s5128_s2 + $0x2e8] sm:$0xff]  ;;  %v266_v52 = vld [vmem:[%s3316_s28 + $0x10] sm:$0xff] }
  0x17   : > { %3025 = vmatprep.subr.bf16.mxu1 %v3024_v17  ;;  %5246 = vst [vmem:[#allocation2_spill] sm:$0xff] %v3348_v35  ;;  %v606_v39 = vrot.slane %v3348_v35, 2  ;;  %v607_v43 = vrot.slane %v3351_v37, 2  ;;  %v788_v53 = vld [vmem:[%s5128_s2 + $0x1e0] sm:$0xff]  ;;  %v789_v54 = vld [vmem:[%s5128_s2 + $0x1e8] sm:$0xff]  ;;  %v267_v55 = vld [vmem:[%s3316_s28 + $0x18] sm:$0xff]  ;;  %v3040_v56 = vpack.c.bf16 %v821_v51, %v820_v50  ;;  %v3409_v5 = vsel %vm329_vm0, %v331_v34, %v3396_v59 }
  0x18   : > { %2976 = vmatpush1.bf16.msra.mxu0 %v2975_v18  ;;  %v822_v57 = vld [vmem:[%s5128_s2 + $0x2f0] sm:$0xff]  ;;  %v823_v58 = vld [vmem:[%s5128_s2 + $0x2f8] sm:$0xff]  ;;  %5248 = vst [vmem:[#allocation4_spill] sm:$0xff] %v3396_v59  ;;  %v333_v60 = vrot.slane %v266_v52, 7  ;;  %v2987_v61 = vpack.c.bf16 %v789_v54, %v788_v53  ;;  %v334_v62 = vrot.slane %v267_v55, 7  ;;  %v268_v63 = vld [vmem:[%s3316_s28 + $0x20] sm:$0xff] }
  0x19   : > { %2977 = vmatprep.subr.bf16.mxu0 %v5133_v3  ;;  %v3371_v46 = vsel %vm603_vm1, %v606_v39, %v607_v43  ;;  %v269_v0 = vld [vmem:[%s3316_s28 + $0x28] sm:$0xff]  ;;  %v790_v1 = vld [vmem:[%s5128_s2 + $0x1f0] sm:$0xff]  ;;  %v791_v2 = vld [vmem:[%s5128_s2 + $0x1f8] sm:$0xff]  ;;  %v3044_v4 = vpack.c.bf16 %v823_v58, %v822_v57  ;;  %v336_v7 = vrot.slane %v268_v63, 7  ;;  %v609_v15 = vrot.slane %v3409_v5, 2 }
  0x1a   : > { %3027 = vmatpush3.bf16.msra.mxu1 %v3024_v17  ;;  %5247 = vst [vmem:[#allocation3_spill] sm:$0xff] %v3371_v46  ;;  %2760 = vmatprep.mubr.f32.mxu1 %v3371_v46  ;;  %v3413_v6 = vsel %vm329_vm0, %v3337_v30, %v333_v60  ;;  %v337_v8 = vrot.slane %v269_v0, 7  ;;  %v2990_v9 = vpack.c.bf16 %v791_v2, %v790_v1  ;;  %v270_v11 = vld [vmem:[%s3316_s28 + $0x30] sm:$0xff]  ;;  %v792_v12 = vld [vmem:[%s5128_s2 + $0x200] sm:$0xff]  ;;  %v793_v13 = vld [vmem:[%s5128_s2 + $0x208] sm:$0xff]  ;;  %v497_v33 = vrot.slane %v3348_v35, 1 }
  0x1b   : > { %3029 = vmatprep.subr.bf16.mxu1 %v3028_v23  ;;  %v3416_v10 = vsel %vm329_vm0, %v333_v60, %v334_v62  ;;  %v271_v14 = vld [vmem:[%s3316_s28 + $0x38] sm:$0xff]  ;;  %v712_v16 = vld [vmem:[%s5128_s2] sm:$0xff]  ;;  %v713_v17 = vld [vmem:[%s5128_s2 + $0x8] sm:$0xff]  ;;  %v611_v18 = vrot.slane %v3413_v6, 2  ;;  %v3437_v19 = vsel %vm329_vm0, %v334_v62, %v3396_v59  ;;  %v3445_v22 = vsel %vm329_vm0, %v3337_v30, %v336_v7 }
  0x1c   : > { %2979 = vmatpush1.bf16.msra.mxu0 %v2978_v27  ;;  %v612_v20 = vrot.slane %v3416_v10, 2  ;;  %v3441_v21 = vsel %vm329_vm0, %v336_v7, %v337_v8  ;;  %v2993_v24 = vpack.c.bf16 %v793_v13, %v792_v12  ;;  %v340_v25 = vrot.slane %v271_v14, 7  ;;  %v272_v26 = vld [vmem:[%s3316_s28 + $0x40] sm:$0xff]  ;;  %v3449_v27 = vld [vmem:[%s3316_s28 + $0x48] sm:$0xff]  ;;  %v794_v29 = vld [vmem:[%s5128_s2 + $0x210] sm:$0xff] }
  0x1d   : > { %2980 = vmatprep.subr.bf16.mxu0 %v5133_v3  ;;  %v3049_v28 = vpack.c.bf16 %v713_v17, %v712_v16  ;;  %v795_v31 = vld [vmem:[%s5128_s2 + $0x218] sm:$0xff]  ;;  %v614_v32 = vrot.slane %v3437_v19, 2  ;;  %v3463_v34 = vsel %vm603_vm1, %v607_v43, %v609_v15  ;;  %v616_v39 = vrot.slane %v3445_v22, 2  ;;  %v3484_v43 = vld [vmem:[%s5128_s2 + $0x220] sm:$0xff]  ;;  %v3489_v44 = vld [vmem:[%s5128_s2 + $0x228] sm:$0xff] }
  0x1e   : > { %3031 = vmatpush3.bf16.msra.mxu1 %v3028_v23  ;;  %v339_v23 = vrot.slane %v270_v11, 7  ;;  %5249 = vst [vmem:[#allocation5_spill] sm:$0xff] %v3463_v34  ;;  %v715_v38 = vld [vmem:[%s5128_s2 + $0x18] sm:$0xff]  ;;  %v3475_v41 = vsel %vm329_vm0, %v337_v8, %v3396_v59  ;;  %v3479_v42 = vsel %vm603_vm1, %v611_v18, %v612_v20  ;;  %v343_v48 = vrot.slane %v3449_v27, 7  ;;  %v3499_v50 = vld [vmem:[%s5128_s2 + $0x20] sm:$0xff]  ;;  %v3504_v51 = vld [vmem:[%s5128_s2 + $0x28] sm:$0xff] }
  0x1f   : > { %3033 = vmatprep.subr.bf16.mxu1 %v3032_v36  ;;  %5250 = vst [vmem:[#allocation6_spill] sm:$0xff] %v3479_v42  ;;  %v274_v53 = vld [vmem:[%s3316_s28 + $0x50] sm:$0xff]  ;;  %v5132_v54 = vrot.slane %v3351_v37, 1  ;;  %v3514_v55 = vsel %vm603_vm1, %v612_v20, %v614_v32  ;;  %v619_v57 = vrot.slane %v3475_v41, 2  ;;  %v3525_v60 = vld [vmem:[%s5128_s2 + $0x238] sm:$0xff]  ;;  %v3535_v0 = vsel %vm329_vm0, %v340_v25, %v3396_v59  ;;  %v3565_v12 = vld [vmem:[%s5128_s2 + $0x240] sm:$0xff] }
  0x20   : > { %2982 = vmatpush1.bf16.msra.mxu0 %v2981_v40  ;;  %v617_v40 = vrot.slane %v3441_v21, 2  ;;  %v3493_v45 = vsel %vm329_vm0, %v3337_v30, %v339_v23  ;;  %v3507_v52 = vsel %vm329_vm0, %v339_v23, %v340_v25  ;;  %5251 = vst [vmem:[#allocation7_spill] sm:$0xff] %v3514_v55  ;;  %v3520_v58 = vld [vmem:[%s5128_s2 + $0x230] sm:$0xff]  ;;  %v3545_v2 = vld [vmem:[%s5128_s2 + $0x38] sm:$0xff]  ;;  %v3570_v13 = vld [vmem:[%s5128_s2 + $0x248] sm:$0xff]  ;;  %v345_v14 = vrot.slane %v274_v53, 7 }
  0x21   : > { %2983 = vmatprep.subr.bf16.mxu0 %v5133_v3  ;;  %v621_v63 = vrot.slane %v3493_v45, 2  ;;  %v3540_v1 = vld [vmem:[%s5128_s2 + $0x30] sm:$0xff]  ;;  %v3551_v7 = vsel %vm494_vm2, %v497_v33, %v5132_v54  ;;  %v622_v8 = vrot.slane %v3507_v52, 2  ;;  %v277_v15 = vld [vmem:[%s3316_s28 + $0x68] sm:$0xff]  ;;  %v2999_v16 = vpack.c.bf16 %v3489_v44, %v3484_v43  ;;  %v3583_v20 = vld [vmem:[%s5128_s2 + $0x40] sm:$0xff] }
  0x22   : > { %3035 = vmatpush3.bf16.msra.mxu1 %v3032_v36  ;;  %v714_v36 = vld [vmem:[%s5128_s2 + $0x10] sm:$0xff]  ;;  %v3530_v62 = vsel %vm603_vm1, %v616_v39, %v617_v40  ;;  %5253 = vst [vmem:[#allocation9_spill] sm:$0xff] %v3551_v7  ;;  %888 = vmatprep.mubr.f32.mxu0 %v3551_v7  ;;  %v3055_v17 = vpack.c.bf16 %v3504_v51, %v3499_v50  ;;  %v3588_v23 = vld [vmem:[%s5128_s2 + $0x48] sm:$0xff]  ;;  %v280_v39 = vld [vmem:[%s3316_s28 + $0x80] sm:$0xff] }
  0x23   : > { %3037 = vmatprep.subr.bf16.mxu1 %v3036_v47  ;;  %5252 = vst [vmem:[#allocation8_spill] sm:$0xff] %v3530_v62  ;;  %v3002_v18 = vpack.c.bf16 %v3525_v60, %v3520_v58  ;;  %v3593_v25 = vsel %vm603_vm1, %v617_v40, %v619_v57  ;;  %v3058_v27 = vpack.c.bf16 %v3545_v2, %v3540_v1  ;;  %v281_v40 = vld [vmem:[%s3316_s28 + $0x88] sm:$0xff]  ;;  %v3624_v50 = vld [vmem:[%s5128_s2 + $0x250] sm:$0xff]  ;;  %v3629_v51 = vld [vmem:[%s5128_s2 + $0x258] sm:$0xff] }
  0x24   : > { %2985 = vmatpush1.bf16.msra.mxu0 %v2984_v49  ;;  %v2996_v49 = vpack.c.bf16 %v795_v31, %v794_v29  ;;  %5255 = vst [vmem:[#allocation11_spill] sm:$0xff] %v3593_v25  ;;  %v278_v29 = vld [vmem:[%s3316_s28 + $0x70] sm:$0xff]  ;;  %v279_v31 = vld [vmem:[%s3316_s28 + $0x78] sm:$0xff]  ;;  %v3609_v43 = vsel %vm603_vm1, %v621_v63, %v622_v8  ;;  %v3613_v44 = vsel %vm329_vm0, %v343_v48, %v3396_v59  ;;  %v355_v63 = vrot.slane %v281_v40, 7 }
  0x25   : > { %2986 = vmatprep.subr.bf16.mxu0 %v5133_v3  ;;  %5256 = vst [vmem:[#allocation12_spill] sm:$0xff] %v3609_v43  ;;  %v352_v57 = vrot.slane %v279_v31, 7  ;;  %v629_v2 = vrot.slane %v3613_v44, 2 }
  0x26   : > { %3039 = vmatpush3.bf16.msra.mxu1 %v3036_v47  ;;  %v342_v47 = vrot.slane %v272_v26, 7  ;;  %v624_v26 = vrot.slane %v3535_v0, 2 }
  0x27   : > { %3041 = vmatprep.subr.bf16.mxu1 %v3040_v56 }
  0x28   : > { %2988 = vmatpush1.bf16.msra.mxu0 %v2987_v61  ;;  %v275_v61 = vld [vmem:[%s3316_s28 + $0x58] sm:$0xff]  ;;  %v3560_v11 = vsel %vm329_vm0, %v3337_v30, %v342_v47  ;;  %v3641_v58 = vsel %vm603_vm1, %v622_v8, %v624_v26  ;;  %v3657_v8 = vld [vmem:[%s5128_s2 + $0x50] sm:$0xff]  ;;  %v3674_v26 = vld [vmem:[%s5128_s2 + $0x260] sm:$0xff] }
  0x29   : > { %2989 = vmatprep.subr.bf16.mxu0 %v5133_v3  ;;  %5254 = vst [vmem:[#allocation10_spill] sm:$0xff] %v3560_v11  ;;  %v626_v32 = vrot.slane %v3560_v11, 2  ;;  %5258 = vst [vmem:[#allocation14_spill] sm:$0xff] %v3641_v58 }
  0x2a   : > { %3043 = vmatpush3.bf16.msra.mxu1 %v3040_v56  ;;  %v3052_v56 = vpack.c.bf16 %v715_v38, %v714_v36  ;;  %v349_v38 = vrot.slane %v277_v15, 7  ;;  %v3729_v36 = vsel %vm329_vm0, %v355_v63, %v3396_v59 }
  0x2b   : > { %3045 = vmatprep.subr.bf16.mxu1 %v3044_v4  ;;  %5267 = vst [vmem:[#allocation23_spill] sm:$0xff] %v3729_v36  ;;  %v649_v46 = vrot.slane %v3729_v36, 2  ;;  %v5274_v36 = vpack.c.bf16 %v3588_v23, %v3583_v20 }
  0x2c   : > { %2991 = vmatpush1.bf16.msra.mxu0 %v2990_v9  ;;  %v3556_v9 = vsel %vm329_vm0, %v342_v47, %v343_v48 }
  0x2d   : > { %2992 = vmatprep.subr.bf16.mxu0 %v5133_v3  ;;  %v627_v33 = vrot.slane %v3556_v9, 2 }
  0x2e   : > { %3047 = vmatpush3.bf16.msra.mxu1 %v3044_v4  ;;  %v276_v4 = vld [vmem:[%s3316_s28 + $0x60] sm:$0xff] }
  0x2f   : > { %3048 = vmatprep.subr.bf16.mxu1 %v5133_v3  ;;  %v3649_v1 = vsel %vm603_vm1, %v626_v32, %v627_v33  ;;  %v3689_v32 = vld [vmem:[%s5128_s2 + $0x60] sm:$0xff] }
  0x30   : > { %2994 = vmatpush1.bf16.msra.mxu0 %v2993_v24  ;;  %v346_v24 = vrot.slane %v275_v61, 7  ;;  %v354_v61 = vrot.slane %v280_v39, 7  ;;  %5259 = vst [vmem:[#allocation15_spill] sm:$0xff] %v3649_v1  ;;  %v3694_v39 = vld [vmem:[%s5128_s2 + $0x68] sm:$0xff] }
  0x31   : > { %2761 = vmatmul.mubr.f32.vlgmr.msra.gmra.mrb[0].mxu1 %v3463_v34  ;;  %2995 = vmatprep.subr.bf16.mxu0 %v5133_v3 }
  0x32   : > { %3050 = vmatpush1.bf16.msra.mxu1 %v3049_v28  ;;  %2763 = vmatprep.mubr.f32.mxu1 %v3479_v42  ;;  %v348_v28 = vrot.slane %v276_v4, 7  ;;  %v3632_v48 = vsel %vm329_vm0, %v345_v14, %v346_v24  ;;  %v3636_v53 = vsel %vm329_vm0, %v346_v24, %v3396_v59  ;;  %v3669_v24 = vld [vmem:[%s5128_s2 + $0x58] sm:$0xff]  ;;  %v3713_v4 = vld [vmem:[%s5128_s2 + $0x270] sm:$0xff]  ;;  %v3725_v47 = vsel %vm329_vm0, %v3337_v30, %v354_v61 }
  0x33   : > { %3051 = vmatprep.subr.bf16.mxu1 %v5133_v3  ;;  %5266 = vst [vmem:[#allocation22_spill] sm:$0xff] %v3725_v47  ;;  %v646_v42 = vrot.slane %v3725_v47, 2 }
  0x34   : > { %2997 = vmatpush1.bf16.msra.mxu0 %v2996_v49  ;;  %v3619_v49 = vsel %vm329_vm0, %v3337_v30, %v345_v14  ;;  %v3645_v60 = vsel %vm329_vm0, %v3337_v30, %v348_v28  ;;  %v3660_v14 = vsel %vm329_vm0, %v348_v28, %v349_v38  ;;  %v3679_v28 = vld [vmem:[%s5128_s2 + $0x268] sm:$0xff] }
  0x35   : > { %2764 = vmatmul.mubr.f32.gmra.mrb[2].mxu1 %v3514_v55  ;;  %2998 = vmatprep.subr.bf16.mxu0 %v5133_v3  ;;  %5257 = vst [vmem:[#allocation13_spill] sm:$0xff] %v3619_v49  ;;  %5260 = vst [vmem:[#allocation16_spill] sm:$0xff] %v3660_v14  ;;  %v631_v15 = vrot.slane %v3619_v49, 2  ;;  %v636_v31 = vrot.slane %v3645_v60, 2  ;;  %v637_v54 = vrot.slane %v3660_v14, 2  ;;  %v283_v55 = vld [vmem:[%s3316_s28 + $0x98] sm:$0xff] }
  0x36   : > { %3053 = vmatpush1.bf16.msra.mxu1 %v3052_v56  ;;  %2766 = vmatprep.mubr.f32.mxu1 %v3530_v62  ;;  %v351_v56 = vrot.slane %v278_v29, 7  ;;  %v3683_v29 = vsel %vm329_vm0, %v349_v38, %v3396_v59  ;;  %v3763_v62 = vld [vmem:[%s5128_s2 + $0x80] sm:$0xff] }
  0x37   : > { %3054 = vmatprep.subr.bf16.mxu1 %v5133_v3  ;;  %5261 = vst [vmem:[#allocation17_spill] sm:$0xff] %v3683_v29 }
  0x38   : > { %3000 = vmatpush1.bf16.msra.mxu0 %v2999_v16  ;;  %v632_v16 = vrot.slane %v3632_v48, 2  ;;  %v3697_v40 = vsel %vm329_vm0, %v351_v56, %v352_v57  ;;  %v3701_v38 = vsel %vm329_vm0, %v3337_v30, %v351_v56  ;;  %v3718_v56 = vld [vmem:[%s5128_s2 + $0x278] sm:$0xff] }
  0x39   : > { %2767 = vmatmul.mubr.f32.gmra.mrb[4].mxu1 %v3593_v25  ;;  %3001 = vmatprep.subr.bf16.mxu0 %v5133_v3  ;;  %5262 = vst [vmem:[#allocation18_spill] sm:$0xff] %v3697_v40  ;;  %5263 = vst [vmem:[#allocation19_spill] sm:$0xff] %v3701_v38  ;;  %v290_v25 = vld [vmem:[%s3316_s28 + $0xd0] sm:$0xff] }
  0x3a   : > { %3056 = vmatpush1.bf16.msra.mxu1 %v3055_v17  ;;  %2769 = vmatprep.mubr.f32.mxu1 %v3609_v43  ;;  %v634_v17 = vrot.slane %v3636_v53, 2  ;;  %v3758_v43 = vld [vmem:[%s5128_s2 + $0x78] sm:$0xff] }
  0x3b   : > { %3057 = vmatprep.subr.bf16.mxu1 %v5133_v3 }
  0x3c   : > { %3003 = vmatpush1.bf16.msra.mxu0 %v3002_v18  ;;  %v3705_v18 = vsel %vm329_vm0, %v352_v57, %v3396_v59  ;;  %v3721_v57 = vsel %vm329_vm0, %v354_v61, %v355_v63  ;;  %v639_v61 = vrot.slane %v3683_v29, 2  ;;  %v3743_v63 = vld [vmem:[%s5128_s2 + $0x70] sm:$0xff] }
  0x3d   : > { %5264 = vst [vmem:[#allocation20_spill] sm:$0xff] %v3705_v18  ;;  %2770 = vmatmul.mubr.f32.gmra.mrb[6].mxu1 %v3641_v58  ;;  %3004 = vmatprep.subr.bf16.mxu0 %v5133_v3  ;;  %5265 = vst [vmem:[#allocation21_spill] sm:$0xff] %v3721_v57  ;;  %v3733_v3 = vsel %vm603_vm1, %v627_v33, %v629_v2  ;;  %v3064_v58 = vpack.c.bf16 %v3669_v24, %v3657_v8  ;;  %v641_v8 = vrot.slane %v3701_v38, 2  ;;  %v291_v38 = vld [vmem:[%s3316_s28 + $0xd8] sm:$0xff] }
  0x3e   : > { %3059 = vmatpush1.bf16.msra.mxu1 %v3058_v27  ;;  %2772 = vmatprep.mubr.f32.mxu1 %v3649_v1  ;;  %5268 = vst [vmem:[#allocation24_spill] sm:$0xff] %v3733_v3  ;;  %v282_v27 = vld [vmem:[%s3316_s28 + $0x90] sm:$0xff]  ;;  %v5269_v1 = vmov 0.0|0.0   ;;  %v3749_v33 = vsel %vm603_vm1, %v631_v15, %v632_v16  ;;  %v642_v24 = vrot.slane %v3697_v40, 2  ;;  %v5271_v15 = vpack.c.bf16 %v3570_v13, %v3565_v12  ;;  %v3776_v40 = vld [vmem:[%s5128_s2 + $0x88] sm:$0xff] }
  0x3f   : > { %3060 = vmatprep.subr.bf16.mxu1 %v5269_v1  ;;  %5270 = vst [vmem:[#allocation25_spill] sm:$0xff] %v3749_v33  ;;  %v644_v2 = vrot.slane %v3705_v18, 2  ;;  %v647_v34 = vrot.slane %v3721_v57, 2  ;;  %v3782_v12 = vsel %vm603_vm1, %v632_v16, %v634_v17  ;;  %v3785_v13 = vsel %vm603_vm1, %v636_v31, %v637_v54  ;;  %v294_v16 = vld [vmem:[%s3316_s28 + $0xf0] sm:$0xff] }
  0x40   : > { %3006 = vmatpush1.bf16.msra.mxu0 %v5271_v15  ;;  %5272 = vst [vmem:[#allocation26_spill] sm:$0xff] %v3782_v12  ;;  %5273 = vst [vmem:[#allocation27_spill] sm:$0xff] %v3785_v13  ;;  %v357_v15 = vrot.slane %v282_v27, 7  ;;  %v369_v57 = vrot.slane %v290_v25, 7  ;;  %v3792_v47 = vsel %vm603_vm1, %v637_v54, %v639_v61  ;;  %v358_v31 = vrot.slane %v283_v55, 7  ;;  %v292_v27 = vld [vmem:[%s3316_s28 + $0xe0] sm:$0xff] }
  0x41   : > { %2773 = vmatmul.mubr.f32.gmra.mrb[8].mxu1 %v3733_v3  ;;  %3007 = vmatprep.subr.bf16.mxu0 %v5269_v1  ;;  %5275 = vst [vmem:[#allocation28_spill] sm:$0xff] %v3792_v47  ;;  %v3801_v20 = vsel %vm603_vm1, %v641_v8, %v642_v24  ;;  %v370_v23 = vrot.slane %v291_v38, 7  ;;  %v5278_v61 = vpack.c.bf16 %v3629_v51, %v3624_v50  ;;  %v500_v38 = vrot.slane %v3409_v5, 1  ;;  %v284_v54 = vld [vmem:[%s3316_s28 + $0xa0] sm:$0xff]  ;;  %v3832_v51 = vld [vmem:[%s3316_s28 + $0xa8] sm:$0xff] }
  0x42   : > { %3062 = vmatpush1.bf16.msra.mxu1 %v5274_v36  ;;  %2775 = vmatprep.mubr.f32.mxu1 %v3749_v33  ;;  %5276 = vst [vmem:[#allocation29_spill] sm:$0xff] %v3801_v20  ;;  %v3807_v25 = vsel %vm329_vm0, %v3337_v30, %v369_v57  ;;  %v293_v36 = vld [vmem:[%s3316_s28 + $0xe8] sm:$0xff]  ;;  %v3814_v55 = vsel %vm603_vm1, %v642_v24, %v644_v2  ;;  %v372_v5 = vrot.slane %v292_v27, 7  ;;  %v360_v27 = vrot.slane %v284_v54, 7  ;;  %v744_v2 = vld [vmem:[%s5128_s2 + $0x100] sm:$0xff]  ;;  %v3870_v33 = vld [vmem:[%s3316_s28 + $0xb8] sm:$0xff] }
  0x43   : > { %3063 = vmatprep.subr.bf16.mxu1 %v5269_v1  ;;  %5277 = vst [vmem:[#allocation30_spill] sm:$0xff] %v3807_v25  ;;  %5279 = vst [vmem:[#allocation31_spill] sm:$0xff] %v3814_v55  ;;  %v3817_v17 = vsel %vm603_vm1, %v646_v42, %v647_v34  ;;  %v3820_v8 = vsel %vm603_vm1, %v647_v34, %v649_v46  ;;  %v3829_v50 = vsel %vm329_vm0, %v3337_v30, %v357_v15 }
  0x44   : > { %3009 = vmatpush1.bf16.msra.mxu0 %v5278_v61  ;;  %5280 = vst [vmem:[#allocation32_spill] sm:$0xff] %v3817_v17  ;;  %5281 = vst [vmem:[#allocation33_spill] sm:$0xff] %v3820_v8  ;;  %v3835_v42 = vsel %vm329_vm0, %v369_v57, %v370_v23  ;;  %v3839_v46 = vsel %vm329_vm0, %v370_v23, %v3396_v59  ;;  %v3843_v34 = vsel %vm329_vm0, %v357_v15, %v358_v31 }
  0x45   : > { %2776 = vmatmul.mubr.f32.gmra.mrb[10].mxu1 %v3782_v12  ;;  %3010 = vmatprep.subr.bf16.mxu0 %v5269_v1  ;;  %5282 = vst [vmem:[#allocation34_spill] sm:$0xff] %v3829_v50  ;;  %5283 = vst [vmem:[#allocation35_spill] sm:$0xff] %v3835_v42  ;;  %v674_v24 = vrot.slane %v3839_v46, 2  ;;  %v373_v61 = vrot.slane %v293_v36, 7  ;;  %v295_v12 = vld [vmem:[%s3316_s28 + $0xf8] sm:$0xff]  ;;  %v3851_v57 = vsel %vm329_vm0, %v358_v31, %v3396_v59  ;;  %v375_v15 = vrot.slane %v294_v16, 7 }
  0x46   : > { %3065 = vmatpush1.bf16.msra.mxu1 %v3064_v58  ;;  %2778 = vmatprep.mubr.f32.mxu1 %v3785_v13  ;;  %v286_v58 = vld [vmem:[%s3316_s28 + $0xb0] sm:$0xff]  ;;  %v3856_v23 = vsel %vm329_vm0, %v3337_v30, %v372_v5  ;;  %v745_v36 = vld [vmem:[%s5128_s2 + $0x108] sm:$0xff]  ;;  %v5285_v13 = vpack.c.bf16 %v3679_v28, %v3674_v26  ;;  %v651_v31 = vrot.slane %v3829_v50, 2  ;;  %v361_v54 = vrot.slane %v3832_v51, 7 }
  0x47   : > { %3066 = vmatprep.subr.bf16.mxu1 %v5269_v1  ;;  %5284 = vst [vmem:[#allocation36_spill] sm:$0xff] %v3856_v23  ;;  %v5286_v16 = vrot.slane %v3835_v42, 2  ;;  %v3878_v18 = vsel %vm329_vm0, %v372_v5, %v373_v61  ;;  %v652_v26 = vrot.slane %v3843_v34, 2  ;;  %v376_v51 = vrot.slane %v295_v12, 7 }
  0x48   : > { %3012 = vmatpush1.bf16.msra.mxu0 %v5285_v13  ;;  %5288 = vst [vmem:[#allocation38_spill] sm:$0xff] %v3878_v18  ;;  %v3886_v13 = vsel %vm329_vm0, %v373_v61, %v3396_v59  ;;  %v363_v5 = vrot.slane %v286_v58, 7  ;;  %v3096_v28 = vpack.c.bf16 %v745_v36, %v744_v2  ;;  %v3900_v61 = vsel %vm329_vm0, %v3337_v30, %v360_v27  ;;  %v288_v36 = vld [vmem:[%s3316_s28 + $0xc0] sm:$0xff] }
  0x49   : > { %v3875_v3 = vsel %vm603_vm1, %v5286_v16, %v674_v24  ;;  %2779 = vmatmul.mubr.f32.gmra.mrb[12].mxu1 %v3792_v47  ;;  %3013 = vmatprep.subr.bf16.mxu0 %v5269_v1  ;;  %v5289_v24 = vpack.c.bf16 %v3694_v39, %v3689_v32  ;;  %v679_v16 = vrot.slane %v3886_v13, 2  ;;  %v3895_v47 = vsel %vm329_vm0, %v3337_v30, %v375_v15 }
  0x4a   : > { %5287 = vst [vmem:[#allocation37_spill] sm:$0xff] %v3875_v3  ;;  %2781 = vmatprep.mubr.f32.mxu1 %v3801_v20  ;;  %5290 = vst [vmem:[#allocation39_spill] sm:$0xff] %v3895_v47  ;;  %v364_v12 = vrot.slane %v3870_v33, 7  ;;  %v3904_v32 = vsel %vm329_vm0, %v375_v15, %v376_v51  ;;  %v3908_v39 = vsel %vm329_vm0, %v376_v51, %v3396_v59  ;;  %v5294_v20 = vrot.slane %v3878_v18, 2 }
  0x4b   : > { %3068 = vmatpush1.bf16.msra.mxu1 %v5289_v24  ;;  %5291 = vst [vmem:[#allocation40_spill] sm:$0xff] %v3900_v61  ;;  %5292 = vst [vmem:[#allocation41_spill] sm:$0xff] %v3904_v32  ;;  %v5293_v58 = vpack.c.bf16 %v3718_v56, %v3713_v4  ;;  %v3914_v2 = vsel %vm329_vm0, %v360_v27, %v361_v54  ;;  %v3918_v24 = vld [vmem:[%s3316_s28 + $0xc8] sm:$0xff]  ;;  %v772_v51 = vrot.slane %v3908_v39, 2  ;;  %v5296_v4 = vrot.slane %v3351_v37, 1  ;;  %s254_s28 = scalar_lea.vmem %s5129_s3, %s5407_s19 }
  0x4c   : > { %3069 = vmatprep.subr.bf16.mxu1 %v5269_v1  ;;  %v3923_v33 = vsel %vm603_vm1, %v5294_v20, %v679_v16  ;;  %v654_v27 = vrot.slane %v3851_v57, 2  ;;  %v503_v50 = vrot.slane %v3416_v10, 1  ;;  %v746_v20 = vld [vmem:[%s5128_s2 + $0x110] sm:$0xff]  ;;  %v747_v16 = vld [vmem:[%s5128_s2 + $0x118] sm:$0xff]  ;;  %v5298_v15 = vpack.c.bf16 %v3758_v43, %v3743_v63 }
  0x4d   : > { %3015 = vmatpush1.bf16.msra.mxu0 %v5293_v58  ;;  %5295 = vst [vmem:[#allocation42_spill] sm:$0xff] %v3923_v33  ;;  %2782 = vmatmul.mubr.f32.gmra.mrb[14].mxu1 %v3814_v55  ;;  %v3931_v56 = vsel %vm494_vm2, %v5296_v4, %v500_v38  ;;  %v502_v58 = vrot.slane %v3413_v6, 1  ;;  %v3947_v38 = vsel %vm603_vm1, %v651_v31, %v652_v26  ;;  %v656_v4 = vrot.slane %v3900_v61, 2  ;;  %v730_v43 = vld [vmem:[%s5128_s2 + $0x90] sm:$0xff]  ;;  %v731_v63 = vld [vmem:[%s5128_s2 + $0x98] sm:$0xff] }
  0x4e   : > { %5297 = vst [vmem:[#allocation43_spill] sm:$0xff] %v3931_v56  ;;  %3097 = vmatprep.subr.bf16.mxu0 %v3096_v28  ;;  %2784 = vmatprep.mubr.f32.mxu1 %v3817_v17  ;;  %5299 = vst [vmem:[#allocation44_spill] sm:$0xff] %v3947_v38  ;;  %v3952_v55 = vsel %vm329_vm0, %v361_v54, %v3396_v59  ;;  %v5300_v29 = vrot.slane %v3904_v32, 2  ;;  %v657_v31 = vrot.slane %v3914_v2, 2  ;;  %v505_v17 = vrot.slane %v3437_v19, 1  ;;  %v748_v19 = vld [vmem:[%s5128_s2 + $0x120] sm:$0xff] }
  0x4f   : > { %3071 = vmatpush1.bf16.msra.mxu1 %v5298_v15  ;;  %v3969_v54 = vsel %vm329_vm0, %v363_v5, %v364_v12  ;;  %v366_v15 = vrot.slane %v288_v36, 7  ;;  %v3981_v61 = vsel %vm329_vm0, %v3337_v30, %v363_v5  ;;  %v3985_v36 = vsel %vm494_vm2, %v502_v58, %v503_v50 }
  0x50   : > { %v3957_v7 = vsel %vm603_vm1, %v5300_v29, %v772_v51  ;;  %889 = vmatmul.mubr.f32.vlgmr.msra.gmra.mrb[0].mxu0 %v3348_v35  ;;  %3072 = vmatprep.subr.bf16.mxu1 %v5269_v1  ;;  %v367_v29 = vrot.slane %v3918_v24, 7  ;;  %v3976_v51 = vld [vmem:[%s5128_s2 + $0xa0] sm:$0xff]  ;;  %v3100_v35 = vpack.c.bf16 %v747_v16, %v746_v20  ;;  %v659_v24 = vrot.slane %v3952_v55, 2 }
  0x51   : > { %5301 = vst [vmem:[#allocation45_spill] sm:$0xff] %v3957_v7  ;;  %893 = vmatprep.mubr.f32.mxu0 %v3931_v56  ;;  %3099 = vmatpush3.bf16.msra.mxu0 %v3096_v28  ;;  %v733_v56 = vld [vmem:[%s5128_s2 + $0xa8] sm:$0xff]  ;;  %v5302_v5 = vpack.c.bf16 %v3776_v40, %v3763_v62  ;;  %v4002_v58 = vsel %vm603_vm1, %v652_v26, %v654_v27  ;;  %v662_v16 = vrot.slane %v3969_v54, 2  ;;  %v661_v62 = vrot.slane %v3981_v61, 2 }
  0x52   : > { %2785 = vmatmul.mubr.f32.gmra.mrb[16].mxu1 %v3820_v8  ;;  %v749_v28 = vld [vmem:[%s5128_s2 + $0x128] sm:$0xff]  ;;  %5303 = vst [vmem:[#allocation46_spill] sm:$0xff] %v4002_v58  ;;  %v3076_v20 = vpack.c.bf16 %v731_v63, %v730_v43  ;;  %v459_v8 = vsel %vm329_vm0, %v364_v12, %v3396_v59  ;;  %v4010_v14 = vsel %vm603_vm1, %v656_v4, %v657_v31 }
  0x53   : > { %3074 = vmatpush1.bf16.msra.mxu1 %v5302_v5  ;;  %2787 = vmatprep.mubr.f32.mxu1 %v3947_v38  ;;  %5304 = vst [vmem:[#allocation47_spill] sm:$0xff] %v4010_v14  ;;  %v4014_v40 = vsel %vm329_vm0, %v366_v15, %v367_v29  ;;  %v4018_v26 = vsel %vm329_vm0, %v3337_v30, %v366_v15  ;;  %v664_v63 = vrot.slane %v459_v8, 2  ;;  %v507_v5 = vrot.slane %v3445_v22, 1 }
  0x54   : > { %894 = vmatmul.mubr.f32.gmra.mrb[2].mxu0 %v3351_v37  ;;  %3075 = vmatprep.subr.bf16.mxu1 %v5269_v1  ;;  %5305 = vst [vmem:[#allocation48_spill] sm:$0xff] %v4014_v40  ;;  %5306 = vst [vmem:[#allocation49_spill] sm:$0xff] %v4018_v26  ;;  %v3079_v12 = vpack.c.bf16 %v733_v56, %v3976_v51  ;;  %v4023_v27 = vsel %vm494_vm2, %v503_v50, %v505_v17  ;;  %v508_v30 = vrot.slane %v3441_v21, 1  ;;  %v750_v56 = vld [vmem:[%s5128_s2 + $0x130] sm:$0xff]  ;;  %v751_v17 = vld [vmem:[%s5128_s2 + $0x138] sm:$0xff] }
  0x55   : > { %898 = vmatprep.mubr.f32.mxu0 %v3985_v36  ;;  %3101 = vmatprep.subr.bf16.mxu0 %v3100_v35  ;;  %v3104_v43 = vpack.c.bf16 %v749_v28, %v748_v19  ;;  %v4027_v4 = vsel %vm603_vm1, %v657_v31, %v659_v24  ;;  %v666_v50 = vrot.slane %v4018_v26, 2  ;;  %v667_v31 = vrot.slane %v4014_v40, 2  ;;  %v734_v24 = vld [vmem:[%s5128_s2 + $0xb0] sm:$0xff]  ;;  %v735_v19 = vld [vmem:[%s5128_s2 + $0xb8] sm:$0xff] }
  0x56   : > { %2788 = vmatmul.mubr.f32.gmra.mrb[18].mxu1 %v4002_v58  ;;  %3103 = vmatpush3.bf16.msra.mxu0 %v3100_v35  ;;  %v545_v51 = vrot.slane %v3851_v57, 1  ;;  %v4045_v35 = vsel %vm603_vm1, %v661_v62, %v662_v16  ;;  %v460_v28 = vsel %vm329_vm0, %v367_v29, %v3396_v59  ;;  %v4061_v62 = vld [vmem:[%s5128_s2 + $0xc0] sm:$0xff]  ;;  %v510_v15 = vrot.slane %v3475_v41, 1  ;;  %v737_v57 = vld [vmem:[%s5128_s2 + $0xc8] sm:$0xff] }
  0x57   : > { %3077 = vmatpush1.bf16.msra.mxu1 %v3076_v20  ;;  %2790 = vmatprep.mubr.f32.mxu1 %v4010_v14  ;;  %5307 = vst [vmem:[#allocation50_spill] sm:$0xff] %v4045_v35  ;;  %v550_v20 = vrot.slane %v3952_v55, 1  ;;  %v5308_v14 = vrot.slane %v3843_v34, 1  ;;  %v3108_v29 = vpack.c.bf16 %v751_v17, %v750_v56  ;;  %v4071_v55 = vsel %vm494_vm2, %v507_v5, %v508_v30  ;;  %v752_v56 = vld [vmem:[%s5128_s2 + $0x140] sm:$0xff]  ;;  %v753_v5 = vld [vmem:[%s5128_s2 + $0x148] sm:$0xff] }
  0x58   : > { %899 = vmatmul.mubr.f32.gmra.mrb[4].mxu0 %v3413_v6  ;;  %3078 = vmatprep.subr.bf16.mxu1 %v5269_v1  ;;  %v5309_v38 = vrot.slane %v3914_v2, 1  ;;  %v5199_v26 = vrot.slane %v3969_v54, 1  ;;  %v3082_v17 = vpack.c.bf16 %v735_v19, %v734_v24  ;;  %v5200_v24 = vrot.slane %v3835_v42, 1 }
  0x59   : > { %903 = vmatprep.mubr.f32.mxu0 %v4023_v27  ;;  %3105 = vmatprep.subr.bf16.mxu0 %v3104_v43  ;;  %v4067_v58 = vsel %vm494_vm2, %v5308_v14, %v545_v51  ;;  %v555_v14 = vrot.slane %v459_v8, 1  ;;  %v669_v51 = vrot.slane %v460_v28, 2  ;;  %v671_v8 = vrot.slane %v3807_v25, 2 }
  0x5a   : > { %2791 = vmatmul.mubr.f32.gmra.mrb[20].mxu1 %v4027_v4  ;;  %3107 = vmatpush3.bf16.msra.mxu0 %v3104_v43  ;;  %v4079_v41 = vsel %vm494_vm2, %v5309_v38, %v550_v20  ;;  %v4090_v43 = vsel %vm603_vm1, %v662_v16, %v664_v63  ;;  %v4093_v38 = vsel %vm603_vm1, %v666_v50, %v667_v31  ;;  %v5203_v20 = vrot.slane %v4014_v40, 1 }
  0x5b   : > { %3080 = vmatpush1.bf16.msra.mxu1 %v3079_v12  ;;  %2793 = vmatprep.mubr.f32.mxu1 %v4045_v35  ;;  %5310 = vst [vmem:[#allocation51_spill] sm:$0xff] %v4090_v43  ;;  %5311 = vst [vmem:[#allocation52_spill] sm:$0xff] %v4093_v38  ;;  %v4101_v12 = vsel %vm494_vm2, %v5199_v26, %v555_v14  ;;  %v560_v16 = vrot.slane %v460_v28, 1  ;;  %v3085_v63 = vpack.c.bf16 %v737_v57, %v4061_v62  ;;  %v754_v57 = vld [vmem:[%s5128_s2 + $0x150] sm:$0xff] }
  0x5c   : > { %904 = vmatmul.mubr.f32.gmra.mrb[6].mxu0 %v3416_v10  ;;  %3081 = vmatprep.subr.bf16.mxu1 %v5269_v1  ;;  %v3112_v50 = vpack.c.bf16 %v753_v5, %v752_v56  ;;  %v565_v19 = vrot.slane %v3839_v46, 1  ;;  %v4110_v35 = vsel %vm494_vm2, %v508_v30, %v510_v15  ;;  %v512_v14 = vrot.slane %v3493_v45, 1  ;;  %v755_v46 = vld [vmem:[%s5128_s2 + $0x158] sm:$0xff] }
  0x5d   : > { %908 = vmatprep.mubr.f32.mxu0 %v4071_v55  ;;  %3109 = vmatprep.subr.bf16.mxu0 %v3108_v29  ;;  %v513_v26 = vrot.slane %v3507_v52, 1  ;;  %v4117_v28 = vsel %vm494_vm2, %v5203_v20, %v560_v16  ;;  %v4127_v30 = vsel %vm603_vm1, %v667_v31, %v669_v51  ;;  %v5202_v62 = vrot.slane %v3878_v18, 1  ;;  %v738_v31 = vld [vmem:[%s5128_s2 + $0xd0] sm:$0xff] }
  0x5e   : > { %2794 = vmatmul.mubr.f32.gmra.mrb[22].mxu1 %v4090_v43  ;;  %3111 = vmatpush3.bf16.msra.mxu0 %v3108_v29  ;;  %5312 = vst [vmem:[#allocation53_spill] sm:$0xff] %v4117_v28  ;;  %5313 = vst [vmem:[#allocation54_spill] sm:$0xff] %v4127_v30  ;;  %v4132_v15 = vsel %vm494_vm2, %v5200_v24, %v565_v19  ;;  %v570_v29 = vrot.slane %v3886_v13, 1  ;;  %v5315_v56 = vrot.slane %v3835_v42, 2  ;;  %v676_v51 = vrot.slane %v3856_v23, 2  ;;  %v1743_v43 = vld [vmem:[%s5128_s2 + $0x398] sm:$0xff] }
  0x5f   : > { %3083 = vmatpush1.bf16.msra.mxu1 %v3082_v17  ;;  %2796 = vmatprep.mubr.f32.mxu1 %v4093_v38  ;;  %5314 = vst [vmem:[#allocation55_spill] sm:$0xff] %v4132_v15  ;;  %v739_v17 = vld [vmem:[%s5128_s2 + $0xd8] sm:$0xff]  ;;  %v3116_v13 = vpack.c.bf16 %v755_v46, %v754_v57  ;;  %v765_v19 = vrot.slane %v3908_v39, 1  ;;  %v515_v24 = vrot.slane %v3535_v0, 1  ;;  %v756_v57 = vld [vmem:[%s5128_s2 + $0x160] sm:$0xff]  ;;  %v757_v46 = vld [vmem:[%s5128_s2 + $0x168] sm:$0xff] }
  0x60   : > { %909 = vmatmul.mubr.f32.gmra.mrb[8].mxu0 %v3445_v22  ;;  %3084 = vmatprep.subr.bf16.mxu1 %v5269_v1  ;;  %v4141_v5 = vsel %vm603_vm1, %v671_v8, %v5315_v56  ;;  %v4154_v16 = vsel %vm494_vm2, %v5202_v62, %v570_v29  ;;  %v5201_v8 = vrot.slane %v3904_v32, 1  ;;  %v4160_v56 = vsel %vm494_vm2, %v512_v14, %v513_v26  ;;  %v741_v29 = vld [vmem:[%s5128_s2 + $0xe8] sm:$0xff]  ;;  %v759_v62 = vld [vmem:[%s5128_s2 + $0x178] sm:$0xff] }
  0x61   : > { %5316 = vst [vmem:[#allocation56_spill] sm:$0xff] %v4141_v5  ;;  %913 = vmatprep.mubr.f32.mxu0 %v4110_v35  ;;  %3113 = vmatprep.subr.bf16.mxu0 %v3112_v50  ;;  %5317 = vst [vmem:[#allocation57_spill] sm:$0xff] %v4154_v16  ;;  %v3088_v39 = vpack.c.bf16 %v739_v17, %v738_v31  ;;  %v5319_v0 = vrot.slane %v3878_v18, 2  ;;  %v769_v31 = vrot.slane %v3895_v47, 2  ;;  %v1741_v38 = vld [vmem:[%s5128_s2 + $0x388] sm:$0xff] }
  0x62   : > { %2797 = vmatmul.mubr.f32.gmra.mrb[24].mxu1 %v4127_v30  ;;  %3115 = vmatpush3.bf16.msra.mxu0 %v3112_v50  ;;  %v4173_v14 = vsel %vm494_vm2, %v5201_v8, %v765_v19  ;;  %v3120_v17 = vpack.c.bf16 %v757_v46, %v756_v57  ;;  %v4192_v19 = vsel %vm494_vm2, %v513_v26, %v515_v24  ;;  %v758_v8 = vld [vmem:[%s5128_s2 + $0x170] sm:$0xff]  ;;  %v5321_v26 = vrot.slane %v3904_v32, 2  ;;  %v743_v46 = vld [vmem:[%s5128_s2 + $0xf8] sm:$0xff]  ;;  %v1740_v30 = vld [vmem:[%s5128_s2 + $0x380] sm:$0xff] }
  0x63   : > { %3086 = vmatpush1.bf16.msra.mxu1 %v3085_v63  ;;  %2799 = vmatprep.mubr.f32.mxu1 %v4141_v5  ;;  %5318 = vst [vmem:[#allocation58_spill] sm:$0xff] %v4173_v14  ;;  %v4180_v50 = vsel %vm603_vm1, %v676_v51, %v5319_v0  ;;  %v740_v63 = vld [vmem:[%s5128_s2 + $0xe0] sm:$0xff]  ;;  %v517_v51 = vrot.slane %v3560_v11, 1  ;;  %v518_v0 = vrot.slane %v3556_v9, 1  ;;  %v1738_v5 = vld [vmem:[%s5128_s2 + $0x370] sm:$0xff] }
  0x64   : > { %914 = vmatmul.mubr.f32.gmra.mrb[10].mxu0 %v3441_v21  ;;  %3087 = vmatprep.subr.bf16.mxu1 %v5269_v1  ;;  %5320 = vst [vmem:[#allocation59_spill] sm:$0xff] %v4180_v50  ;;  %v3091_v57 = vpack.c.bf16 %v741_v29, %v740_v63  ;;  %v4208_v24 = vsel %vm603_vm1, %v769_v31, %v5321_v26  ;;  %v520_v29 = vrot.slane %v3613_v44, 1  ;;  %v4224_v26 = vrot.slane %v3396_v59, 1  ;;  %v1725_v44 = vld [vmem:[%s5128_s2 + $0x308] sm:$0xff] }
  0x65   : > { %918 = vmatprep.mubr.f32.mxu0 %v4160_v56  ;;  %3117 = vmatprep.subr.bf16.mxu0 %v3116_v13  ;;  %5322 = vst [vmem:[#allocation60_spill] sm:$0xff] %v4208_v24  ;;  %v4219_v63 = vsel %vm494_vm2, %v517_v51, %v518_v0  ;;  %v523_v51 = vrot.slane %v3632_v48, 1 }
  0x66   : > { %2800 = vmatmul.mubr.f32.gmra.mrb[26].mxu1 %v3875_v3  ;;  %3119 = vmatpush3.bf16.msra.mxu0 %v3116_v13  ;;  %v742_v13 = vld [vmem:[%s5128_s2 + $0xf0] sm:$0xff]  ;;  %5323 = vst [vmem:[#allocation61_spill] sm:$0xff] %v4219_v63  ;;  %5324 = vst [vmem:[#allocation62_spill] sm:$0xff] %v4224_v26 }
  0x67   : > { %3089 = vmatpush1.bf16.msra.mxu1 %v3088_v39  ;;  %2802 = vmatprep.mubr.f32.mxu1 %v4180_v50  ;;  %v3124_v39 = vpack.c.bf16 %v759_v62, %v758_v8  ;;  %v3094_v31 = vpack.c.bf16 %v743_v46, %v742_v13  ;;  %v1724_v62 = vld [vmem:[%s5128_s2 + $0x300] sm:$0xff]  ;;  %v4237_v8 = vsel %vm494_vm2, %v518_v0, %v520_v29  ;;  %v1757_v13 = vld [vmem:[%s5128_s2 + $0x408] sm:$0xff]  ;;  %v1726_v0 = vld [vmem:[%s5128_s2 + $0x310] sm:$0xff] }
  0x68   : > { %919 = vmatmul.mubr.f32.gmra.mrb[12].mxu0 %v3493_v45  ;;  %3090 = vmatprep.subr.bf16.mxu1 %v5269_v1  ;;  %v3129_v46 = vpack.c.bf16 %v1725_v44, %v1724_v62  ;;  %v1728_v44 = vld [vmem:[%s5128_s2 + $0x320] sm:$0xff]  ;;  %v1737_v50 = vld [vmem:[%s5128_s2 + $0x368] sm:$0xff] }
  0x69   : > { %923 = vmatprep.mubr.f32.mxu0 %v4192_v19  ;;  %3121 = vmatprep.subr.bf16.mxu0 %v3120_v17 }
  0x6a   : > { %2803 = vmatmul.mubr.f32.gmra.mrb[28].mxu1 %v3923_v33  ;;  %3123 = vmatpush3.bf16.msra.mxu0 %v3120_v17  ;;  %v522_v17 = vrot.slane %v3619_v49, 1  ;;  %v1734_v33 = vld [vmem:[%s5128_s2 + $0x350] sm:$0xff] }
  0x6b   : > { %3092 = vmatpush1.bf16.msra.mxu1 %v3091_v57  ;;  %2805 = vmatprep.mubr.f32.mxu1 %v4208_v24  ;;  %v1756_v57 = vld [vmem:[%s5128_s2 + $0x400] sm:$0xff] }
  0x6c   : > { %924 = vmatmul.mubr.f32.gmra.mrb[14].mxu0 %v3507_v52  ;;  %3093 = vmatprep.subr.bf16.mxu1 %v5269_v1  ;;  %v4248_v20 = vpack.c.bf16 %v1757_v13, %v1756_v57  ;;  %v4262_v29 = vsel %vm494_vm2, %v522_v17, %v523_v51  ;;  %v1729_v57 = vld [vmem:[%s5128_s2 + $0x328] sm:$0xff]  ;;  %v527_v17 = vrot.slane %v3645_v60, 1  ;;  %v5325_v13 = vld [vmem:[#allocation16_spill] sm:$0xff]  ;;  %v1732_v24 = vld [vmem:[%s5128_s2 + $0x340] sm:$0xff] }
  0x6d   : > { %928 = vmatprep.mubr.f32.mxu0 %v4219_v63  ;;  %3125 = vmatprep.subr.bf16.mxu0 %v3124_v39 }
  0x6e   : > { %2806 = vmatmul.mubr.f32.gmra.mrb[30].mxu1 %v3957_v7  ;;  %3127 = vmatpush3.bf16.msra.mxu0 %v3124_v39  ;;  %v1727_v39 = vld [vmem:[%s5128_s2 + $0x318] sm:$0xff] }
  0x6f   : > { %3095 = vmatpush1.bf16.msra.mxu1 %v3094_v31  ;;  %1338 = vmatprep.mubr.f32.mxu1 %v4224_v26  ;;  %v525_v31 = vrot.slane %v3636_v53, 1  ;;  %v3132_v62 = vpack.c.bf16 %v1727_v39, %v1726_v0  ;;  %v5326_v0 = vld [vmem:[#allocation9_spill] sm:$0xff]  ;;  %v3135_v39 = vpack.c.bf16 %v1729_v57, %v1728_v44  ;;  %v5330_v57 = vld [vmem:[#allocation43_spill] sm:$0xff] }
  0x70   : > { %929 = vmatmul.mubr.f32.gmra.mrb[16].mxu0 %v3560_v11  ;;  %3128 = vmatprep.subr.bf16.mxu1 %v5269_v1 }
  0x71   : > { %933 = vmatprep.mubr.f32.mxu0 %v4237_v8  ;;  %3177 = vmatprep.subr.bf16.mxu0 %v4248_v20  ;;  %v4277_v53 = vsel %vm494_vm2, %v523_v51, %v525_v31  ;;  %v1731_v51 = vld [vmem:[%s5128_s2 + $0x338] sm:$0xff]  ;;  %v5327_v31 = vld [vmem:[#allocation2_spill] sm:$0xff] }
  0x72   : > { %1339 = vmatmul.mubr.f32.vlgmr.msra.gmra.mrb[32].mxu1 %v3396_v59 }
  0x73   : > { %3130 = vmatpush1.bf16.msra.mxu1 %v3129_v46  ;;  %1343 = vmatprep.mubr.f32.mxu1 %v4224_v26  ;;  %v528_v46 = vrot.slane %v5325_v13, 1  ;;  %v1730_v26 = vld [vmem:[%s5128_s2 + $0x330] sm:$0xff] }
  0x74   : > { %934 = vmatmul.mubr.f32.gmra.mrb[18].mxu0 %v3556_v9  ;;  %3131 = vmatprep.subr.bf16.mxu1 %v5269_v1  ;;  %v3138_v7 = vpack.c.bf16 %v1731_v51, %v1730_v26  ;;  %v5331_v26 = vld [vmem:[#allocation19_spill] sm:$0xff]  ;;  %v5332_v51 = vld [vmem:[#allocation18_spill] sm:$0xff] }
  0x75   : > { %938 = vmatprep.mubr.f32.mxu0 %v4262_v29 }
  0x76   : > { %1344 = vmatmul.mubr.f32.gmra.mrb[34].mxu1 %v3396_v59 }
  0x77   : > { %1348 = vmatprep.mubr.f32.mxu1 %v5326_v0  ;;  %3133 = vmatpush1.bf16.msra.mxu1 %v3132_v62  ;;  %v4293_v0 = vsel %vm494_vm2, %v527_v17, %v528_v46  ;;  %v5329_v62 = vld [vmem:[#allocation17_spill] sm:$0xff] }
  0x78   : > { %939 = vmatmul.mubr.f32.gmra.mrb[20].mxu0 %v3619_v49  ;;  %3134 = vmatprep.subr.bf16.mxu1 %v5269_v1  ;;  %5328 = vst [vmem:[#allocation16_spill] sm:$0xff] %v4293_v0  ;;  %v530_v44 = vrot.slane %v5329_v62, 1  ;;  %v533_v62 = vrot.slane %v5332_v51, 1 }
  0x79   : > { %943 = vmatprep.mubr.f32.mxu0 %v4277_v53 }
  0x7a   : > { %1349 = vmatmul.mubr.f32.gmra.mrb[36].mxu1 %v5327_v31  ;;  %v1733_v31 = vld [vmem:[%s5128_s2 + $0x348] sm:$0xff]  ;;  %v4308_v17 = vsel %vm494_vm2, %v528_v46, %v530_v44 }
  0x7b   : > { %1353 = vmatprep.mubr.f32.mxu1 %v5330_v57  ;;  %3136 = vmatpush1.bf16.msra.mxu1 %v3135_v39  ;;  %v532_v39 = vrot.slane %v5331_v26, 1  ;;  %v3141_v57 = vpack.c.bf16 %v1733_v31, %v1732_v24  ;;  %v1736_v31 = vld [vmem:[%s5128_s2 + $0x360] sm:$0xff] }
  0x7c   : > { %944 = vmatmul.mubr.f32.gmra.mrb[22].mxu0 %v3632_v48  ;;  %3137 = vmatprep.subr.bf16.mxu1 %v5269_v1  ;;  %v3147_v3 = vpack.c.bf16 %v1737_v50, %v1736_v31  ;;  %v5336_v50 = vld [vmem:[#allocation23_spill] sm:$0xff] }
  0x7d   : > { %948 = vmatprep.mubr.f32.mxu0 %v4293_v0  ;;  %v4324_v46 = vsel %vm494_vm2, %v532_v39, %v533_v62 }
  0x7e   : > { %1354 = vmatmul.mubr.f32.gmra.mrb[38].mxu1 %v3351_v37  ;;  %v1735_v37 = vld [vmem:[%s5128_s2 + $0x358] sm:$0xff] }
  0x7f   : > { %1358 = vmatprep.mubr.f32.mxu1 %v3985_v36  ;;  %3139 = vmatpush1.bf16.msra.mxu1 %v3138_v7  ;;  %v5333_v7 = vld [vmem:[#allocation20_spill] sm:$0xff]  ;;  %v3144_v44 = vpack.c.bf16 %v1735_v37, %v1734_v33  ;;  %v5334_v33 = vld [vmem:[#allocation22_spill] sm:$0xff]  ;;  %v5335_v37 = vld [vmem:[#allocation21_spill] sm:$0xff] }
  0x80   : > { %949 = vmatmul.mubr.f32.gmra.mrb[24].mxu0 %v3645_v60  ;;  %3140 = vmatprep.subr.bf16.mxu1 %v5269_v1  ;;  %v535_v24 = vrot.slane %v5333_v7, 1  ;;  %v538_v7 = vrot.slane %v5335_v37, 1 }
  0x81   : > { %953 = vmatprep.mubr.f32.mxu0 %v4308_v17 }
  0x82   : > { %1359 = vmatmul.mubr.f32.gmra.mrb[40].mxu1 %v3413_v6  ;;  %v4339_v39 = vsel %vm494_vm2, %v533_v62, %v535_v24  ;;  %v1739_v62 = vld [vmem:[%s5128_s2 + $0x378] sm:$0xff] }
  0x83   : > { %1363 = vmatprep.mubr.f32.mxu1 %v4023_v27  ;;  %3142 = vmatpush1.bf16.msra.mxu1 %v3141_v57  ;;  %v537_v57 = vrot.slane %v5334_v33, 1  ;;  %v3150_v31 = vpack.c.bf16 %v1739_v62, %v1738_v5  ;;  %v3153_v62 = vpack.c.bf16 %v1741_v38, %v1740_v30 }
  0x84   : > { %954 = vmatmul.mubr.f32.gmra.mrb[26].mxu0 %v5325_v13  ;;  %3143 = vmatprep.subr.bf16.mxu1 %v5269_v1 }
  0x85   : > { %958 = vmatprep.mubr.f32.mxu0 %v4324_v46  ;;  %v4355_v24 = vsel %vm494_vm2, %v537_v57, %v538_v7 }
  0x86   : > { %1364 = vmatmul.mubr.f32.gmra.mrb[42].mxu1 %v3416_v10 }
  0x87   : > { %1368 = vmatprep.mubr.f32.mxu1 %v4071_v55  ;;  %3145 = vmatpush1.bf16.msra.mxu1 %v3144_v44  ;;  %v540_v44 = vrot.slane %v5336_v50, 1  ;;  %v1742_v50 = vld [vmem:[%s5128_s2 + $0x390] sm:$0xff] }
  0x88   : > { %959 = vmatmul.mubr.f32.gmra.mrb[28].mxu0 %v5331_v26  ;;  %3146 = vmatprep.subr.bf16.mxu1 %v5269_v1  ;;  %v3156_v30 = vpack.c.bf16 %v1743_v43, %v1742_v50  ;;  %v1747_v50 = vld [vmem:[%s5128_s2 + $0x3b8] sm:$0xff] }
  0x89   : > { %963 = vmatprep.mubr.f32.mxu0 %v4339_v39  ;;  %v4370_v57 = vsel %vm494_vm2, %v538_v7, %v540_v44  ;;  %v5338_v7 = vrot.slane %v3843_v34, 1  ;;  %v1744_v44 = vld [vmem:[%s5128_s2 + $0x3a0] sm:$0xff] }
  0x8a   : > { %1369 = vmatmul.mubr.f32.gmra.mrb[44].mxu1 %v3445_v22 }
  0x8b   : > { %1373 = vmatprep.mubr.f32.mxu1 %v4110_v35  ;;  %3148 = vmatpush1.bf16.msra.mxu1 %v3147_v3  ;;  %v5337_v3 = vld [vmem:[#allocation34_spill] sm:$0xff] }
  0x8c   : > { %964 = vmatmul.mubr.f32.gmra.mrb[30].mxu0 %v5332_v51  ;;  %3149 = vmatprep.subr.bf16.mxu1 %v5269_v1  ;;  %v542_v5 = vrot.slane %v5337_v3, 1 }
  0x8d   : > { %968 = vmatprep.mubr.f32.mxu0 %v4355_v24 }
  0x8e   : > { %1374 = vmatmul.mubr.f32.gmra.mrb[46].mxu1 %v3441_v21  ;;  %v4387_v38 = vsel %vm494_vm2, %v542_v5, %v5338_v7  ;;  %v5339_v5 = vld [vmem:[#allocation40_spill] sm:$0xff] }
  0x8f   : > { %1378 = vmatprep.mubr.f32.mxu1 %v4160_v56  ;;  %3151 = vmatpush1.bf16.msra.mxu1 %v3150_v31  ;;  %v1745_v31 = vld [vmem:[%s5128_s2 + $0x3a8] sm:$0xff]  ;;  %v547_v7 = vrot.slane %v5339_v5, 1 }
  0x90   : > { %969 = vmatmul.mubr.f32.gmra.mrb[32].mxu0 %v5334_v33  ;;  %3152 = vmatprep.subr.bf16.mxu1 %v5269_v1  ;;  %v3159_v43 = vpack.c.bf16 %v1745_v31, %v1744_v44  ;;  %v1748_v31 = vld [vmem:[%s5128_s2 + $0x3c0] sm:$0xff] }
  0x91   : > { %973 = vmatprep.mubr.f32.mxu0 %v4370_v57 }
  0x92   : > { %1379 = vmatmul.mubr.f32.gmra.mrb[48].mxu1 %v3493_v45 }
  0x93   : > { %1383 = vmatprep.mubr.f32.mxu1 %v4192_v19  ;;  %3154 = vmatpush1.bf16.msra.mxu1 %v3153_v62  ;;  %v1746_v62 = vld [vmem:[%s5128_s2 + $0x3b0] sm:$0xff] }
  0x94   : > { %974 = vmatmul.mubr.f32.gmra.mrb[34].mxu0 %v5335_v37  ;;  %3155 = vmatprep.subr.bf16.mxu1 %v5269_v1  ;;  %v3162_v44 = vpack.c.bf16 %v1747_v50, %v1746_v62  ;;  %v1751_v62 = vld [vmem:[%s5128_s2 + $0x3d8] sm:$0xff]  ;;  %v5341_v50 = vrot.slane %v3969_v54, 1 }
  0x95   : > { %978 = vmatprep.mubr.f32.mxu0 %v4387_v38 }
  0x96   : > { %1384 = vmatmul.mubr.f32.gmra.mrb[50].mxu1 %v3507_v52 }
  0x97   : > { %1388 = vmatprep.mubr.f32.mxu1 %v4219_v63  ;;  %3157 = vmatpush1.bf16.msra.mxu1 %v3156_v30  ;;  %v5340_v63 = vrot.slane %v3914_v2, 1 }
  0x98   : > { %979 = vmatmul.mubr.f32.gmra.mrb[36].mxu0 %v5337_v3  ;;  %3158 = vmatprep.subr.bf16.mxu1 %v5269_v1 }
  0x99   : > { %983 = vmatprep.mubr.f32.mxu0 %v4067_v58  ;;  %v4415_v30 = vsel %vm494_vm2, %v547_v7, %v5340_v63  ;;  %v552_v63 = vrot.slane %v3981_v61, 1 }
  0x9a   : > { %1389 = vmatmul.mubr.f32.gmra.mrb[52].mxu1 %v3560_v11  ;;  %v1749_v11 = vld [vmem:[%s5128_s2 + $0x3c8] sm:$0xff] }
  0x9b   : > { %1393 = vmatprep.mubr.f32.mxu1 %v4237_v8  ;;  %3160 = vmatpush1.bf16.msra.mxu1 %v3159_v43  ;;  %v3165_v7 = vpack.c.bf16 %v1749_v11, %v1748_v31  ;;  %v1750_v43 = vld [vmem:[%s5128_s2 + $0x3d0] sm:$0xff]  ;;  %v4443_v11 = vsel %vm494_vm2, %v552_v63, %v5341_v50  ;;  %v1752_v31 = vld [vmem:[%s5128_s2 + $0x3e0] sm:$0xff]  ;;  %v5342_v63 = vld [vmem:[#allocation49_spill] sm:$0xff] }
  0x9c   : > { %984 = vmatmul.mubr.f32.gmra.mrb[38].mxu0 %v3843_v34  ;;  %3161 = vmatprep.subr.bf16.mxu1 %v5269_v1  ;;  %v557_v50 = vrot.slane %v5342_v63, 1 }
  0x9d   : > { %988 = vmatprep.mubr.f32.mxu0 %v4415_v30 }
  0x9e   : > { %1394 = vmatmul.mubr.f32.gmra.mrb[54].mxu1 %v3556_v9 }
  0x9f   : > { %1398 = vmatprep.mubr.f32.mxu1 %v4262_v29  ;;  %3163 = vmatpush1.bf16.msra.mxu1 %v3162_v44  ;;  %v3168_v44 = vpack.c.bf16 %v1751_v62, %v1750_v43  ;;  %v1754_v43 = vld [vmem:[%s5128_s2 + $0x3f0] sm:$0xff]  ;;  %v1755_v62 = vld [vmem:[%s5128_s2 + $0x3f8] sm:$0xff] }
  0xa0   : > { %989 = vmatmul.mubr.f32.gmra.mrb[40].mxu0 %v5339_v5  ;;  %3164 = vmatprep.subr.bf16.mxu1 %v5269_v1 }
  0xa1   : > { %993 = vmatprep.mubr.f32.mxu0 %v4079_v41 }
  0xa2   : > { %1399 = vmatmul.mubr.f32.gmra.mrb[56].mxu1 %v3619_v49  ;;  %v1753_v49 = vld [vmem:[%s5128_s2 + $0x3e8] sm:$0xff] }
  0xa3   : > { %1403 = vmatprep.mubr.f32.mxu1 %v4277_v53  ;;  %3166 = vmatpush1.bf16.msra.mxu1 %v3165_v7  ;;  %v3171_v7 = vpack.c.bf16 %v1753_v49, %v1752_v31  ;;  %v562_v31 = vrot.slane %v3807_v25, 1 }
  0xa4   : > { %994 = vmatmul.mubr.f32.gmra.mrb[42].mxu0 %v3914_v2  ;;  %3167 = vmatprep.subr.bf16.mxu1 %v5269_v1 }
  0xa5   : > { %998 = vmatprep.mubr.f32.mxu0 %v4443_v11 }
  0xa6   : > { %1404 = vmatmul.mubr.f32.gmra.mrb[58].mxu1 %v3632_v48 }
  0xa7   : > { %1408 = vmatprep.mubr.f32.mxu1 %v4293_v0  ;;  %3169 = vmatpush1.bf16.msra.mxu1 %v3168_v44  ;;  %v5343_v0 = vrot.slane %v4014_v40, 1  ;;  %v3174_v44 = vpack.c.bf16 %v1755_v62, %v1754_v43  ;;  %v762_v62 = vrot.slane %v3895_v47, 1 }
  0xa8   : > { %999 = vmatmul.mubr.f32.gmra.mrb[44].mxu0 %v3981_v61  ;;  %3170 = vmatprep.subr.bf16.mxu1 %v5269_v1 }
  0xa9   : > { %1003 = vmatprep.mubr.f32.mxu0 %v4101_v12  ;;  %v4471_v49 = vsel %vm494_vm2, %v557_v50, %v5343_v0  ;;  %v5345_v0 = vrot.slane %v3835_v42, 1 }
  0xaa   : > { %1409 = vmatmul.mubr.f32.gmra.mrb[60].mxu1 %v3645_v60  ;;  %5344 = vst [vmem:[#allocation9_spill] sm:$0xff] %v4471_v49 }
  0xab   : > { %1413 = vmatprep.mubr.f32.mxu1 %v4308_v17  ;;  %3172 = vmatpush1.bf16.msra.mxu1 %v3171_v7  ;;  %v4486_v50 = vsel %vm494_vm2, %v562_v31, %v5345_v0  ;;  %v5347_v7 = vrot.slane %v3878_v18, 1  ;;  %v4524_v0 = vrot.slane %v3396_v59, 2  ;;  %v1761_v59 = vld [vmem:[%s5128_s2 + $0x428] sm:$0xff] }
  0xac   : > { %1004 = vmatmul.mubr.f32.gmra.mrb[46].mxu0 %v3969_v54  ;;  %3173 = vmatprep.subr.bf16.mxu1 %v5269_v1  ;;  %5346 = vst [vmem:[#allocation2_spill] sm:$0xff] %v4486_v50  ;;  %v567_v1 = vrot.slane %v3856_v23, 1 }
  0xad   : > { %1008 = vmatprep.mubr.f32.mxu0 %v4471_v49  ;;  %5351 = vst [vmem:[#allocation19_spill] sm:$0xff] %v4524_v0 }
  0xae   : > { %1414 = vmatmul.mubr.f32.gmra.mrb[62].mxu1 %v5325_v13  ;;  %v4500_v43 = vsel %vm494_vm2, %v567_v1, %v5347_v7  ;;  %v1758_v1 = vld [vmem:[%s5128_s2 + $0x410] sm:$0xff]  ;;  %v1759_v7 = vld [vmem:[%s5128_s2 + $0x418] sm:$0xff] }
  0xaf   : > { %1418 = vmatprep.mubr.f32.mxu1 %v4324_v46  ;;  %3175 = vmatpush1.bf16.msra.mxu1 %v3174_v44  ;;  %5348 = vst [vmem:[#allocation17_spill] sm:$0xff] %v4500_v43  ;;  %v5349_v44 = vrot.slane %v3904_v32, 1 }
  0xb0   : > { %1009 = vmatmul.mubr.f32.gmra.mrb[48].mxu0 %v5342_v63 }
  0xb1   : > { %1013 = vmatprep.mubr.f32.mxu0 %v4117_v28  ;;  %v4514_v31 = vsel %vm494_vm2, %v762_v62, %v5349_v44  ;;  %v3180_v62 = vpack.c.bf16 %v1759_v7, %v1758_v1  ;;  %v1760_v44 = vld [vmem:[%s5128_s2 + $0x420] sm:$0xff]  ;;  %v1762_v7 = vld [vmem:[%s5128_s2 + $0x430] sm:$0xff] }
  0xb2   : > { %1419 = vmatmul.mubr.f32.gmra.mrb[64].mxu1 %v5331_v26  ;;  %5350 = vst [vmem:[#allocation43_spill] sm:$0xff] %v4514_v31  ;;  %v3184_v1 = vpack.c.bf16 %v1761_v59, %v1760_v44  ;;  %v1764_v59 = vld [vmem:[%s5128_s2 + $0x440] sm:$0xff]  ;;  %v5355_v44 = vld [vmem:[#allocation7_spill] sm:$0xff] }
  0xb3   : > { %1423 = vmatprep.mubr.f32.mxu1 %v4339_v39 }
  0xb4   : > { %1014 = vmatmul.mubr.f32.gmra.mrb[50].mxu0 %v4014_v40 }
  0xb5   : > { %1018 = vmatprep.mubr.f32.mxu0 %v4486_v50 }
  0xb6   : > { %1424 = vmatmul.mubr.f32.gmra.mrb[66].mxu1 %v5332_v51 }
  0xb7   : > { %1428 = vmatprep.mubr.f32.mxu1 %v4355_v24 }
  0xb8   : > { %1019 = vmatmul.mubr.f32.gmra.mrb[52].mxu0 %v3807_v25 }
  0xb9   : > { %1023 = vmatprep.mubr.f32.mxu0 %v4132_v15 }
  0xba   : > { %1429 = vmatmul.mubr.f32.gmra.mrb[68].mxu1 %v5334_v33 }
  0xbb   : > { %1433 = vmatprep.mubr.f32.mxu1 %v4370_v57 }
  0xbc   : > { %1024 = vmatmul.mubr.f32.gmra.mrb[54].mxu0 %v3835_v42 }
  0xbd   : > { %1028 = vmatprep.mubr.f32.mxu0 %v4500_v43 }
  0xbe   : > { %1434 = vmatmul.mubr.f32.gmra.mrb[70].mxu1 %v5335_v37 }
  0xbf   : > { %1438 = vmatprep.mubr.f32.mxu1 %v4387_v38 }
  0xc0   : > { %1029 = vmatmul.mubr.f32.gmra.mrb[56].mxu0 %v3856_v23 }
  0xc1   : > { %1033 = vmatprep.mubr.f32.mxu0 %v4154_v16 }
  0xc2   : > { %1439 = vmatmul.mubr.f32.gmra.mrb[72].mxu1 %v5337_v3 }
  0xc3   : > { %1443 = vmatprep.mubr.f32.mxu1 %v4067_v58 }
  0xc4   : > { %1034 = vmatmul.mubr.f32.gmra.mrb[58].mxu0 %v3878_v18 }
  0xc5   : > { %1038 = vmatprep.mubr.f32.mxu0 %v4514_v31  ;;  %v5354_v31 = vld [vmem:[#allocation6_spill] sm:$0xff] }
  0xc6   : > { %1444 = vmatmul.mubr.f32.gmra.mrb[74].mxu1 %v3843_v34 }
  0xc7   : > { %1448 = vmatprep.mubr.f32.mxu1 %v4415_v30 }
  0xc8   : > { %1039 = vmatmul.mubr.f32.gmra.mrb[60].mxu0 %v3895_v47  ;;  %v5353_v47 = vld [vmem:[#allocation5_spill] sm:$0xff] }
  0xc9   : > { %1043 = vmatprep.mubr.f32.mxu0 %v4173_v14  ;;  %v5352_v14 = vld [vmem:[#allocation3_spill] sm:$0xff] }
  0xca   : > { %1449 = vmatmul.mubr.f32.gmra.mrb[76].mxu1 %v5339_v5 }
  0xcb   : > { %1453 = vmatprep.mubr.f32.mxu1 %v4079_v41 }
  0xcc   : > { %1044 = vmatmul.mubr.f32.gmra.mrb[62].mxu0 %v3904_v32  ;;  %v1763_v32 = vld [vmem:[%s5128_s2 + $0x438] sm:$0xff] }
  0xcd   : > { %2840 = vmatprep.mubr.f32.mxu0 %v4524_v0 }
  0xce   : > { %1454 = vmatmul.mubr.f32.gmra.mrb[78].mxu1 %v3914_v2 }
  0xcf   : > { %1458 = vmatprep.mubr.f32.mxu1 %v4443_v11 }
  0xd0   : > { %2841 = vmatmul.mubr.f32.vlgmr.msra.gmra.mrb[64].mxu0 %v4524_v0  ;;  %v5357_v0 = vld [vmem:[#allocation11_spill] sm:$0xff] }
  0xd1   : > { %2843 = vmatprep.mubr.f32.mxu0 %v5352_v14  ;;  %3179 = vmatpush3.bf16.msra.mxu0 %v4248_v20  ;;  %v3188_v20 = vpack.c.bf16 %v1763_v32, %v1762_v7  ;;  %v1765_v14 = vld [vmem:[%s5128_s2 + $0x448] sm:$0xff]  ;;  %v1766_v32 = vld [vmem:[%s5128_s2 + $0x450] sm:$0xff]  ;;  %v1767_v7 = vld [vmem:[%s5128_s2 + $0x458] sm:$0xff] }
  0xd2   : > { %1459 = vmatmul.mubr.f32.gmra.mrb[80].mxu1 %v3981_v61  ;;  %3181 = vmatprep.subr.bf16.mxu0 %v3180_v62 }
  0xd3   : > { %1463 = vmatprep.mubr.f32.mxu1 %v4101_v12 }
  0xd4   : > { %2844 = vmatmul.mubr.f32.gmra.mrb[66].mxu0 %v5353_v47  ;;  %v5356_v47 = vld [vmem:[#allocation8_spill] sm:$0xff] }
  0xd5   : > { %2846 = vmatprep.mubr.f32.mxu0 %v5354_v31  ;;  %3183 = vmatpush3.bf16.msra.mxu0 %v3180_v62  ;;  %v3192_v62 = vpack.c.bf16 %v1765_v14, %v1764_v59  ;;  %v1768_v59 = vld [vmem:[%s5128_s2 + $0x460] sm:$0xff]  ;;  %v1769_v14 = vld [vmem:[%s5128_s2 + $0x468] sm:$0xff] }
  0xd6   : > { %1464 = vmatmul.mubr.f32.gmra.mrb[82].mxu1 %v3969_v54  ;;  %3185 = vmatprep.subr.bf16.mxu0 %v3184_v1 }
  0xd7   : > { %1468 = vmatprep.mubr.f32.mxu1 %v4471_v49  ;;  %v5358_v49 = vld [vmem:[#allocation12_spill] sm:$0xff] }
  0xd8   : > { %2847 = vmatmul.mubr.f32.gmra.mrb[68].mxu0 %v5355_v44 }
  0xd9   : > { %2849 = vmatprep.mubr.f32.mxu0 %v5356_v47  ;;  %3187 = vmatpush3.bf16.msra.mxu0 %v3184_v1  ;;  %v3196_v1 = vpack.c.bf16 %v1767_v7, %v1766_v32  ;;  %v1770_v32 = vld [vmem:[%s5128_s2 + $0x470] sm:$0xff]  ;;  %v1771_v7 = vld [vmem:[%s5128_s2 + $0x478] sm:$0xff] }
  0xda   : > { %1469 = vmatmul.mubr.f32.gmra.mrb[84].mxu1 %v5342_v63  ;;  %3189 = vmatprep.subr.bf16.mxu0 %v3188_v20  ;;  %v5360_v63 = vld [vmem:[#allocation15_spill] sm:$0xff] }
  0xdb   : > { %1473 = vmatprep.mubr.f32.mxu1 %v4117_v28  ;;  %v5359_v28 = vld [vmem:[#allocation14_spill] sm:$0xff] }
  0xdc   : > { %2850 = vmatmul.mubr.f32.gmra.mrb[70].mxu0 %v5357_v0 }
  0xdd   : > { %2852 = vmatprep.mubr.f32.mxu0 %v5358_v49  ;;  %3191 = vmatpush3.bf16.msra.mxu0 %v3188_v20  ;;  %v3200_v20 = vpack.c.bf16 %v1769_v14, %v1768_v59  ;;  %v5363_v59 = vld [vmem:[#allocation26_spill] sm:$0xff]  ;;  %v5364_v14 = vld [vmem:[#allocation27_spill] sm:$0xff] }
  0xde   : > { %1474 = vmatmul.mubr.f32.gmra.mrb[86].mxu1 %v4014_v40  ;;  %3193 = vmatprep.subr.bf16.mxu0 %v3192_v62  ;;  %v5362_v40 = vld [vmem:[#allocation25_spill] sm:$0xff] }
  0xdf   : > { %1478 = vmatprep.mubr.f32.mxu1 %v4486_v50  ;;  %v5361_v50 = vld [vmem:[#allocation24_spill] sm:$0xff] }
  0xe0   : > { %2853 = vmatmul.mubr.f32.gmra.mrb[72].mxu0 %v5359_v28 }
  0xe1   : > { %2855 = vmatprep.mubr.f32.mxu0 %v5360_v63  ;;  %3195 = vmatpush3.bf16.msra.mxu0 %v3192_v62  ;;  %v3204_v62 = vpack.c.bf16 %v1771_v7, %v1770_v32  ;;  %v5368_v32 = vld [vmem:[#allocation32_spill] sm:$0xff] }
  0xe2   : > { %1479 = vmatmul.mubr.f32.gmra.mrb[88].mxu1 %v3807_v25  ;;  %3197 = vmatprep.subr.bf16.mxu0 %v3196_v1  ;;  %v5366_v25 = vld [vmem:[#allocation29_spill] sm:$0xff]  ;;  %v5370_v7 = vld [vmem:[#allocation44_spill] sm:$0xff] }
  0xe3   : > { %1483 = vmatprep.mubr.f32.mxu1 %v4132_v15  ;;  %v5365_v15 = vld [vmem:[#allocation28_spill] sm:$0xff] }
  0xe4   : > { %2856 = vmatmul.mubr.f32.gmra.mrb[74].mxu0 %v5361_v50 }
  0xe5   : > { %2858 = vmatprep.mubr.f32.mxu0 %v5362_v40  ;;  %3199 = vmatpush3.bf16.msra.mxu0 %v3196_v1  ;;  %v5367_v1 = vld [vmem:[#allocation31_spill] sm:$0xff] }
  0xe6   : > { %1484 = vmatmul.mubr.f32.gmra.mrb[90].mxu1 %v3835_v42  ;;  %3201 = vmatprep.subr.bf16.mxu0 %v3200_v20 }
  0xe7   : > { %1488 = vmatprep.mubr.f32.mxu1 %v4500_v43 }
  0xe8   : > { %2859 = vmatmul.mubr.f32.gmra.mrb[76].mxu0 %v5363_v59 }
  0xe9   : > { %2861 = vmatprep.mubr.f32.mxu0 %v5364_v14  ;;  %3203 = vmatpush3.bf16.msra.mxu0 %v3200_v20  ;;  %v5369_v20 = vld [vmem:[#allocation33_spill] sm:$0xff] }
  0xea   : > { %1489 = vmatmul.mubr.f32.gmra.mrb[92].mxu1 %v3856_v23  ;;  %3205 = vmatprep.subr.bf16.mxu0 %v3204_v62  ;;  %v5380_v23 = vld [vmem:[#allocation59_spill] sm:$0xff] }
  0xeb   : > { %1493 = vmatprep.mubr.f32.mxu1 %v4154_v16  ;;  %v5378_v16 = vld [vmem:[#allocation61_spill] sm:$0xff] }
  0xec   : > { %2862 = vmatmul.mubr.f32.gmra.mrb[78].mxu0 %v5365_v15 }
  0xed   : > { %2864 = vmatprep.mubr.f32.mxu0 %v5366_v25  ;;  %3207 = vmatpush3.bf16.msra.mxu0 %v3204_v62  ;;  %v5371_v62 = vld [vmem:[#allocation46_spill] sm:$0xff] }
  0xee   : > { %1494 = vmatmul.mubr.f32.gmra.mrb[94].mxu1 %v3878_v18  ;;  %v5372_v18 = vld [vmem:[#allocation47_spill] sm:$0xff] }
  0xef   : > { %1836 = vmatprep.mubr.f32.mxu1 %v3985_v36  ;;  %v5374_v36 = vld [vmem:[#allocation51_spill] sm:$0xff] }
  0xf0   : > { %2865 = vmatmul.mubr.f32.gmra.mrb[80].mxu0 %v5367_v1 }
  0xf1   : > { %2867 = vmatprep.mubr.f32.mxu0 %v5368_v32 }
  0xf2   : > { %1837 = vmatmul.mubr.f32.vlgmr.msra.gmra.mrb[96].mxu1 %v3413_v6  ;;  %v5373_v6 = vld [vmem:[#allocation50_spill] sm:$0xff] }
  0xf3   : > { %1841 = vmatprep.mubr.f32.mxu1 %v4023_v27  ;;  %v5376_v27 = vld [vmem:[#allocation54_spill] sm:$0xff] }
  0xf4   : > { %2868 = vmatmul.mubr.f32.gmra.mrb[82].mxu0 %v5369_v20 }
  0xf5   : > { %2870 = vmatprep.mubr.f32.mxu0 %v5370_v7 }
  0xf6   : > { %1842 = vmatmul.mubr.f32.gmra.mrb[98].mxu1 %v3416_v10  ;;  %v5375_v10 = vld [vmem:[#allocation52_spill] sm:$0xff] }
  0xf7   : > { %1846 = vmatprep.mubr.f32.mxu1 %v4071_v55 }
  0xf8   : > { %2871 = vmatmul.mubr.f32.gmra.mrb[84].mxu0 %v5371_v62 }
  0xf9   : > { %2873 = vmatprep.mubr.f32.mxu0 %v5372_v18 }
  0xfa   : > { %1847 = vmatmul.mubr.f32.gmra.mrb[100].mxu1 %v3445_v22 }
  0xfb   : > { %1851 = vmatprep.mubr.f32.mxu1 %v4110_v35  ;;  %v5377_v35 = vld [vmem:[#allocation56_spill] sm:$0xff] }
  0xfc   : > { %2874 = vmatmul.mubr.f32.gmra.mrb[86].mxu0 %v4027_v4 }
  0xfd   : > { %2876 = vmatprep.mubr.f32.mxu0 %v5373_v6 }
  0xfe   : > { %1852 = vmatmul.mubr.f32.gmra.mrb[102].mxu1 %v3441_v21  ;;  %v5379_v21 = vld [vmem:[#allocation37_spill] sm:$0xff] }
  0xff   : > { %1856 = vmatprep.mubr.f32.mxu1 %v4160_v56 }
 0x100   : > { %2877 = vmatmul.mubr.f32.gmra.mrb[88].mxu0 %v5374_v36 }
 0x101   : > { %2879 = vmatprep.mubr.f32.mxu0 %v5375_v10 }
 0x102   : > { %1857 = vmatmul.mubr.f32.gmra.mrb[104].mxu1 %v3493_v45  ;;  %v5381_v45 = vld [vmem:[#allocation10_spill] sm:$0xff] }
 0x103   : > { %1861 = vmatprep.mubr.f32.mxu1 %v4192_v19  ;;  %v5382_v19 = vld [vmem:[#allocation42_spill] sm:$0xff] }
 0x104   : > { %2880 = vmatmul.mubr.f32.gmra.mrb[90].mxu0 %v5376_v27  ;;  %v2762_v22 = vpop.f32.mrb[0].mxu1 }
 0x105   : > { %2882 = vmatprep.mubr.f32.mxu0 %v5377_v35  ;;  %v1115_v55 = vpop.f32.mrb[1].mxu1 }
 0x106   : > { %1862 = vmatmul.mubr.f32.gmra.mrb[106].mxu1 %v3507_v52 }
 0x107   : > { %1866 = vmatprep.mubr.f32.mxu1 %v5378_v16 }
 0x108   : > { %2883 = vmatmul.mubr.f32.gmra.mrb[92].mxu0 %v5379_v21  ;;  %v4632_v56 = vpop.f32.mrb[2].mxu1 }
 0x109   : > { %2885 = vmatprep.mubr.f32.mxu0 %v5380_v23  ;;  %v1125_v43 = vpop.f32.mrb[3].mxu1 }
 0x10a   : > { %1867 = vmatmul.mubr.f32.gmra.mrb[108].mxu1 %v5381_v45 }
 0x10b   : > { %1871 = vmatprep.mubr.f32.mxu1 %v4237_v8  ;;  %v5383_v8 = vld [vmem:[#allocation13_spill] sm:$0xff] }
 0x10c   : > { %2886 = vmatmul.mubr.f32.gmra.mrb[94].mxu0 %v5382_v19  ;;  %v4638_v42 = vpop.f32.mrb[4].mxu1 }
 0x10d   : > { %2920 = vmatprep.mubr.f32.mxu0 %v5354_v31  ;;  %v4641_v52 = vpop.f32.mrb[5].mxu1 }
 0x10e   : > { %1872 = vmatmul.mubr.f32.gmra.mrb[110].mxu1 %v3556_v9 }
 0x10f   : > { %1876 = vmatprep.mubr.f32.mxu1 %v4262_v29  ;;  %v5384_v29 = vld [vmem:[#allocation16_spill] sm:$0xff] }
 0x110   : > { %2921 = vmatmul.mubr.f32.vlgmr.msra.gmra.mrb[96].mxu0 %v5355_v44  ;;  %v4646_v16 = vpop.f32.mrb[6].mxu1 }
 0x111   : > { %2923 = vmatprep.mubr.f32.mxu0 %v5356_v47  ;;  %v4649_v45 = vpop.f32.mrb[7].mxu1 }
 0x112   : > { %1877 = vmatmul.mubr.f32.gmra.mrb[112].mxu1 %v5383_v8 }
 0x113   : > { %1881 = vmatprep.mubr.f32.mxu1 %v4277_v53 }
 0x114   : > { %2924 = vmatmul.mubr.f32.gmra.mrb[98].mxu0 %v5357_v0  ;;  %v4654_v31 = vpop.f32.mrb[8].mxu1 }
 0x115   : > { %2926 = vmatprep.mubr.f32.mxu0 %v5358_v49  ;;  %v4657_v9 = vpop.f32.mrb[9].mxu1 }
 0x116   : > { %1882 = vmatmul.mubr.f32.gmra.mrb[114].mxu1 %v3632_v48 }
 0x117   : > { %1886 = vmatprep.mubr.f32.mxu1 %v5384_v29 }
 0x118   : > { %2927 = vmatmul.mubr.f32.gmra.mrb[100].mxu0 %v5359_v28  ;;  %v4662_v44 = vpop.f32.mrb[10].mxu1 }
 0x119   : > { %2929 = vmatprep.mubr.f32.mxu0 %v5360_v63  ;;  %v4665_v47 = vpop.f32.mrb[11].mxu1 }
 0x11a   : > { %1887 = vmatmul.mubr.f32.gmra.mrb[116].mxu1 %v3645_v60 }
 0x11b   : > { %1891 = vmatprep.mubr.f32.mxu1 %v4308_v17 }
 0x11c   : > { %2930 = vmatmul.mubr.f32.gmra.mrb[102].mxu0 %v5361_v50  ;;  %v4670_v53 = vpop.f32.mrb[12].mxu1 }
 0x11d   : > { %2932 = vmatprep.mubr.f32.mxu0 %v5362_v40  ;;  %v4673_v48 = vpop.f32.mrb[13].mxu1 }
 0x11e   : > { %1892 = vmatmul.mubr.f32.gmra.mrb[118].mxu1 %v5325_v13 }
 0x11f   : > { %1896 = vmatprep.mubr.f32.mxu1 %v4324_v46 }
 0x120   : > { %2933 = vmatmul.mubr.f32.gmra.mrb[104].mxu0 %v5363_v59  ;;  %v4678_v28 = vpop.f32.mrb[14].mxu1 }
 0x121   : > { %2935 = vmatprep.mubr.f32.mxu0 %v5364_v14  ;;  %v4681_v60 = vpop.f32.mrb[15].mxu1 }
 0x122   : > { %1897 = vmatmul.mubr.f32.gmra.mrb[120].mxu1 %v5331_v26 }
 0x123   : > { %v890_v17 = vpop.f32.mrb[0].mxu0  ;;  %1901 = vmatprep.mubr.f32.mxu1 %v4339_v39 }
 0x124   : > { %v4685_v40 = vadd.f32 %v1115_v55, %v890_v17  ;;  %2936 = vmatmul.mubr.f32.gmra.mrb[106].mxu0 %v5365_v15  ;;  %v892_v13 = vpop.f32.mrb[1].mxu0  ;;  %v5389_v17 = vld [vmem:[#allocation49_spill] sm:$0xff] }
 0x125   : > { %v4688_v63 = vpop.f32.mrb[16].mxu1  ;;  %2938 = vmatprep.mubr.f32.mxu0 %v5366_v25 }
 0x126   : > { %v4691_v46 = vpop.f32.mrb[17].mxu1  ;;  %1902 = vmatmul.mubr.f32.gmra.mrb[122].mxu1 %v5332_v51 }
 0x127   : > { %v895_v49 = vpop.f32.mrb[2].mxu0  ;;  %1906 = vmatprep.mubr.f32.mxu1 %v4355_v24 }
 0x128   : > { %v4695_v26 = vadd.f32 %v2762_v22, %v895_v49  ;;  %2939 = vmatmul.mubr.f32.gmra.mrb[108].mxu0 %v5367_v1  ;;  %v897_v39 = vpop.f32.mrb[3].mxu0 }
 0x129   : > { %v4698_v50 = vpop.f32.mrb[18].mxu1  ;;  %2941 = vmatprep.mubr.f32.mxu0 %v5368_v32 }
 0x12a   : > { %v4701_v15 = vpop.f32.mrb[19].mxu1  ;;  %1907 = vmatmul.mubr.f32.gmra.mrb[124].mxu1 %v5334_v33 }
 0x12b   : > { %v900_v25 = vpop.f32.mrb[4].mxu0  ;;  %1911 = vmatprep.mubr.f32.mxu1 %v4370_v57 }
 0x12c   : > { %v4705_v51 = vadd.f32 %v1125_v43, %v900_v25  ;;  %2942 = vmatmul.mubr.f32.gmra.mrb[110].mxu0 %v5369_v20  ;;  %v902_v24 = vpop.f32.mrb[5].mxu0 }
 0x12d   : > { %v4708_v0 = vpop.f32.mrb[20].mxu1  ;;  %2944 = vmatprep.mubr.f32.mxu0 %v5370_v7  ;;  %v5391_v24 = vld [vmem:[#allocation48_spill] sm:$0xff] }
 0x12e   : > { %v4711_v59 = vpop.f32.mrb[21].mxu1  ;;  %1912 = vmatmul.mubr.f32.gmra.mrb[126].mxu1 %v5335_v37 }
 0x12f   : > { %v905_v14 = vpop.f32.mrb[6].mxu0  ;;  %1916 = vmatprep.mubr.f32.mxu1 %v4387_v38 }
 0x130   : > { %v4716_v33 = vadd.f32 %v4632_v56, %v905_v14  ;;  %2945 = vmatmul.mubr.f32.gmra.mrb[112].mxu0 %v5371_v62  ;;  %v907_v57 = vpop.f32.mrb[7].mxu0  ;;  %v5385_v56 = vld [vmem:[#allocation60_spill] sm:$0xff]  ;;  %v5392_v14 = vld [vmem:[#allocation2_spill] sm:$0xff] }
 0x131   : > { %v4719_v43 = vpop.f32.mrb[22].mxu1  ;;  %2947 = vmatprep.mubr.f32.mxu0 %v5372_v18 }
 0x132   : > { %v4722_v1 = vpop.f32.mrb[23].mxu1  ;;  %1917 = vmatmul.mubr.f32.gmra.mrb[128].mxu1 %v5337_v3 }
 0x133   : > { %v910_v32 = vpop.f32.mrb[8].mxu0  ;;  %1921 = vmatprep.mubr.f32.mxu1 %v4067_v58 }
 0x134   : > { %v4727_v37 = vadd.f32 %v4641_v52, %v910_v32  ;;  %v912_v38 = vpop.f32.mrb[9].mxu0  ;;  %2948 = vmatmul.mubr.f32.gmra.mrb[114].mxu0 %v4027_v4 }
 0x135   : > { %v4730_v20 = vpop.f32.mrb[24].mxu1  ;;  %2950 = vmatprep.mubr.f32.mxu0 %v5373_v6 }
 0x136   : > { %v4733_v7 = vpop.f32.mrb[25].mxu1  ;;  %1922 = vmatmul.mubr.f32.gmra.mrb[130].mxu1 %v3843_v34 }
 0x137   : > { %v915_v18 = vpop.f32.mrb[10].mxu0  ;;  %1926 = vmatprep.mubr.f32.mxu1 %v4415_v30 }
 0x138   : > { %v4738_v3 = vadd.f32 %v4638_v42, %v915_v18  ;;  %v917_v58 = vpop.f32.mrb[11].mxu0  ;;  %2951 = vmatmul.mubr.f32.gmra.mrb[116].mxu0 %v5374_v36 }
 0x139   : > { %v4741_v62 = vpop.f32.mrb[26].mxu1  ;;  %2953 = vmatprep.mubr.f32.mxu0 %v5375_v10  ;;  %v5393_v58 = vld [vmem:[#allocation30_spill] sm:$0xff] }
 0x13a   : > { %v4744_v4 = vpop.f32.mrb[27].mxu1  ;;  %1927 = vmatmul.mubr.f32.gmra.mrb[132].mxu1 %v5339_v5 }
 0x13b   : > { %v920_v6 = vpop.f32.mrb[12].mxu0  ;;  %1931 = vmatprep.mubr.f32.mxu1 %v4079_v41 }
 0x13c   : > { %v4749_v34 = vadd.f32 %v4649_v45, %v920_v6  ;;  %v922_v30 = vpop.f32.mrb[13].mxu0  ;;  %2954 = vmatmul.mubr.f32.gmra.mrb[118].mxu0 %v5376_v27  ;;  %v5387_v45 = vld [vmem:[#allocation45_spill] sm:$0xff] }
 0x13d   : > { %v4752_v42 = vpop.f32.mrb[28].mxu1  ;;  %2956 = vmatprep.mubr.f32.mxu0 %v5377_v35 }
 0x13e   : > { %v4755_v36 = vpop.f32.mrb[29].mxu1  ;;  %1932 = vmatmul.mubr.f32.gmra.mrb[134].mxu1 %v3914_v2 }
 0x13f   : > { %v925_v10 = vpop.f32.mrb[14].mxu0  ;;  %1936 = vmatprep.mubr.f32.mxu1 %v4443_v11 }
 0x140   : > { %v4760_v5 = vadd.f32 %v4646_v16, %v925_v10  ;;  %v927_v41 = vpop.f32.mrb[15].mxu0  ;;  %2957 = vmatmul.mubr.f32.gmra.mrb[120].mxu0 %v5379_v21 }
 0x141   : > { %v4763_v22 = vpop.f32.mrb[30].mxu1  ;;  %2959 = vmatprep.mubr.f32.mxu0 %v5380_v23 }
 0x142   : > { %v4766_v27 = vpop.f32.mrb[31].mxu1  ;;  %1937 = vmatmul.mubr.f32.gmra.mrb[136].mxu1 %v3981_v61  ;;  %v5386_v61 = vld [vmem:[#allocation9_spill] sm:$0xff] }
 0x143   : > { %v930_v35 = vpop.f32.mrb[16].mxu0  ;;  %1941 = vmatprep.mubr.f32.mxu1 %v4101_v12 }
 0x144   : > { %v4771_v2 = vadd.f32 %v4657_v9, %v930_v35  ;;  %v932_v11 = vpop.f32.mrb[17].mxu0  ;;  %2960 = vmatmul.mubr.f32.gmra.mrb[122].mxu0 %v5382_v19  ;;  %v5388_v19 = vld [vmem:[#allocation19_spill] sm:$0xff] }
 0x145   : > { %v1340_v55 = vpop.f32.mrb[32].mxu1  ;;  %2962 = vmatprep.mubr.f32.mxu0 %v5385_v56  ;;  %v5395_v11 = vld [vmem:[#allocation35_spill] sm:$0xff] }
 0x146   : > { %v4776_v21 = vadd.f32 %v1340_v55, %v4685_v40  ;;  %v1342_v23 = vpop.f32.mrb[33].mxu1  ;;  %1942 = vmatmul.mubr.f32.gmra.mrb[138].mxu1 %v3969_v54  ;;  %v5390_v54 = vld [vmem:[#allocation53_spill] sm:$0xff] }
 0x147   : > { %v935_v52 = vpop.f32.mrb[18].mxu0  ;;  %1946 = vmatprep.mubr.f32.mxu1 %v5386_v61 }
 0x148   : > { %v4781_v12 = vadd.f32 %v4654_v31, %v935_v52  ;;  %v937_v16 = vpop.f32.mrb[19].mxu0  ;;  %2963 = vmatmul.mubr.f32.gmra.mrb[124].mxu0 %v5387_v45 }
 0x149   : > { %v1345_v8 = vpop.f32.mrb[34].mxu1  ;;  %2965 = vmatprep.mubr.f32.mxu0 %v5388_v19  ;;  %v5397_v16 = vld [vmem:[#allocation36_spill] sm:$0xff] }
 0x14a   : > { %v4786_v9 = vadd.f32 %v1345_v8, %v4695_v26  ;;  %v1347_v29 = vpop.f32.mrb[35].mxu1  ;;  %1947 = vmatmul.mubr.f32.gmra.mrb[140].mxu1 %v5389_v17  ;;  %v5398_v8 = vld [vmem:[#allocation57_spill] sm:$0xff] }
 0x14b   : > { %v940_v40 = vpop.f32.mrb[20].mxu0  ;;  %1951 = vmatprep.mubr.f32.mxu1 %v5390_v54 }
 0x14c   : > { %v4791_v13 = vadd.f32 %v4665_v47, %v940_v40  ;;  %v942_v31 = vpop.f32.mrb[21].mxu0  ;;  %2966 = vmatmul.mubr.f32.gmra.mrb[126].mxu0 %v5388_v19 }
 0x14d   : > { %v1350_v49 = vpop.f32.mrb[36].mxu1  ;;  %v5400_v31 = vld [vmem:[#allocation43_spill] sm:$0xff] }
 0x14e   : > { %v4795_v39 = vadd.f32 %v1350_v49, %v4705_v51  ;;  %v1352_v25 = vpop.f32.mrb[37].mxu1  ;;  %1952 = vmatmul.mubr.f32.gmra.mrb[142].mxu1 %v5391_v24  ;;  %v5394_v51 = vld [vmem:[#allocation55_spill] sm:$0xff] }
 0x14f   : > { %v945_v26 = vpop.f32.mrb[22].mxu0  ;;  %1956 = vmatprep.mubr.f32.mxu1 %v5392_v14 }
 0x150   : > { %v4800_v57 = vadd.f32 %v4662_v44, %v945_v26  ;;  %v947_v32 = vpop.f32.mrb[23].mxu0 }
 0x151   : > { %v1355_v38 = vpop.f32.mrb[38].mxu1  ;;  %v5402_v32 = vld [vmem:[#allocation58_spill] sm:$0xff] }
 0x152   : > { %v4803_v47 = vadd.f32 %v1355_v38, %v4716_v33  ;;  %v1357_v18 = vpop.f32.mrb[39].mxu1  ;;  %1957 = vmatmul.mubr.f32.gmra.mrb[144].mxu1 %v5393_v58  ;;  %v5396_v33 = vld [vmem:[#allocation17_spill] sm:$0xff] }
 0x153   : > { %v950_v6 = vpop.f32.mrb[24].mxu0  ;;  %1961 = vmatprep.mubr.f32.mxu1 %v5394_v51 }
 0x154   : > { %v4808_v30 = vadd.f32 %v4673_v48, %v950_v6  ;;  %v952_v10 = vpop.f32.mrb[25].mxu0 }
 0x155   : > { %v1360_v41 = vpop.f32.mrb[40].mxu1  ;;  %v5404_v10 = vld [vmem:[#allocation62_spill] sm:$0xff] }
 0x156   : > { %v4811_v35 = vadd.f32 %v1360_v41, %v4727_v37  ;;  %v1362_v44 = vpop.f32.mrb[41].mxu1  ;;  %1962 = vmatmul.mubr.f32.gmra.mrb[146].mxu1 %v5395_v11 }
 0x157   : > { %v955_v55 = vpop.f32.mrb[26].mxu0  ;;  %1966 = vmatprep.mubr.f32.mxu1 %v5396_v33 }
 0x158   : > { %v1181_v56 = vadd.f32 %v4670_v53, %v955_v55  ;;  %v957_v23 = vpop.f32.mrb[27].mxu0  ;;  %v5399_v53 = vld [vmem:[#allocation38_spill] sm:$0xff] }
 0x159   : > { %v1365_v52 = vpop.f32.mrb[42].mxu1 }
 0x15a   : > { %v4817_v61 = vadd.f32 %v1365_v52, %v4738_v3  ;;  %v1367_v48 = vpop.f32.mrb[43].mxu1  ;;  %1967 = vmatmul.mubr.f32.gmra.mrb[148].mxu1 %v5397_v16 }
 0x15b   : > { %v960_v45 = vpop.f32.mrb[28].mxu0  ;;  %1971 = vmatprep.mubr.f32.mxu1 %v5398_v8 }
 0x15c   : > { %v1186_v37 = vadd.f32 %v4681_v60, %v960_v45  ;;  %v962_v19 = vpop.f32.mrb[29].mxu0  ;;  %v5401_v60 = vld [vmem:[#allocation39_spill] sm:$0xff] }
 0x15d   : > { %v1370_v29 = vpop.f32.mrb[44].mxu1 }
 0x15e   : > { %v4823_v17 = vadd.f32 %v1370_v29, %v4749_v34  ;;  %v1372_v40 = vpop.f32.mrb[45].mxu1  ;;  %1972 = vmatmul.mubr.f32.gmra.mrb[150].mxu1 %v5399_v53 }
 0x15f   : > { %v965_v54 = vpop.f32.mrb[30].mxu0  ;;  %1976 = vmatprep.mubr.f32.mxu1 %v5400_v31 }
 0x160   : > { %v1191_v3 = vadd.f32 %v4678_v28, %v965_v54  ;;  %v967_v49 = vpop.f32.mrb[31].mxu0  ;;  %v5403_v28 = vld [vmem:[#allocation41_spill] sm:$0xff] }
 0x161   : > { %v1375_v25 = vpop.f32.mrb[46].mxu1 }
 0x162   : > { %v4829_v24 = vadd.f32 %v1375_v25, %v4760_v5  ;;  %v1377_v26 = vpop.f32.mrb[47].mxu1  ;;  %1977 = vmatmul.mubr.f32.gmra.mrb[152].mxu1 %v5401_v60 }
 0x163   : > { %v970_v14 = vpop.f32.mrb[32].mxu0  ;;  %1981 = vmatprep.mubr.f32.mxu1 %v5402_v32 }
 0x164   : > { %v1196_v34 = vadd.f32 %v4691_v46, %v970_v14  ;;  %v972_v38 = vpop.f32.mrb[33].mxu0  ;;  %v5405_v46 = vld [vmem:[#allocation4_spill] sm:$0xff] }
 0x165   : > { %v1380_v18 = vpop.f32.mrb[48].mxu1 }
 0x166   : > { %v4835_v58 = vadd.f32 %v1380_v18, %v4771_v2  ;;  %v1382_v6 = vpop.f32.mrb[49].mxu1  ;;  %1982 = vmatmul.mubr.f32.gmra.mrb[154].mxu1 %v5403_v28 }
 0x167   : > { %v975_v51 = vpop.f32.mrb[34].mxu0  ;;  %1986 = vmatprep.mubr.f32.mxu1 %v5404_v10 }
 0x168   : > { %v1201_v5 = vadd.f32 %v4688_v63, %v975_v51  ;;  %v977_v41 = vpop.f32.mrb[35].mxu0 }
 0x169   : > { %v1385_v44 = vpop.f32.mrb[50].mxu1 }
 0x16a   : > { %v4841_v11 = vadd.f32 %v1385_v44, %v4781_v12  ;;  %v1387_v55 = vpop.f32.mrb[51].mxu1  ;;  %1987 = vmatmul.mubr.f32.gmra.mrb[156].mxu1 %v5405_v46 }
 0x16b   : > { %v980_v33 = vpop.f32.mrb[36].mxu0  ;;  %1991 = vmatprep.mubr.f32.mxu1 %v5404_v10 }
 0x16c   : > { %v1206_v2 = vadd.f32 %v4701_v15, %v980_v33  ;;  %v982_v23 = vpop.f32.mrb[37].mxu0 }
 0x16d   : > { %v1390_v52 = vpop.f32.mrb[52].mxu1 }
 0x16e   : > { %v4847_v48 = vadd.f32 %v1390_v52, %v4791_v13  ;;  %v1392_v16 = vpop.f32.mrb[53].mxu1  ;;  %1992 = vmatmul.mubr.f32.gmra.mrb[158].mxu1 %v5405_v46 }
 0x16f   : > { %v985_v63 = vpop.f32.mrb[38].mxu0 }
 0x170   : > { %v1211_v12 = vadd.f32 %v4698_v50, %v985_v63  ;;  %v987_v45 = vpop.f32.mrb[39].mxu0 }
 0x171   : > { %v1395_v8 = vpop.f32.mrb[54].mxu1 }
 0x172   : > { %v4852_v19 = vadd.f32 %v1395_v8, %v4800_v57  ;;  %v1397_v29 = vpop.f32.mrb[55].mxu1 }
 0x173   : > { %v990_v40 = vpop.f32.mrb[40].mxu0 }
 0x174   : > { %v1216_v15 = vadd.f32 %v4711_v59, %v990_v40  ;;  %v992_v53 = vpop.f32.mrb[41].mxu0 }
 0x175   : > { %v1400_v54 = vpop.f32.mrb[56].mxu1 }
 0x176   : > { %v4856_v13 = vadd.f32 %v1400_v54, %v4808_v30  ;;  %v1402_v31 = vpop.f32.mrb[57].mxu1 }
 0x177   : > { %v995_v49 = vpop.f32.mrb[42].mxu0 }
 0x178   : > { %v1221_v25 = vadd.f32 %v4708_v0, %v995_v49  ;;  %v997_v26 = vpop.f32.mrb[43].mxu0 }
 0x179   : > { %v1405_v50 = vpop.f32.mrb[58].mxu1 }
 0x17a   : > { %v4859_v60 = vadd.f32 %v1405_v50, %v1181_v56  ;;  %v1407_v14 = vpop.f32.mrb[59].mxu1 }
 0x17b   : > { %v1000_v57 = vpop.f32.mrb[44].mxu0 }
 0x17c   : > { %v1226_v32 = vadd.f32 %v4722_v1, %v1000_v57  ;;  %v1002_v38 = vpop.f32.mrb[45].mxu0 }
 0x17d   : > { %v1410_v18 = vpop.f32.mrb[60].mxu1 }
 0x17e   : > { %v4862_v59 = vadd.f32 %v1410_v18, %v1186_v37  ;;  %v1412_v6 = vpop.f32.mrb[61].mxu1 }
 0x17f   : > { %v1005_v28 = vpop.f32.mrb[46].mxu0 }
 0x180   : > { %v1231_v30 = vadd.f32 %v4719_v43, %v1005_v28  ;;  %v1007_v51 = vpop.f32.mrb[47].mxu0 }
 0x181   : > { %v1415_v10 = vpop.f32.mrb[62].mxu1 }
 0x182   : > { %v4865_v41 = vadd.f32 %v1415_v10, %v1191_v3  ;;  %v1417_v0 = vpop.f32.mrb[63].mxu1 }
 0x183   : > { %v1010_v44 = vpop.f32.mrb[48].mxu0 }
 0x184   : > { %v1236_v56 = vadd.f32 %v4733_v7, %v1010_v44  ;;  %v1012_v55 = vpop.f32.mrb[49].mxu0 }
 0x185   : > { %v1420_v46 = vpop.f32.mrb[64].mxu1 }
 0x186   : > { %v4868_v33 = vadd.f32 %v1420_v46, %v1196_v34  ;;  %v1422_v1 = vpop.f32.mrb[65].mxu1 }
 0x187   : > { %v1015_v23 = vpop.f32.mrb[50].mxu0 }
 0x188   : > { %v1241_v37 = vadd.f32 %v4730_v20, %v1015_v23  ;;  %v1017_v52 = vpop.f32.mrb[51].mxu0 }
 0x189   : > { %v1425_v16 = vpop.f32.mrb[66].mxu1 }
 0x18a   : > { %v4871_v63 = vadd.f32 %v1425_v16, %v1201_v5  ;;  %v1427_v43 = vpop.f32.mrb[67].mxu1 }
 0x18b   : > { %v1020_v45 = vpop.f32.mrb[52].mxu0 }
 0x18c   : > { %v1246_v3 = vadd.f32 %v4744_v4, %v1020_v45  ;;  %v1022_v8 = vpop.f32.mrb[53].mxu0 }
 0x18d   : > { %v1430_v29 = vpop.f32.mrb[68].mxu1 }
 0x18e   : > { %v4874_v40 = vadd.f32 %v1430_v29, %v1206_v2  ;;  %v1432_v7 = vpop.f32.mrb[69].mxu1 }
 0x18f   : > { %v1025_v53 = vpop.f32.mrb[54].mxu0 }
 0x190   : > { %v1251_v34 = vadd.f32 %v4741_v62, %v1025_v53  ;;  %v1027_v54 = vpop.f32.mrb[55].mxu0 }
 0x191   : > { %v1435_v31 = vpop.f32.mrb[70].mxu1 }
 0x192   : > { %v4877_v49 = vadd.f32 %v1435_v31, %v1211_v12  ;;  %v1437_v20 = vpop.f32.mrb[71].mxu1 }
 0x193   : > { %v1030_v26 = vpop.f32.mrb[56].mxu0 }
 0x194   : > { %v1256_v5 = vadd.f32 %v4755_v36, %v1030_v26  ;;  %v1032_v50 = vpop.f32.mrb[57].mxu0 }
 0x195   : > { %v1440_v14 = vpop.f32.mrb[72].mxu1 }
 0x196   : > { %v4880_v57 = vadd.f32 %v1440_v14, %v1216_v15  ;;  %v1442_v4 = vpop.f32.mrb[73].mxu1 }
 0x197   : > { %v1035_v38 = vpop.f32.mrb[58].mxu0 }
 0x198   : > { %v1261_v2 = vadd.f32 %v4752_v42, %v1035_v38  ;;  %v1037_v18 = vpop.f32.mrb[59].mxu0 }
 0x199   : > { %v1445_v6 = vpop.f32.mrb[74].mxu1 }
 0x19a   : > { %v4883_v28 = vadd.f32 %v1445_v6, %v1221_v25  ;;  %v1447_v62 = vpop.f32.mrb[75].mxu1 }
 0x19b   : > { %v1040_v51 = vpop.f32.mrb[60].mxu0 }
 0x19c   : > { %v1266_v12 = vadd.f32 %v4766_v27, %v1040_v51  ;;  %v1042_v10 = vpop.f32.mrb[61].mxu0 }
 0x19d   : > { %v1450_v0 = vpop.f32.mrb[76].mxu1 }
 0x19e   : > { %v4886_v44 = vadd.f32 %v1450_v0, %v1226_v32  ;;  %v1452_v36 = vpop.f32.mrb[77].mxu1 }
 0x19f   : > { %v1045_v55 = vpop.f32.mrb[62].mxu0 }
 0x1a0   : > { %v1271_v15 = vadd.f32 %v4763_v22, %v1045_v55  ;;  %v1047_v46 = vpop.f32.mrb[63].mxu0 }
 0x1a1   : > { %v1455_v1 = vpop.f32.mrb[78].mxu1 }
 0x1a2   : > { %v4889_v23 = vadd.f32 %v1455_v1, %v1231_v30  ;;  %v1457_v42 = vpop.f32.mrb[79].mxu1 }
 0x1a3   : > { %v2842_v52 = vpop.f32.mrb[64].mxu0 }
 0x1a4   : > { %v4892_v25 = vadd.f32 %v2842_v52, %v4786_v9  ;;  %v1565_v16 = vpop.f32.mrb[65].mxu0 }
 0x1a5   : > { %v1460_v43 = vpop.f32.mrb[80].mxu1  ;;  %v4895_v27 = vadd.f32 %v1565_v16, %v4776_v21 }
 0x1a6   : > { %v4897_v32 = vadd.f32 %v1460_v43, %v1236_v56  ;;  %v1462_v45 = vpop.f32.mrb[81].mxu1 }
 0x1a7   : > { %v2845_v8 = vpop.f32.mrb[66].mxu0 }
 0x1a8   : > { %v4900_v22 = vadd.f32 %v2845_v8, %v4803_v47  ;;  %v1575_v29 = vpop.f32.mrb[67].mxu0 }
 0x1a9   : > { %v1465_v30 = vpop.f32.mrb[82].mxu1  ;;  %v4903_v7 = vadd.f32 %v1575_v29, %v4795_v39 }
 0x1aa   : > { %v4905_v53 = vadd.f32 %v1465_v30, %v1241_v37  ;;  %v1467_v9 = vpop.f32.mrb[83].mxu1 }
 0x1ab   : > { %v2848_v54 = vpop.f32.mrb[68].mxu0 }
 0x1ac   : > { %v4908_v31 = vadd.f32 %v2848_v54, %v4817_v61  ;;  %v1585_v21 = vpop.f32.mrb[69].mxu0 }
 0x1ad   : > { %v1470_v56 = vpop.f32.mrb[84].mxu1  ;;  %v4911_v20 = vadd.f32 %v1585_v21, %v4811_v35 }
 0x1ae   : > { %v4913_v26 = vadd.f32 %v1470_v56, %v1246_v3  ;;  %v1472_v47 = vpop.f32.mrb[85].mxu1 }
 0x1af   : > { %v2851_v50 = vpop.f32.mrb[70].mxu0 }
 0x1b0   : > { %v4916_v14 = vadd.f32 %v2851_v50, %v4829_v24  ;;  %v1595_v39 = vpop.f32.mrb[71].mxu0 }
 0x1b1   : > { %v1475_v37 = vpop.f32.mrb[86].mxu1  ;;  %v4919_v4 = vadd.f32 %v1595_v39, %v4823_v17 }
 0x1b2   : > { %v1476_v38 = vadd.f32 %v1475_v37, %v1251_v34  ;;  %v1477_v61 = vpop.f32.mrb[87].mxu1 }
 0x1b3   : > { %v2854_v18 = vpop.f32.mrb[72].mxu0 }
 0x1b4   : > { %v4922_v6 = vadd.f32 %v2854_v18, %v4841_v11  ;;  %v1605_v35 = vpop.f32.mrb[73].mxu0 }
 0x1b5   : > { %v1480_v62 = vpop.f32.mrb[88].mxu1  ;;  %v4925_v3 = vadd.f32 %v1605_v35, %v4835_v58 }
 0x1b6   : > { %v1481_v51 = vadd.f32 %v1480_v62, %v1256_v5  ;;  %v1482_v10 = vpop.f32.mrb[89].mxu1 }
 0x1b7   : > { %v2857_v24 = vpop.f32.mrb[74].mxu0 }
 0x1b8   : > { %v4928_v0 = vadd.f32 %v2857_v24, %v4852_v19  ;;  %v1615_v36 = vpop.f32.mrb[75].mxu0 }
 0x1b9   : > { %v1485_v17 = vpop.f32.mrb[90].mxu1  ;;  %v4931_v34 = vadd.f32 %v1615_v36, %v4847_v48 }
 0x1ba   : > { %v1486_v55 = vadd.f32 %v1485_v17, %v1261_v2  ;;  %v1487_v46 = vpop.f32.mrb[91].mxu1 }
 0x1bb   : > { %v2860_v11 = vpop.f32.mrb[76].mxu0 }
 0x1bc   : > { %v4934_v1 = vadd.f32 %v2860_v11, %v4859_v60  ;;  %v1625_v42 = vpop.f32.mrb[77].mxu0 }
 0x1bd   : > { %v1490_v58 = vpop.f32.mrb[92].mxu1  ;;  %v4937_v5 = vadd.f32 %v1625_v42, %v4856_v13 }
 0x1be   : > { %v1491_v52 = vadd.f32 %v1490_v58, %v1266_v12  ;;  %v1492_v16 = vpop.f32.mrb[93].mxu1 }
 0x1bf   : > { %v2863_v19 = vpop.f32.mrb[78].mxu0 }
 0x1c0   : > { %v4940_v43 = vadd.f32 %v2863_v19, %v4865_v41  ;;  %v1635_v45 = vpop.f32.mrb[79].mxu0 }
 0x1c1   : > { %v1495_v48 = vpop.f32.mrb[94].mxu1  ;;  %v4943_v2 = vadd.f32 %v1635_v45, %v4862_v59 }
 0x1c2   : > { %v1496_v8 = vadd.f32 %v1495_v48, %v1271_v15  ;;  %v1497_v29 = vpop.f32.mrb[95].mxu1 }
 0x1c3   : > { %v2866_v60 = vpop.f32.mrb[80].mxu0 }
 0x1c4   : > { %v4946_v30 = vadd.f32 %v2866_v60, %v4871_v63  ;;  %v1645_v9 = vpop.f32.mrb[81].mxu0 }
 0x1c5   : > { %v4949_v13 = vadd.f32 %v1645_v9, %v4868_v33  ;;  %v1838_v12 = vpop.f32.mrb[96].mxu1 }
 0x1c6   : > { %v1840_v54 = vpop.f32.mrb[97].mxu1 }
 0x1c7   : > { %v2869_v21 = vpop.f32.mrb[82].mxu0 }
 0x1c8   : > { %v4952_v41 = vadd.f32 %v2869_v21, %v4877_v49  ;;  %v1655_v56 = vpop.f32.mrb[83].mxu0 }
 0x1c9   : > { %v4955_v59 = vadd.f32 %v1655_v56, %v4874_v40  ;;  %v1843_v15 = vpop.f32.mrb[98].mxu1 }
 0x1ca   : > { %v1845_v47 = vpop.f32.mrb[99].mxu1 }
 0x1cb   : > { %v2872_v50 = vpop.f32.mrb[84].mxu0 }
 0x1cc   : > { %v4958_v63 = vadd.f32 %v2872_v50, %v4883_v28  ;;  %v1665_v39 = vpop.f32.mrb[85].mxu0 }
 0x1cd   : > { %v4961_v33 = vadd.f32 %v1665_v39, %v4880_v57  ;;  %v1848_v37 = vpop.f32.mrb[100].mxu1 }
 0x1ce   : > { %v1850_v61 = vpop.f32.mrb[101].mxu1 }
 0x1cf   : > { %v2875_v18 = vpop.f32.mrb[86].mxu0 }
 0x1d0   : > { %v4964_v49 = vadd.f32 %v2875_v18, %v4889_v23  ;;  %v1675_v35 = vpop.f32.mrb[87].mxu0 }
 0x1d1   : > { %v4967_v40 = vadd.f32 %v1675_v35, %v4886_v44  ;;  %v1853_v62 = vpop.f32.mrb[102].mxu1 }
 0x1d2   : > { %v1855_v10 = vpop.f32.mrb[103].mxu1 }
 0x1d3   : > { %v2878_v24 = vpop.f32.mrb[88].mxu0 }
 0x1d4   : > { %v4970_v28 = vadd.f32 %v2878_v24, %v4905_v53  ;;  %v1685_v36 = vpop.f32.mrb[89].mxu0 }
 0x1d5   : > { %v4973_v57 = vadd.f32 %v1685_v36, %v4897_v32  ;;  %v1858_v17 = vpop.f32.mrb[104].mxu1 }
 0x1d6   : > { %v1860_v46 = vpop.f32.mrb[105].mxu1 }
 0x1d7   : > { %v2881_v11 = vpop.f32.mrb[90].mxu0 }
 0x1d8   : > { %v4975_v42 = vadd.f32 %v2881_v11, %v1476_v38  ;;  %v1695_v23 = vpop.f32.mrb[91].mxu0 }
 0x1d9   : > { %v4978_v44 = vadd.f32 %v1695_v23, %v4913_v26  ;;  %v1863_v58 = vpop.f32.mrb[106].mxu1 }
 0x1da   : > { %v1865_v16 = vpop.f32.mrb[107].mxu1 }
 0x1db   : > { %v2884_v19 = vpop.f32.mrb[92].mxu0 }
 0x1dc   : > { %v4980_v45 = vadd.f32 %v2884_v19, %v1486_v55  ;;  %v1705_v53 = vpop.f32.mrb[93].mxu0 }
 0x1dd   : > { %v4982_v48 = vadd.f32 %v1705_v53, %v1481_v51  ;;  %v1868_v32 = vpop.f32.mrb[108].mxu1  ;;  %v4992_v51 = vld [vmem:[%s254_s28] ss:$0 sm:$0xff] }
 0x1de   : > { %v1870_v29 = vpop.f32.mrb[109].mxu1 }
 0x1df   : > { %v2887_v60 = vpop.f32.mrb[94].mxu0 }
 0x1e0   : > { %v4984_v9 = vadd.f32 %v2887_v60, %v1496_v8  ;;  %v1715_v38 = vpop.f32.mrb[95].mxu0 }
 0x1e1   : > { %v4986_v54 = vadd.f32 %v1715_v38, %v1491_v52  ;;  %v1873_v21 = vpop.f32.mrb[110].mxu1 }
 0x1e2   : > { %v1875_v26 = vpop.f32.mrb[111].mxu1 }
 0x1e3   : > { %v2922_v55 = vpop.f32.mrb[96].mxu0 }
 0x1e4   : > { %v2069_v56 = vadd.f32 %v2922_v55, %v1843_v15  ;;  %v2063_v47 = vpop.f32.mrb[97].mxu0 }
 0x1e5   : > { %v4994_v50 = vpop.f32.mrb[112].mxu1  ;;  %v2064_v39 = vadd.f32 %v2063_v47, %v1838_v12 }
 0x1e6   : > { %v2223_v8 = vadd.f32 %v2069_v56, %v4892_v25  ;;  %v1880_v61 = vpop.f32.mrb[113].mxu1 }
 0x1e7   : > { %v2222_v52 = vadd.f32 %v2064_v39, %v4895_v27  ;;  %v2925_v18 = vpop.f32.mrb[98].mxu0 }
 0x1e8   : > { %v2262_v35 = vadd.f32 %v4992_v51, %v2223_v8  ;;  %v2079_v10 = vadd.f32 %v2925_v18, %v1853_v62  ;;  %v2073_v24 = vpop.f32.mrb[99].mxu0 }
 0x1e9   : > { %v2261_v12 = vadd.f32 %v4992_v51, %v2222_v52  ;;  %v1883_v15 = vpop.f32.mrb[114].mxu1  ;;  %v2074_v25 = vadd.f32 %v2073_v24, %v1848_v37 }
 0x1ea   : > { %v2294_v36 = vmax.f32 %v2262_v35, 0.0  ;;  %v2225_v27 = vadd.f32 %v2079_v10, %v4900_v22  ;;  %v1885_v46 = vpop.f32.mrb[115].mxu1 }
 0x1eb   : > { %v2293_v11 = vmax.f32 %v2261_v12, 0.0  ;;  %v2224_v62 = vadd.f32 %v2074_v25, %v4903_v7  ;;  %v2928_v23 = vpop.f32.mrb[100].mxu0 }
 0x1ec   : > { %2326 = vst [vmem:[%s5004_s12 + $0x8] sm:$0xff] %v2294_v36  ;;  %v2395_v16 = vmul.f32 %v2294_v36, %v2294_v36  ;;  %v2264_v19 = vadd.f32 %v4992_v51, %v2225_v27  ;;  %v2089_v53 = vadd.f32 %v2928_v23, %v1863_v58  ;;  %v2083_v29 = vpop.f32.mrb[101].mxu0 }
 0x1ed   : > { %2325 = vst [vmem:[%s5004_s12] sm:$0xff] %v2293_v11  ;;  %v2357_v60 = vadd.f32 %v2294_v36, %v2293_v11  ;;  %v2394_v38 = vmul.f32 %v2293_v11, %v2293_v11  ;;  %v2263_v37 = vadd.f32 %v4992_v51, %v2224_v62  ;;  %v1888_v26 = vpop.f32.mrb[116].mxu1  ;;  %v2084_v22 = vadd.f32 %v2083_v29, %v1858_v17 }
 0x1ee   : > { %v2296_v55 = vmax.f32 %v2264_v19, 0.0  ;;  %v2227_v56 = vadd.f32 %v2089_v53, %v4908_v31  ;;  %v1890_v7 = vpop.f32.mrb[117].mxu1 }
 0x1ef   : > { %v2426_v47 = vadd.f32 %v2395_v16, %v2394_v38  ;;  %v2295_v39 = vmax.f32 %v2263_v37, 0.0  ;;  %v2226_v8 = vadd.f32 %v2084_v22, %v4911_v20  ;;  %v2931_v61 = vpop.f32.mrb[102].mxu0 }
 0x1f0   : > { %2328 = vst [vmem:[%s5004_s12 + $0x18] sm:$0xff] %v2296_v55  ;;  %v2266_v58 = vadd.f32 %v4992_v51, %v2227_v56  ;;  %v2099_v52 = vadd.f32 %v2931_v61, %v1873_v21  ;;  %v2093_v18 = vpop.f32.mrb[103].mxu0  ;;  %v2397_v12 = vmul.f32 %v2296_v55, %v2296_v55 }
 0x1f1   : > { %2327 = vst [vmem:[%s5004_s12 + $0x10] sm:$0xff] %v2295_v39  ;;  %v2358_v35 = vadd.f32 %v2357_v60, %v2295_v39  ;;  %v2396_v10 = vmul.f32 %v2295_v39, %v2295_v39  ;;  %v2265_v17 = vadd.f32 %v4992_v51, %v2226_v8  ;;  %v1893_v24 = vpop.f32.mrb[118].mxu1  ;;  %v2094_v31 = vadd.f32 %v2093_v18, %v1868_v32 }
 0x1f2   : > { %v2298_v25 = vmax.f32 %v2266_v58, 0.0  ;;  %v2229_v36 = vadd.f32 %v2099_v52, %v4916_v14  ;;  %v1895_v20 = vpop.f32.mrb[119].mxu1 }
 0x1f3   : > { %v2427_v27 = vadd.f32 %v2426_v47, %v2396_v10  ;;  %v2297_v46 = vmax.f32 %v2265_v17, 0.0  ;;  %v2359_v11 = vadd.f32 %v2358_v35, %v2296_v55  ;;  %v2228_v21 = vadd.f32 %v2094_v31, %v4919_v4  ;;  %v2934_v62 = vpop.f32.mrb[104].mxu0 }
 0x1f4   : > { %2330 = vst [vmem:[%s5004_s12 + $0x28] sm:$0xff] %v2298_v25  ;;  %v2268_v23 = vadd.f32 %v4992_v51, %v2229_v36  ;;  %v2109_v16 = vadd.f32 %v2934_v62, %v1883_v15  ;;  %v2103_v19 = vpop.f32.mrb[105].mxu0  ;;  %v2399_v55 = vmul.f32 %v2298_v25, %v2298_v25 }
 0x1f5   : > { %2329 = vst [vmem:[%s5004_s12 + $0x20] sm:$0xff] %v2297_v46  ;;  %v2360_v53 = vadd.f32 %v2359_v11, %v2297_v46  ;;  %v2398_v32 = vmul.f32 %v2297_v46, %v2297_v46  ;;  %v2428_v29 = vadd.f32 %v2427_v27, %v2397_v12  ;;  %v2267_v60 = vadd.f32 %v4992_v51, %v2228_v21  ;;  %v1898_v14 = vpop.f32.mrb[120].mxu1 }
 0x1f6   : > { %v2300_v38 = vmax.f32 %v2268_v23, 0.0  ;;  %v2231_v37 = vadd.f32 %v2109_v16, %v4922_v6  ;;  %v2104_v4 = vadd.f32 %v2103_v19, %v4994_v50  ;;  %v1900_v22 = vpop.f32.mrb[121].mxu1 }
 0x1f7   : > { %v2429_v56 = vadd.f32 %v2428_v29, %v2398_v32  ;;  %v2299_v7 = vmax.f32 %v2267_v60, 0.0  ;;  %v2361_v15 = vadd.f32 %v2360_v53, %v2298_v25  ;;  %v2937_v47 = vpop.f32.mrb[106].mxu0 }
 0x1f8   : > { %2332 = vst [vmem:[%s5004_s12 + $0x38] sm:$0xff] %v2300_v38  ;;  %v2270_v39 = vadd.f32 %v4992_v51, %v2231_v37  ;;  %v2230_v8 = vadd.f32 %v2104_v4, %v4925_v3  ;;  %v2119_v61 = vadd.f32 %v2937_v47, %v1893_v24  ;;  %v2113_v58 = vpop.f32.mrb[107].mxu0  ;;  %v2401_v25 = vmul.f32 %v2300_v38, %v2300_v38 }
 0x1f9   : > { %2331 = vst [vmem:[%s5004_s12 + $0x30] sm:$0xff] %v2299_v7  ;;  %v2362_v52 = vadd.f32 %v2361_v15, %v2299_v7  ;;  %v2400_v18 = vmul.f32 %v2299_v7, %v2299_v7  ;;  %v2430_v6 = vadd.f32 %v2429_v56, %v2399_v55  ;;  %v1903_v35 = vpop.f32.mrb[122].mxu1  ;;  %v2114_v50 = vadd.f32 %v2113_v58, %v1888_v26 }
 0x1fa   : > { %v2302_v10 = vmax.f32 %v2270_v39, 0.0  ;;  %v2269_v17 = vadd.f32 %v4992_v51, %v2230_v8  ;;  %v2233_v31 = vadd.f32 %v2119_v61, %v4928_v0  ;;  %v1905_v12 = vpop.f32.mrb[123].mxu1 }
 0x1fb   : > { %v2431_v36 = vadd.f32 %v2430_v6, %v2400_v18  ;;  %v2363_v20 = vadd.f32 %v2362_v52, %v2300_v38  ;;  %v2232_v3 = vadd.f32 %v2114_v50, %v4931_v34  ;;  %v2940_v24 = vpop.f32.mrb[108].mxu0 }
 0x1fc   : > { %2334 = vst [vmem:[%s5004_s12 + $0x48] sm:$0xff] %v2302_v10  ;;  %v2301_v27 = vmax.f32 %v2269_v17, 0.0  ;;  %v2272_v46 = vadd.f32 %v4992_v51, %v2233_v31  ;;  %v2129_v11 = vadd.f32 %v2940_v24, %v1903_v35  ;;  %v2123_v21 = vpop.f32.mrb[109].mxu0  ;;  %v2403_v37 = vmul.f32 %v2302_v10, %v2302_v10 }
 0x1fd   : > { %v2432_v26 = vadd.f32 %v2431_v36, %v2401_v25  ;;  %v2271_v62 = vadd.f32 %v4992_v51, %v2232_v3  ;;  %v1908_v23 = vpop.f32.mrb[124].mxu1  ;;  %v2124_v0 = vadd.f32 %v2123_v21, %v1898_v14 }
 0x1fe   : > { %2333 = vst [vmem:[%s5004_s12 + $0x40] sm:$0xff] %v2301_v27  ;;  %v2364_v16 = vadd.f32 %v2363_v20, %v2301_v27  ;;  %v2402_v19 = vmul.f32 %v2301_v27, %v2301_v27  ;;  %v2304_v53 = vmax.f32 %v2272_v46, 0.0  ;;  %v2235_v34 = vadd.f32 %v2129_v11, %v4934_v1  ;;  %v1910_v32 = vpop.f32.mrb[125].mxu1 }
 0x1ff   : > { %v2303_v29 = vmax.f32 %v2271_v62, 0.0  ;;  %v2234_v60 = vadd.f32 %v2124_v0, %v4937_v5  ;;  %v2943_v38 = vpop.f32.mrb[110].mxu0 }
 0x200   : > { %v2433_v4 = vadd.f32 %v2432_v26, %v2402_v19  ;;  %2336 = vst [vmem:[%s5004_s12 + $0x58] sm:$0xff] %v2304_v53  ;;  %v2365_v22 = vadd.f32 %v2364_v16, %v2302_v10  ;;  %v2274_v55 = vadd.f32 %v4992_v51, %v2235_v34  ;;  %v2133_v56 = vpop.f32.mrb[111].mxu0  ;;  %v2405_v6 = vmul.f32 %v2304_v53, %v2304_v53 }
 0x201   : > { %2335 = vst [vmem:[%s5004_s12 + $0x50] sm:$0xff] %v2303_v29  ;;  %v2404_v14 = vmul.f32 %v2303_v29, %v2303_v29  ;;  %v2273_v7 = vadd.f32 %v4992_v51, %v2234_v60  ;;  %v1913_v15 = vpop.f32.mrb[126].mxu1  ;;  %v2134_v1 = vadd.f32 %v2133_v56, %v1908_v23 }
 0x202   : > { %v2366_v47 = vadd.f32 %v2365_v22, %v2303_v29  ;;  %v2434_v39 = vadd.f32 %v2433_v4, %v2403_v37  ;;  %v2306_v8 = vmax.f32 %v2274_v55, 0.0  ;;  %v2139_v5 = vadd.f32 %v2943_v38, %v1913_v15  ;;  %v1915_v61 = vpop.f32.mrb[127].mxu1 }
 0x203   : > { %v2305_v58 = vmax.f32 %v2273_v7, 0.0  ;;  %v2236_v52 = vadd.f32 %v2134_v1, %v4943_v2  ;;  %v2946_v18 = vpop.f32.mrb[112].mxu0 }
 0x204   : > { %v2435_v35 = vadd.f32 %v2434_v39, %v2404_v14  ;;  %2338 = vst [vmem:[%s5004_s12 + $0x68] sm:$0xff] %v2306_v8  ;;  %v2367_v50 = vadd.f32 %v2366_v47, %v2304_v53  ;;  %v2237_v10 = vadd.f32 %v2139_v5, %v4940_v43  ;;  %v2143_v17 = vpop.f32.mrb[113].mxu0  ;;  %v2407_v27 = vmul.f32 %v2306_v8, %v2306_v8 }
 0x205   : > { %2337 = vst [vmem:[%s5004_s12 + $0x60] sm:$0xff] %v2305_v58  ;;  %v2406_v31 = vmul.f32 %v2305_v58, %v2305_v58  ;;  %v2275_v12 = vadd.f32 %v4992_v51, %v2236_v52  ;;  %v1918_v25 = vpop.f32.mrb[128].mxu1 }
 0x206   : > { %v2368_v36 = vadd.f32 %v2367_v50, %v2305_v58  ;;  %v2436_v20 = vadd.f32 %v2435_v35, %v2405_v6  ;;  %v2276_v3 = vadd.f32 %v4992_v51, %v2237_v10  ;;  %v2144_v2 = vadd.f32 %v2143_v17, %v1918_v25  ;;  %v1920_v24 = vpop.f32.mrb[129].mxu1 }
 0x207   : > { %v2307_v46 = vmax.f32 %v2275_v12, 0.0  ;;  %v2949_v11 = vpop.f32.mrb[114].mxu0 }
 0x208   : > { %v2437_v21 = vadd.f32 %v2436_v20, %v2406_v31  ;;  %v2308_v26 = vmax.f32 %v2276_v3, 0.0  ;;  %v2369_v43 = vadd.f32 %v2368_v36, %v2306_v8  ;;  %v2238_v62 = vadd.f32 %v2144_v2, %v4949_v13  ;;  %v2153_v23 = vpop.f32.mrb[115].mxu0 }
 0x209   : > { %2339 = vst [vmem:[%s5004_s12 + $0x70] sm:$0xff] %v2307_v46  ;;  %v2408_v0 = vmul.f32 %v2307_v46, %v2307_v46  ;;  %v1923_v16 = vpop.f32.mrb[130].mxu1 }
 0x20a   : > { %2340 = vst [vmem:[%s5004_s12 + $0x78] sm:$0xff] %v2308_v26  ;;  %v2370_v19 = vadd.f32 %v2369_v43, %v2307_v46  ;;  %v2438_v53 = vadd.f32 %v2437_v21, %v2407_v27  ;;  %v2277_v34 = vadd.f32 %v4992_v51, %v2238_v62  ;;  %v1925_v32 = vpop.f32.mrb[131].mxu1  ;;  %v2149_v29 = vadd.f32 %v2946_v18, %v1923_v16 }
 0x20b   : > { %v2952_v60 = vpop.f32.mrb[116].mxu0  ;;  %v2409_v38 = vmul.f32 %v2308_v26, %v2308_v26 }
 0x20c   : > { %v2439_v37 = vadd.f32 %v2438_v53, %v2408_v0  ;;  %v2309_v4 = vmax.f32 %v2277_v34, 0.0  ;;  %v2371_v22 = vadd.f32 %v2370_v19, %v2308_v26  ;;  %v2163_v55 = vpop.f32.mrb[117].mxu0  ;;  %v2239_v13 = vadd.f32 %v2149_v29, %v4946_v30 }
 0x20d   : > { %v1928_v56 = vpop.f32.mrb[132].mxu1 }
 0x20e   : > { %2341 = vst [vmem:[%s5004_s12 + $0x80] sm:$0xff] %v2309_v4  ;;  %v2372_v14 = vadd.f32 %v2371_v22, %v2309_v4  ;;  %v2410_v7 = vmul.f32 %v2309_v4, %v2309_v4  ;;  %v2440_v15 = vadd.f32 %v2439_v37, %v2409_v38  ;;  %v2154_v1 = vadd.f32 %v2153_v23, %v1928_v56  ;;  %v1930_v47 = vpop.f32.mrb[133].mxu1 }
 0x20f   : > { %v2278_v39 = vadd.f32 %v4992_v51, %v2239_v13  ;;  %v2955_v8 = vpop.f32.mrb[118].mxu0 }
 0x210   : > { %v2441_v5 = vadd.f32 %v2440_v15, %v2410_v7  ;;  %v2240_v61 = vadd.f32 %v2154_v1, %v4955_v59  ;;  %v2173_v58 = vpop.f32.mrb[119].mxu0 }
 0x211   : > { %v2310_v52 = vmax.f32 %v2278_v39, 0.0  ;;  %v1933_v18 = vpop.f32.mrb[134].mxu1 }
 0x212   : > { %v2279_v30 = vadd.f32 %v4992_v51, %v2240_v61  ;;  %v2159_v6 = vadd.f32 %v2949_v11, %v1933_v18  ;;  %v1935_v35 = vpop.f32.mrb[135].mxu1 }
 0x213   : > { %2342 = vst [vmem:[%s5004_s12 + $0x88] sm:$0xff] %v2310_v52  ;;  %v2373_v50 = vadd.f32 %v2372_v14, %v2310_v52  ;;  %v2411_v10 = vmul.f32 %v2310_v52, %v2310_v52  ;;  %v5060_v17 = vpop.f32.mrb[120].mxu0 }
 0x214   : > { %v2311_v31 = vmax.f32 %v2279_v30, 0.0  ;;  %v2241_v12 = vadd.f32 %v2159_v6, %v4952_v41  ;;  %v2183_v25 = vpop.f32.mrb[121].mxu0 }
 0x215   : > { %v2442_v36 = vadd.f32 %v2441_v5, %v2411_v10  ;;  %v1938_v59 = vpop.f32.mrb[136].mxu1 }
 0x216   : > { %2343 = vst [vmem:[%s5004_s12 + $0x90] sm:$0xff] %v2311_v31  ;;  %v2374_v20 = vadd.f32 %v2373_v50, %v2311_v31  ;;  %v2412_v3 = vmul.f32 %v2311_v31, %v2311_v31  ;;  %v2280_v2 = vadd.f32 %v4992_v51, %v2241_v12  ;;  %v2164_v24 = vadd.f32 %v2163_v55, %v1938_v59  ;;  %v1940_v27 = vpop.f32.mrb[137].mxu1 }
 0x217   : > { %v5065_v46 = vpop.f32.mrb[122].mxu0 }
 0x218   : > { %v2443_v11 = vadd.f32 %v2442_v36, %v2412_v3  ;;  %v2312_v21 = vmax.f32 %v2280_v2, 0.0  ;;  %v2242_v26 = vadd.f32 %v2164_v24, %v4961_v33  ;;  %v2193_v43 = vpop.f32.mrb[123].mxu0 }
 0x219   : > { %v1943_v41 = vpop.f32.mrb[138].mxu1 }
 0x21a   : > { %2344 = vst [vmem:[%s5004_s12 + $0x98] sm:$0xff] %v2312_v21  ;;  %v2375_v62 = vadd.f32 %v2374_v20, %v2312_v21  ;;  %v2413_v23 = vmul.f32 %v2312_v21, %v2312_v21  ;;  %v2281_v0 = vadd.f32 %v4992_v51, %v2242_v26  ;;  %v2169_v16 = vadd.f32 %v2952_v60, %v1943_v41  ;;  %v1945_v19 = vpop.f32.mrb[139].mxu1 }
 0x21b   : > { %v5070_v53 = vpop.f32.mrb[124].mxu0 }
 0x21c   : > { %v2444_v34 = vadd.f32 %v2443_v11, %v2413_v23  ;;  %v2313_v32 = vmax.f32 %v2281_v0, 0.0  ;;  %v2243_v29 = vadd.f32 %v2169_v16, %v4958_v63  ;;  %v5073_v38 = vpop.f32.mrb[125].mxu0 }
 0x21d   : > { %v1948_v37 = vpop.f32.mrb[140].mxu1 }
 0x21e   : > { %2345 = vst [vmem:[%s5004_s12 + $0xa0] sm:$0xff] %v2313_v32  ;;  %v2376_v33 = vadd.f32 %v2375_v62, %v2313_v32  ;;  %v2414_v4 = vmul.f32 %v2313_v32, %v2313_v32  ;;  %v2282_v22 = vadd.f32 %v4992_v51, %v2243_v29  ;;  %v2174_v55 = vadd.f32 %v2173_v58, %v1948_v37  ;;  %v1950_v13 = vpop.f32.mrb[141].mxu1 }
 0x21f   : > { %v5077_v56 = vpop.f32.mrb[126].mxu0 }
 0x220   : > { %v2445_v60 = vadd.f32 %v2444_v34, %v2414_v4  ;;  %v2314_v14 = vmax.f32 %v2282_v22, 0.0  ;;  %v2244_v7 = vadd.f32 %v2174_v55, %v4967_v40  ;;  %v5080_v15 = vpop.f32.mrb[127].mxu0 }
 0x221   : > { %v1953_v63 = vpop.f32.mrb[142].mxu1 }
 0x222   : > { %2346 = vst [vmem:[%s5004_s12 + $0xa8] sm:$0xff] %v2314_v14  ;;  %v2377_v1 = vadd.f32 %v2376_v33, %v2314_v14  ;;  %v2415_v47 = vmul.f32 %v2314_v14, %v2314_v14  ;;  %v2283_v39 = vadd.f32 %v4992_v51, %v2244_v7  ;;  %v2179_v5 = vadd.f32 %v2955_v8, %v1953_v63  ;;  %v1955_v61 = vpop.f32.mrb[143].mxu1 }
 0x224   : > { %v2446_v58 = vadd.f32 %v2445_v60, %v2415_v47  ;;  %v2315_v52 = vmax.f32 %v2283_v39, 0.0  ;;  %v2245_v18 = vadd.f32 %v2179_v5, %v4964_v49 }
 0x225   : > { %v1958_v30 = vpop.f32.mrb[144].mxu1 }
 0x226   : > { %2347 = vst [vmem:[%s5004_s12 + $0xb0] sm:$0xff] %v2315_v52  ;;  %v2378_v6 = vadd.f32 %v2377_v1, %v2315_v52  ;;  %v2416_v35 = vmul.f32 %v2315_v52, %v2315_v52  ;;  %v2284_v40 = vadd.f32 %v4992_v51, %v2245_v18  ;;  %v2184_v50 = vadd.f32 %v2183_v25, %v1958_v30  ;;  %v1960_v10 = vpop.f32.mrb[145].mxu1 }
 0x228   : > { %v2447_v31 = vadd.f32 %v2446_v58, %v2416_v35  ;;  %v2316_v12 = vmax.f32 %v2284_v40, 0.0  ;;  %v2246_v36 = vadd.f32 %v2184_v50, %v4973_v57 }
 0x229   : > { %v1963_v8 = vpop.f32.mrb[146].mxu1 }
 0x22a   : > { %2348 = vst [vmem:[%s5004_s12 + $0xb8] sm:$0xff] %v2316_v12  ;;  %v2379_v59 = vadd.f32 %v2378_v6, %v2316_v12  ;;  %v2417_v20 = vmul.f32 %v2316_v12, %v2316_v12  ;;  %v2285_v3 = vadd.f32 %v4992_v51, %v2246_v36  ;;  %v2189_v49 = vadd.f32 %v5060_v17, %v1963_v8  ;;  %v1965_v2 = vpop.f32.mrb[147].mxu1 }
 0x22c   : > { %v2448_v24 = vadd.f32 %v2447_v31, %v2417_v20  ;;  %v2317_v27 = vmax.f32 %v2285_v3, 0.0  ;;  %v2247_v25 = vadd.f32 %v2189_v49, %v4970_v28 }
 0x22d   : > { %v1968_v11 = vpop.f32.mrb[148].mxu1 }
 0x22e   : > { %2349 = vst [vmem:[%s5004_s12 + $0xc0] sm:$0xff] %v2317_v27  ;;  %v2380_v21 = vadd.f32 %v2379_v59, %v2317_v27  ;;  %v2418_v26 = vmul.f32 %v2317_v27, %v2317_v27  ;;  %v2286_v57 = vadd.f32 %v4992_v51, %v2247_v25  ;;  %v2194_v41 = vadd.f32 %v2193_v43, %v1968_v11  ;;  %v1970_v62 = vpop.f32.mrb[149].mxu1 }
 0x230   : > { %v2449_v23 = vadd.f32 %v2448_v24, %v2418_v26  ;;  %v2318_v0 = vmax.f32 %v2286_v57, 0.0  ;;  %v2248_v16 = vadd.f32 %v2194_v41, %v4978_v44 }
 0x231   : > { %v1973_v17 = vpop.f32.mrb[150].mxu1 }
 0x232   : > { %2350 = vst [vmem:[%s5004_s12 + $0xc8] sm:$0xff] %v2318_v0  ;;  %v2381_v19 = vadd.f32 %v2380_v21, %v2318_v0  ;;  %v2419_v34 = vmul.f32 %v2318_v0, %v2318_v0  ;;  %v2287_v32 = vadd.f32 %v4992_v51, %v2248_v16  ;;  %v2199_v28 = vadd.f32 %v5065_v46, %v1973_v17  ;;  %v1975_v29 = vpop.f32.mrb[151].mxu1 }
 0x234   : > { %v2450_v37 = vadd.f32 %v2449_v23, %v2419_v34  ;;  %v2319_v33 = vmax.f32 %v2287_v32, 0.0  ;;  %v2249_v43 = vadd.f32 %v2199_v28, %v4975_v42 }
 0x235   : > { %v1978_v4 = vpop.f32.mrb[152].mxu1 }
 0x236   : > { %2351 = vst [vmem:[%s5004_s12 + $0xd0] sm:$0xff] %v2319_v33  ;;  %v2382_v22 = vadd.f32 %v2381_v19, %v2319_v33  ;;  %v2420_v55 = vmul.f32 %v2319_v33, %v2319_v33  ;;  %v2288_v44 = vadd.f32 %v4992_v51, %v2249_v43  ;;  %v2204_v13 = vadd.f32 %v5073_v38, %v1978_v4  ;;  %v1980_v60 = vpop.f32.mrb[153].mxu1 }
 0x238   : > { %v2451_v14 = vadd.f32 %v2450_v37, %v2420_v55  ;;  %v2320_v7 = vmax.f32 %v2288_v44, 0.0  ;;  %v2250_v46 = vadd.f32 %v2204_v13, %v4982_v48 }
 0x239   : > { %v1983_v63 = vpop.f32.mrb[154].mxu1 }
 0x23a   : > { %2352 = vst [vmem:[%s5004_s12 + $0xd8] sm:$0xff] %v2320_v7  ;;  %v2383_v1 = vadd.f32 %v2382_v22, %v2320_v7  ;;  %v2421_v47 = vmul.f32 %v2320_v7, %v2320_v7  ;;  %v2289_v42 = vadd.f32 %v4992_v51, %v2250_v46  ;;  %v2209_v39 = vadd.f32 %v5070_v53, %v1983_v63  ;;  %v1985_v5 = vpop.f32.mrb[155].mxu1 }
 0x23c   : > { %v2452_v61 = vadd.f32 %v2451_v14, %v2421_v47  ;;  %v2321_v58 = vmax.f32 %v2289_v42, 0.0  ;;  %v2251_v38 = vadd.f32 %v2209_v39, %v4980_v45 }
 0x23d   : > { %v1988_v52 = vpop.f32.mrb[156].mxu1 }
 0x23e   : > { %2353 = vst [vmem:[%s5004_s12 + $0xe0] sm:$0xff] %v2321_v58  ;;  %v2384_v18 = vadd.f32 %v2383_v1, %v2321_v58  ;;  %v2422_v30 = vmul.f32 %v2321_v58, %v2321_v58  ;;  %v2290_v48 = vadd.f32 %v4992_v51, %v2251_v38  ;;  %v2214_v6 = vadd.f32 %v5080_v15, %v1988_v52  ;;  %v1990_v35 = vpop.f32.mrb[157].mxu1 }
 0x240   : > { %v2453_v40 = vadd.f32 %v2452_v61, %v2422_v30  ;;  %v2322_v50 = vmax.f32 %v2290_v48, 0.0  ;;  %v2252_v53 = vadd.f32 %v2214_v6, %v4986_v54 }
 0x241   : > { %v1993_v10 = vpop.f32.mrb[158].mxu1 }
 0x242   : > { %2354 = vst [vmem:[%s5004_s12 + $0xe8] sm:$0xff] %v2322_v50  ;;  %v2385_v31 = vadd.f32 %v2384_v18, %v2322_v50  ;;  %v2423_v12 = vmul.f32 %v2322_v50, %v2322_v50  ;;  %v2291_v45 = vadd.f32 %v4992_v51, %v2252_v53  ;;  %v2219_v36 = vadd.f32 %v5077_v56, %v1993_v10  ;;  %v1995_v8 = vpop.f32.mrb[159].mxu1 }
 0x244   : > { %v2454_v59 = vadd.f32 %v2453_v40, %v2423_v12  ;;  %v2323_v20 = vmax.f32 %v2291_v45, 0.0  ;;  %v2253_v3 = vadd.f32 %v2219_v36, %v4984_v9 }
 0x246   : > { %2355 = vst [vmem:[%s5004_s12 + $0xf0] sm:$0xff] %v2323_v20  ;;  %v2386_v15 = vadd.f32 %v2385_v31, %v2323_v20  ;;  %v2424_v49 = vmul.f32 %v2323_v20, %v2323_v20  ;;  %v2292_v2 = vadd.f32 %v4992_v51, %v2253_v3 }
 0x248   : > { %v2455_v54 = vadd.f32 %v2454_v59, %v2424_v49  ;;  %v2324_v24 = vmax.f32 %v2292_v2, 0.0 }
 0x24a   : > { %2356 = vst [vmem:[%s5004_s12 + $0xf8] sm:$0xff] %v2324_v24  ;;  %v2387_v27 = vadd.f32 %v2386_v15, %v2324_v24  ;;  %v2425_v25 = vmul.f32 %v2324_v24, %v2324_v24 }
 0x24c   : > { %v2388_v11 = vrot.slane %v2387_v27, 4  ;;  %v2456_v21 = vadd.f32 %v2455_v54, %v2425_v25 }
 0x24e   : > { %v2389_v26 = vadd.f32 %v2388_v11, %v2387_v27  ;;  %v2457_v56 = vrot.slane %v2456_v21, 4 }
 0x250   : > { %v2390_v57 = vrot.slane %v2389_v26, 2  ;;  %v2458_v41 = vadd.f32 %v2457_v56, %v2456_v21 }
 0x252   : > { %v2391_v62 = vadd.f32 %v2390_v57, %v2389_v26  ;;  %v2459_v23 = vrot.slane %v2458_v41, 2 }
 0x254   : > { %v2392_v9 = vrot.slane %v2391_v62, 1  ;;  %v2460_v0 = vadd.f32 %v2459_v23, %v2458_v41 }
 0x256   : > { %v2461_v16 = vrot.slane %v2460_v0, 1  ;;  %v2393_v51 = vadd.f32 %v2392_v9, %v2391_v62 }
 0x258   : > { %v2462_v17 = vadd.f32 %v2461_v16, %v2460_v0 }
 0x25a   : > { %v2463_v19 = vsel %vm329_vm0, %v2393_v51, %v2462_v17 }
 0x25b   : > { %2464 = vst [vmem:[%s263_s15] sm:$0x3] %v2463_v19 }
 0x25c PF: > { %s16_s18 = sadd.s32 1, %s3223_s18  }
 0x25d   : > { %p13_p4 = scmp.ge.s32.totalorder %s16_s18, 4  }
 0x25f   :  { %15 = sbr.rel (!%p13_p4) target bundleno = 1 (0x1), region = 84 }

</bundles_post_ra>
